<compile_context>
chip_gen: v7x
topology: tpu7x:2x2x1
jax: 0.10.0
libtpu: 0.0.40
codegen_flags: <defaults>
</compile_context>

<pallas_src>
import jax
import jax.numpy as jnp
from jax.experimental import pallas as pl
from jax.experimental.pallas import tpu as pltpu


def _sigmoid(x):
    # Written explicitly with exp (EUP) so kernel and reference use identical math.
    return 1.0 / (1.0 + jnp.exp(-x))


def encoder_kernel(x_ref, valid_ref,
                   wih_f_ref, whh_f_ref, bf_ref,
                   wih_b_ref, whh_b_ref, bb_ref,
                   wwhf_ref, wwhb_ref, bwh_ref,
                   wredf_ref, wredb_ref, bred_ref,
                   out_ref, hid_ref, cell_ref,
                   fwd_scr, bwd_scr):
    """Bidirectional masked LSTM + wh + reducer, fully VMEM-resident.

    Layouts (all 2-D, feature axis last / lane-dense):
      x_ref     : (S*B, I)   time-major flattened input, row t*B + b = x[b, t]
      valid_ref : (S*B, 1)   1.0 where t < length[b], else 0.0
      wih_*     : (I, 4H)    W_ih^T          whh_* : (H, 4H)  W_hh^T
      b*        : (1, 4H)    b_ih + b_hh
      wwhf/wwhb : (H, H)     wh.weight^T split into fwd / bwd halves
      wredf/..  : (H, H)     reducer.weight^T split into fwd / bwd halves
      out_ref   : (S*B, H)   hid_ref / cell_ref : (B, H)
    """
    H = whh_f_ref.shape[0]
    B = hid_ref.shape[0]
    S = x_ref.shape[0] // B

    x = x_ref[...]                           # (S*B, I)
    valid = valid_ref[...]                   # (S*B, 1)

    # Hoist input projections out of the recurrence: one big MXU matmul per
    # direction over all timesteps (instead of S tiny per-step matmuls).
    gx_f = jnp.dot(x, wih_f_ref[...], preferred_element_type=jnp.float32) + bf_ref[...]
    gx_b = jnp.dot(x, wih_b_ref[...], preferred_element_type=jnp.float32) + bb_ref[...]

    whh_f = whh_f_ref[...]
    whh_b = whh_b_ref[...]

    def cell_step(gx_t, h, c, whh):
        # PyTorch LSTM gate order: i, f, g, o.
        gates = gx_t + jnp.dot(h, whh, preferred_element_type=jnp.float32)
        i_g = _sigmoid(gates[:, 0 * H:1 * H])
        f_g = _sigmoid(gates[:, 1 * H:2 * H])
        g_g = jnp.tanh(gates[:, 2 * H:3 * H])
        o_g = _sigmoid(gates[:, 3 * H:4 * H])
        c_new = f_g * c + i_g * g_g
        h_new = o_g * jnp.tanh(c_new)
        return h_new, c_new

    zero = jnp.zeros((B, H), jnp.float32)

    # ---- forward direction ----
    # S is small and static; the Python loop fully unrolls into straight-line
    # code with static slice offsets (maximally robust lowering).
    h, c = zero, zero
    for t in range(S):
        h_new, c_new = cell_step(gx_f[t * B:(t + 1) * B, :], h, c, whh_f)
        v = valid[t * B:(t + 1) * B, :]                 # (B, 1) 1.0 / 0.0
        h = v * h_new + (1.0 - v) * h                   # freeze state past length
        c = v * c_new + (1.0 - v) * c
        fwd_scr[pl.ds(t * B, B), :] = v * h_new         # zero at padded steps
    h_f, c_f = h, c

    # ---- backward direction (each sequence processed from its last valid step) ----
    h, c = zero, zero
    for t in range(S - 1, -1, -1):
        h_new, c_new = cell_step(gx_b[t * B:(t + 1) * B, :], h, c, whh_b)
        v = valid[t * B:(t + 1) * B, :]
        h = v * h_new + (1.0 - v) * h
        c = v * c_new + (1.0 - v) * c
        bwd_scr[pl.ds(t * B, B), :] = v * h_new
    h_b, c_b = h, c

    # ---- wh on the zero-padded BiLSTM output ----
    # concat([fwd, bwd], -1) @ W^T is folded into two matmuls (weight halves).
    # TODO(synk): nn.Dropout(0.4) is a no-op here (eval/inference semantics).
    out_ref[...] = (
        jnp.dot(fwd_scr[...], wwhf_ref[...], preferred_element_type=jnp.float32)
        + jnp.dot(bwd_scr[...], wwhb_ref[...], preferred_element_type=jnp.float32)
        + bwh_ref[...])

    # ---- reducer on the concatenated final hidden / cell states ----
    hid_ref[...] = (
        jnp.dot(h_f, wredf_ref[...], preferred_element_type=jnp.float32)
        + jnp.dot(h_b, wredb_ref[...], preferred_element_type=jnp.float32)
        + bred_ref[...])
    cell_ref[...] = (
        jnp.dot(c_f, wredf_ref[...], preferred_element_type=jnp.float32)
        + jnp.dot(c_b, wredb_ref[...], preferred_element_type=jnp.float32)
        + bred_ref[...])


def encoder_forward(x, input_mask, params):
    """x: (B, S, I) f32, input_mask: (B, S) {0,1}. Returns (output, (hidden, cell))."""
    B, S, inp = x.shape
    H = params["wh_weight"].shape[0]

    # lengths, as pack_padded_sequence would see them.
    lengths = jnp.sum(input_mask, axis=-1).astype(jnp.int32)               # (B,)
    valid_tm = (jnp.arange(S)[:, None] < lengths[None, :]
                ).astype(jnp.float32).reshape(S * B, 1)                    # (S*B, 1)

    # time-major flatten: row t*B + b holds x[b, t]  (layout plumbing in wrapper).
    x_tm = jnp.transpose(x, (1, 0, 2)).reshape(S * B, inp)

    # Convert PyTorch-layout weights to kernel layout (transpose / fuse biases).
    wih_f = params["w_ih_f"].T                                             # (I, 4H)
    whh_f = params["w_hh_f"].T                                             # (H, 4H)
    bf = (params["b_ih_f"] + params["b_hh_f"]).reshape(1, 4 * H)
    wih_b = params["w_ih_b"].T
    whh_b = params["w_hh_b"].T
    bb = (params["b_ih_b"] + params["b_hh_b"]).reshape(1, 4 * H)

    wh_t = params["wh_weight"].T                                           # (2H, H)
    wwh_f, wwh_b = wh_t[:H], wh_t[H:]
    bwh = params["wh_bias"].reshape(1, H)

    red_t = params["red_weight"].T                                         # (2H, H)
    wred_f, wred_b = red_t[:H], red_t[H:]
    bred = params["red_bias"].reshape(1, H)

    operands = (x_tm, valid_tm, wih_f, whh_f, bf, wih_b, whh_b, bb,
                wwh_f, wwh_b, bwh, wred_f, wred_b, bred)

    SB = S * B
    flops = (2 * (2 * SB * inp * 4 * H)          # input projections (both dirs)
             + 2 * S * (2 * B * H * 4 * H)       # recurrent matmuls
             + 2 * (2 * SB * H * H)              # wh (two HxH halves)
             + 2 * 2 * (2 * B * H * H))          # reducer (hidden + cell)
    transcendentals = 2 * S * 5 * B * H          # 3 sigmoid + 2 tanh per step/dir
    out_bytes = 4 * (SB * H + 2 * B * H)
    in_bytes = 4 * sum(int(a.size) for a in operands)
    cost = pl.CostEstimate(flops=int(flops),
                           transcendentals=int(transcendentals),
                           bytes_accessed=int(in_bytes + out_bytes))

    out_tm, hid, cell = pl.pallas_call(
        encoder_kernel,
        out_shape=(
            jax.ShapeDtypeStruct((SB, H), jnp.float32),
            jax.ShapeDtypeStruct((B, H), jnp.float32),
            jax.ShapeDtypeStruct((B, H), jnp.float32),
        ),
        in_specs=[pl.BlockSpec(memory_space=pltpu.MemorySpace.VMEM)] * len(operands),
        out_specs=(pl.BlockSpec(memory_space=pltpu.MemorySpace.VMEM),) * 3,
        scratch_shapes=[
            pltpu.VMEM((SB, H), jnp.float32),    # forward-direction outputs
            pltpu.VMEM((SB, H), jnp.float32),    # backward-direction outputs
        ],
        cost_estimate=cost,
    )(*operands)

    # Output time dim is S; matches pad_packed_sequence when max(lengths) == S.
    output = out_tm.reshape(S, B, H).transpose(1, 0, 2)                    # (B, S, H)
    hidden = hid[:, None, :]                                               # (B, 1, H)
    cell_state = cell[:, None, :]                                          # (B, 1, H)
    return output, (hidden, cell_state)


def encoder_reference(x, input_mask, params):
    """Pure-JAX reference of the same forward math (eval-mode dropout)."""
    B, S, _ = x.shape
    H = params["wh_weight"].shape[0]
    lengths = jnp.sum(input_mask, axis=-1).astype(jnp.int32)

    def run_direction(w_ih, w_hh, b_ih, b_hh, order):
        h = jnp.zeros((B, H), jnp.float32)
        c = jnp.zeros((B, H), jnp.float32)
        outs = [None] * S
        for t in order:
            gates = x[:, t, :] @ w_ih.T + b_ih + h @ w_hh.T + b_hh
            i_g = _sigmoid(gates[:, 0 * H:1 * H])
            f_g = _sigmoid(gates[:, 1 * H:2 * H])
            g_g = jnp.tanh(gates[:, 2 * H:3 * H])
            o_g = _sigmoid(gates[:, 3 * H:4 * H])
            c_new = f_g * c + i_g * g_g
            h_new = o_g * jnp.tanh(c_new)
            valid = (t < lengths)[:, None]
            h = jnp.where(valid, h_new, h)
            c = jnp.where(valid, c_new, c)
            outs[t] = jnp.where(valid, h_new, 0.0)
        return jnp.stack(outs, axis=1), h, c

    fwd, h_f, c_f = run_direction(params["w_ih_f"], params["w_hh_f"],
                                  params["b_ih_f"], params["b_hh_f"], range(S))
    bwd, h_b, c_b = run_direction(params["w_ih_b"], params["w_hh_b"],
                                  params["b_ih_b"], params["b_hh_b"],
                                  range(S - 1, -1, -1))

    lstm_out = jnp.concatenate([fwd, bwd], axis=-1)                         # (B, S, 2H)
    output = lstm_out @ params["wh_weight"].T + params["wh_bias"]           # dropout=id

    hcat = jnp.concatenate([h_f, h_b], axis=-1)
    ccat = jnp.concatenate([c_f, c_b], axis=-1)
    hidden = (hcat @ params["red_weight"].T + params["red_bias"])[:, None, :]
    cell = (ccat @ params["red_weight"].T + params["red_bias"])[:, None, :]
    return output, (hidden, cell)


if __name__ == "__main__":
    key = jax.random.PRNGKey(0)
    B, S, INP, H = 2, 8, 16, 32

    keys = jax.random.split(key, 14)
    bound = 1.0 / jnp.sqrt(jnp.float32(H))

    def u(k, shape):
        return jax.random.uniform(k, shape, jnp.float32, -bound, bound)

    # Parameters in PyTorch layout (weight = (out_features, in_features)).
    params = {
        "w_ih_f": u(keys[0], (4 * H, INP)), "w_hh_f": u(keys[1], (4 * H, H)),
        "b_ih_f": u(keys[2], (4 * H,)),     "b_hh_f": u(keys[3], (4 * H,)),
        "w_ih_b": u(keys[4], (4 * H, INP)), "w_hh_b": u(keys[5], (4 * H, H)),
        "b_ih_b": u(keys[6], (4 * H,)),     "b_hh_b": u(keys[7], (4 * H,)),
        "wh_weight": u(keys[8], (H, 2 * H)),  "wh_bias": u(keys[9], (H,)),
        "red_weight": u(keys[10], (H, 2 * H)), "red_bias": u(keys[11], (H,)),
    }

    x = jax.random.normal(keys[12], (B, S, INP), jnp.float32)
    # Variable lengths; one full-length sequence so max(lengths) == S
    # (matches pad_packed_sequence's output time dimension).
    lengths = jnp.array([S, 5], dtype=jnp.int32)
    input_mask = (jnp.arange(S)[None, :] < lengths[:, None]).astype(jnp.float32)

    out, (hid, cell) = encoder_forward(x, input_mask, params)
    out = jax.block_until_ready(out)

    with jax.default_matmul_precision("float32"):
        ref_out, (ref_hid, ref_cell) = encoder_reference(x, input_mask, params)

    assert out.shape == (B, S, H)
    assert hid.shape == (B, 1, H) and cell.shape == (B, 1, H)
    assert jnp.allclose(out, ref_out, atol=1e-3, rtol=1e-3), "output mismatch"
    assert jnp.allclose(hid, ref_hid, atol=1e-3, rtol=1e-3), "hidden mismatch"
    assert jnp.allclose(cell, ref_cell, atol=1e-3, rtol=1e-3), "cell mismatch"
    # Padded positions of the LSTM output are zero, so wh there yields its bias.
    assert jnp.allclose(out[1, 5:, :], jnp.broadcast_to(params["wh_bias"], (3, H)),
                        atol=1e-3, rtol=1e-3), "padding rows should equal wh bias"

    print("KERNEL_OK")
</pallas_src>

<mosaic_0001>
module attributes {stable_mosaic.version = 11 : i64} {
  func.func @encoder_kernel(%arg0: memref<16x16xf32, #tpu.memory_space<vmem>>, %arg1: memref<16x1xf32, #tpu.memory_space<vmem>>, %arg2: memref<16x128xf32, #tpu.memory_space<vmem>>, %arg3: memref<32x128xf32, #tpu.memory_space<vmem>>, %arg4: memref<1x128xf32, #tpu.memory_space<vmem>>, %arg5: memref<16x128xf32, #tpu.memory_space<vmem>>, %arg6: memref<32x128xf32, #tpu.memory_space<vmem>>, %arg7: memref<1x128xf32, #tpu.memory_space<vmem>>, %arg8: memref<32x32xf32, #tpu.memory_space<vmem>>, %arg9: memref<32x32xf32, #tpu.memory_space<vmem>>, %arg10: memref<1x32xf32, #tpu.memory_space<vmem>>, %arg11: memref<32x32xf32, #tpu.memory_space<vmem>>, %arg12: memref<32x32xf32, #tpu.memory_space<vmem>>, %arg13: memref<1x32xf32, #tpu.memory_space<vmem>>, %arg14: memref<16x32xf32, #tpu.memory_space<vmem>>, %arg15: memref<2x32xf32, #tpu.memory_space<vmem>>, %arg16: memref<2x32xf32, #tpu.memory_space<vmem>>, %arg17: memref<16x32xf32, #tpu.memory_space<vmem>>, %arg18: memref<16x32xf32, #tpu.memory_space<vmem>>) attributes {dimension_semantics = [], scalar_prefetch = 0 : i64, scratch_operands = 2 : i64, tpu.core_type = #tpu.core_type<tc>} {
    %c0 = arith.constant 0 : index
    %c0_0 = arith.constant 0 : index
    %0 = vector.load %arg0[%c0, %c0_0] : memref<16x16xf32, #tpu.memory_space<vmem>>, vector<16x16xf32>
    %c0_1 = arith.constant 0 : index
    %c0_2 = arith.constant 0 : index
    %1 = vector.load %arg1[%c0_1, %c0_2] : memref<16x1xf32, #tpu.memory_space<vmem>>, vector<16x1xf32>
    %c0_3 = arith.constant 0 : index
    %c0_4 = arith.constant 0 : index
    %2 = vector.load %arg2[%c0_3, %c0_4] : memref<16x128xf32, #tpu.memory_space<vmem>>, vector<16x128xf32>
    %cst = arith.constant dense<0.000000e+00> : vector<16x128xf32>
    %3 = tpu.matmul %0, %2, %cst {dimension_numbers = #tpu.dot_dimension_numbers<[1], [0], [0], [1], [0, 0, 1, 1], [], []>} : vector<16x16xf32>, vector<16x128xf32>, vector<16x128xf32> -> vector<16x128xf32>
    %c0_5 = arith.constant 0 : index
    %c0_6 = arith.constant 0 : index
    %4 = vector.load %arg4[%c0_5, %c0_6] : memref<1x128xf32, #tpu.memory_space<vmem>>, vector<1x128xf32>
    %5 = vector.broadcast %4 : vector<1x128xf32> to vector<16x128xf32>
    %6 = arith.addf %3, %5 : vector<16x128xf32>
    %c0_7 = arith.constant 0 : index
    %c0_8 = arith.constant 0 : index
    %7 = vector.load %arg5[%c0_7, %c0_8] : memref<16x128xf32, #tpu.memory_space<vmem>>, vector<16x128xf32>
    %cst_9 = arith.constant dense<0.000000e+00> : vector<16x128xf32>
    %8 = tpu.matmul %0, %7, %cst_9 {dimension_numbers = #tpu.dot_dimension_numbers<[1], [0], [0], [1], [0, 0, 1, 1], [], []>} : vector<16x16xf32>, vector<16x128xf32>, vector<16x128xf32> -> vector<16x128xf32>
    %c0_10 = arith.constant 0 : index
    %c0_11 = arith.constant 0 : index
    %9 = vector.load %arg7[%c0_10, %c0_11] : memref<1x128xf32, #tpu.memory_space<vmem>>, vector<1x128xf32>
    %10 = vector.broadcast %9 : vector<1x128xf32> to vector<16x128xf32>
    %11 = arith.addf %8, %10 : vector<16x128xf32>
    %c0_12 = arith.constant 0 : index
    %c0_13 = arith.constant 0 : index
    %12 = vector.load %arg3[%c0_12, %c0_13] : memref<32x128xf32, #tpu.memory_space<vmem>>, vector<32x128xf32>
    %c0_14 = arith.constant 0 : index
    %c0_15 = arith.constant 0 : index
    %13 = vector.load %arg6[%c0_14, %c0_15] : memref<32x128xf32, #tpu.memory_space<vmem>>, vector<32x128xf32>
    %cst_16 = arith.constant 0.000000e+00 : f32
    %14 = vector.broadcast %cst_16 : f32 to vector<2x32xf32>
    %15 = vector.extract_strided_slice %6 {offsets = [0, 0], sizes = [2, 128], strides = [1, 1]} : vector<16x128xf32> to vector<2x128xf32>
    %cst_17 = arith.constant dense<0.000000e+00> : vector<2x128xf32>
    %16 = tpu.matmul %14, %12, %cst_17 {dimension_numbers = #tpu.dot_dimension_numbers<[1], [0], [0], [1], [0, 0, 1, 1], [], []>} : vector<2x32xf32>, vector<32x128xf32>, vector<2x128xf32> -> vector<2x128xf32>
    %17 = arith.addf %15, %16 : vector<2x128xf32>
    %18 = vector.extract_strided_slice %17 {offsets = [0, 0], sizes = [2, 32], strides = [1, 1]} : vector<2x128xf32> to vector<2x32xf32>
    %cst_18 = arith.constant 0.000000e+00 : f32
    %19 = vector.broadcast %cst_18 : f32 to vector<2x32xf32>
    %20 = arith.subf %19, %18 : vector<2x32xf32>
    %21 = math.exp %20 : vector<2x32xf32>
    %cst_19 = arith.constant 1.000000e+00 : f32
    %22 = vector.broadcast %cst_19 : f32 to vector<2x32xf32>
    %23 = arith.addf %22, %21 : vector<2x32xf32>
    %cst_20 = arith.constant 1.000000e+00 : f32
    %24 = vector.broadcast %cst_20 : f32 to vector<2x32xf32>
    %25 = arith.divf %24, %23 : vector<2x32xf32>
    %26 = vector.extract_strided_slice %17 {offsets = [0, 32], sizes = [2, 32], strides = [1, 1]} : vector<2x128xf32> to vector<2x32xf32>
    %cst_21 = arith.constant 0.000000e+00 : f32
    %27 = vector.broadcast %cst_21 : f32 to vector<2x32xf32>
    %28 = arith.subf %27, %26 : vector<2x32xf32>
    %29 = math.exp %28 : vector<2x32xf32>
    %cst_22 = arith.constant 1.000000e+00 : f32
    %30 = vector.broadcast %cst_22 : f32 to vector<2x32xf32>
    %31 = arith.addf %30, %29 : vector<2x32xf32>
    %cst_23 = arith.constant 1.000000e+00 : f32
    %32 = vector.broadcast %cst_23 : f32 to vector<2x32xf32>
    %33 = arith.divf %32, %31 : vector<2x32xf32>
    %34 = vector.extract_strided_slice %17 {offsets = [0, 64], sizes = [2, 32], strides = [1, 1]} : vector<2x128xf32> to vector<2x32xf32>
    %35 = math.tanh %34 : vector<2x32xf32>
    %36 = vector.extract_strided_slice %17 {offsets = [0, 96], sizes = [2, 32], strides = [1, 1]} : vector<2x128xf32> to vector<2x32xf32>
    %cst_24 = arith.constant 0.000000e+00 : f32
    %37 = vector.broadcast %cst_24 : f32 to vector<2x32xf32>
    %38 = arith.subf %37, %36 : vector<2x32xf32>
    %39 = math.exp %38 : vector<2x32xf32>
    %cst_25 = arith.constant 1.000000e+00 : f32
    %40 = vector.broadcast %cst_25 : f32 to vector<2x32xf32>
    %41 = arith.addf %40, %39 : vector<2x32xf32>
    %cst_26 = arith.constant 1.000000e+00 : f32
    %42 = vector.broadcast %cst_26 : f32 to vector<2x32xf32>
    %43 = arith.divf %42, %41 : vector<2x32xf32>
    %44 = arith.mulf %33, %14 : vector<2x32xf32>
    %45 = arith.mulf %25, %35 : vector<2x32xf32>
    %46 = arith.addf %44, %45 : vector<2x32xf32>
    %47 = math.tanh %46 : vector<2x32xf32>
    %48 = arith.mulf %43, %47 : vector<2x32xf32>
    %49 = vector.extract_strided_slice %1 {offsets = [0, 0], sizes = [2, 1], strides = [1, 1]} : vector<16x1xf32> to vector<2x1xf32>
    %50 = vector.broadcast %49 : vector<2x1xf32> to vector<2x32xf32>
    %51 = arith.mulf %50, %48 : vector<2x32xf32>
    %cst_27 = arith.constant 1.000000e+00 : f32
    %52 = vector.broadcast %cst_27 : f32 to vector<2x1xf32>
    %53 = arith.subf %52, %49 : vector<2x1xf32>
    %54 = vector.broadcast %53 : vector<2x1xf32> to vector<2x32xf32>
    %55 = arith.mulf %54, %14 : vector<2x32xf32>
    %56 = arith.addf %51, %55 : vector<2x32xf32>
    %57 = vector.broadcast %49 : vector<2x1xf32> to vector<2x32xf32>
    %58 = arith.mulf %57, %46 : vector<2x32xf32>
    %cst_28 = arith.constant 1.000000e+00 : f32
    %59 = vector.broadcast %cst_28 : f32 to vector<2x1xf32>
    %60 = arith.subf %59, %49 : vector<2x1xf32>
    %61 = vector.broadcast %60 : vector<2x1xf32> to vector<2x32xf32>
    %62 = arith.mulf %61, %14 : vector<2x32xf32>
    %63 = arith.addf %58, %62 : vector<2x32xf32>
    %64 = vector.broadcast %49 : vector<2x1xf32> to vector<2x32xf32>
    %65 = arith.mulf %64, %48 : vector<2x32xf32>
    %c0_29 = arith.constant 0 : index
    %c0_30 = arith.constant 0 : index
    %66 = vector.load %arg17[%c0_29, %c0_30] : memref<16x32xf32, #tpu.memory_space<vmem>>, vector<2x32xf32>
    tpu.vector_store %arg17[%c0_29, %c0_30], %65 {strides = array<i32>} : memref<16x32xf32, #tpu.memory_space<vmem>>, vector<2x32xf32>,
    %67 = vector.extract_strided_slice %6 {offsets = [2, 0], sizes = [2, 128], strides = [1, 1]} : vector<16x128xf32> to vector<2x128xf32>
    %cst_31 = arith.constant dense<0.000000e+00> : vector<2x128xf32>
    %68 = tpu.matmul %56, %12, %cst_31 {dimension_numbers = #tpu.dot_dimension_numbers<[1], [0], [0], [1], [0, 0, 1, 1], [], []>} : vector<2x32xf32>, vector<32x128xf32>, vector<2x128xf32> -> vector<2x128xf32>
    %69 = arith.addf %67, %68 : vector<2x128xf32>
    %70 = vector.extract_strided_slice %69 {offsets = [0, 0], sizes = [2, 32], strides = [1, 1]} : vector<2x128xf32> to vector<2x32xf32>
    %cst_32 = arith.constant 0.000000e+00 : f32
    %71 = vector.broadcast %cst_32 : f32 to vector<2x32xf32>
    %72 = arith.subf %71, %70 : vector<2x32xf32>
    %73 = math.exp %72 : vector<2x32xf32>
    %cst_33 = arith.constant 1.000000e+00 : f32
    %74 = vector.broadcast %cst_33 : f32 to vector<2x32xf32>
    %75 = arith.addf %74, %73 : vector<2x32xf32>
    %cst_34 = arith.constant 1.000000e+00 : f32
    %76 = vector.broadcast %cst_34 : f32 to vector<2x32xf32>
    %77 = arith.divf %76, %75 : vector<2x32xf32>
    %78 = vector.extract_strided_slice %69 {offsets = [0, 32], sizes = [2, 32], strides = [1, 1]} : vector<2x128xf32> to vector<2x32xf32>
    %cst_35 = arith.constant 0.000000e+00 : f32
    %79 = vector.broadcast %cst_35 : f32 to vector<2x32xf32>
    %80 = arith.subf %79, %78 : vector<2x32xf32>
    %81 = math.exp %80 : vector<2x32xf32>
    %cst_36 = arith.constant 1.000000e+00 : f32
    %82 = vector.broadcast %cst_36 : f32 to vector<2x32xf32>
    %83 = arith.addf %82, %81 : vector<2x32xf32>
    %cst_37 = arith.constant 1.000000e+00 : f32
    %84 = vector.broadcast %cst_37 : f32 to vector<2x32xf32>
    %85 = arith.divf %84, %83 : vector<2x32xf32>
    %86 = vector.extract_strided_slice %69 {offsets = [0, 64], sizes = [2, 32], strides = [1, 1]} : vector<2x128xf32> to vector<2x32xf32>
    %87 = math.tanh %86 : vector<2x32xf32>
    %88 = vector.extract_strided_slice %69 {offsets = [0, 96], sizes = [2, 32], strides = [1, 1]} : vector<2x128xf32> to vector<2x32xf32>
    %cst_38 = arith.constant 0.000000e+00 : f32
    %89 = vector.broadcast %cst_38 : f32 to vector<2x32xf32>
    %90 = arith.subf %89, %88 : vector<2x32xf32>
    %91 = math.exp %90 : vector<2x32xf32>
    %cst_39 = arith.constant 1.000000e+00 : f32
    %92 = vector.broadcast %cst_39 : f32 to vector<2x32xf32>
    %93 = arith.addf %92, %91 : vector<2x32xf32>
    %cst_40 = arith.constant 1.000000e+00 : f32
    %94 = vector.broadcast %cst_40 : f32 to vector<2x32xf32>
    %95 = arith.divf %94, %93 : vector<2x32xf32>
    %96 = arith.mulf %85, %63 : vector<2x32xf32>
    %97 = arith.mulf %77, %87 : vector<2x32xf32>
    %98 = arith.addf %96, %97 : vector<2x32xf32>
    %99 = math.tanh %98 : vector<2x32xf32>
    %100 = arith.mulf %95, %99 : vector<2x32xf32>
    %101 = vector.extract_strided_slice %1 {offsets = [2, 0], sizes = [2, 1], strides = [1, 1]} : vector<16x1xf32> to vector<2x1xf32>
    %102 = vector.broadcast %101 : vector<2x1xf32> to vector<2x32xf32>
    %103 = arith.mulf %102, %100 : vector<2x32xf32>
    %cst_41 = arith.constant 1.000000e+00 : f32
    %104 = vector.broadcast %cst_41 : f32 to vector<2x1xf32>
    %105 = arith.subf %104, %101 : vector<2x1xf32>
    %106 = vector.broadcast %105 : vector<2x1xf32> to vector<2x32xf32>
    %107 = arith.mulf %106, %56 : vector<2x32xf32>
    %108 = arith.addf %103, %107 : vector<2x32xf32>
    %109 = vector.broadcast %101 : vector<2x1xf32> to vector<2x32xf32>
    %110 = arith.mulf %109, %98 : vector<2x32xf32>
    %cst_42 = arith.constant 1.000000e+00 : f32
    %111 = vector.broadcast %cst_42 : f32 to vector<2x1xf32>
    %112 = arith.subf %111, %101 : vector<2x1xf32>
    %113 = vector.broadcast %112 : vector<2x1xf32> to vector<2x32xf32>
    %114 = arith.mulf %113, %63 : vector<2x32xf32>
    %115 = arith.addf %110, %114 : vector<2x32xf32>
    %116 = vector.broadcast %101 : vector<2x1xf32> to vector<2x32xf32>
    %117 = arith.mulf %116, %100 : vector<2x32xf32>
    %c2 = arith.constant 2 : index
    %c0_43 = arith.constant 0 : index
    %118 = vector.load %arg17[%c2, %c0_43] : memref<16x32xf32, #tpu.memory_space<vmem>>, vector<2x32xf32>
    tpu.vector_store %arg17[%c2, %c0_43], %117 {strides = array<i32>} : memref<16x32xf32, #tpu.memory_space<vmem>>, vector<2x32xf32>,
    %119 = vector.extract_strided_slice %6 {offsets = [4, 0], sizes = [2, 128], strides = [1, 1]} : vector<16x128xf32> to vector<2x128xf32>
    %cst_44 = arith.constant dense<0.000000e+00> : vector<2x128xf32>
    %120 = tpu.matmul %108, %12, %cst_44 {dimension_numbers = #tpu.dot_dimension_numbers<[1], [0], [0], [1], [0, 0, 1, 1], [], []>} : vector<2x32xf32>, vector<32x128xf32>, vector<2x128xf32> -> vector<2x128xf32>
    %121 = arith.addf %119, %120 : vector<2x128xf32>
    %122 = vector.extract_strided_slice %121 {offsets = [0, 0], sizes = [2, 32], strides = [1, 1]} : vector<2x128xf32> to vector<2x32xf32>
    %cst_45 = arith.constant 0.000000e+00 : f32
    %123 = vector.broadcast %cst_45 : f32 to vector<2x32xf32>
    %124 = arith.subf %123, %122 : vector<2x32xf32>
    %125 = math.exp %124 : vector<2x32xf32>
    %cst_46 = arith.constant 1.000000e+00 : f32
    %126 = vector.broadcast %cst_46 : f32 to vector<2x32xf32>
    %127 = arith.addf %126, %125 : vector<2x32xf32>
    %cst_47 = arith.constant 1.000000e+00 : f32
    %128 = vector.broadcast %cst_47 : f32 to vector<2x32xf32>
    %129 = arith.divf %128, %127 : vector<2x32xf32>
    %130 = vector.extract_strided_slice %121 {offsets = [0, 32], sizes = [2, 32], strides = [1, 1]} : vector<2x128xf32> to vector<2x32xf32>
    %cst_48 = arith.constant 0.000000e+00 : f32
    %131 = vector.broadcast %cst_48 : f32 to vector<2x32xf32>
    %132 = arith.subf %131, %130 : vector<2x32xf32>
    %133 = math.exp %132 : vector<2x32xf32>
    %cst_49 = arith.constant 1.000000e+00 : f32
    %134 = vector.broadcast %cst_49 : f32 to vector<2x32xf32>
    %135 = arith.addf %134, %133 : vector<2x32xf32>
    %cst_50 = arith.constant 1.000000e+00 : f32
    %136 = vector.broadcast %cst_50 : f32 to vector<2x32xf32>
    %137 = arith.divf %136, %135 : vector<2x32xf32>
    %138 = vector.extract_strided_slice %121 {offsets = [0, 64], sizes = [2, 32], strides = [1, 1]} : vector<2x128xf32> to vector<2x32xf32>
    %139 = math.tanh %138 : vector<2x32xf32>
    %140 = vector.extract_strided_slice %121 {offsets = [0, 96], sizes = [2, 32], strides = [1, 1]} : vector<2x128xf32> to vector<2x32xf32>
    %cst_51 = arith.constant 0.000000e+00 : f32
    %141 = vector.broadcast %cst_51 : f32 to vector<2x32xf32>
    %142 = arith.subf %141, %140 : vector<2x32xf32>
    %143 = math.exp %142 : vector<2x32xf32>
    %cst_52 = arith.constant 1.000000e+00 : f32
    %144 = vector.broadcast %cst_52 : f32 to vector<2x32xf32>
    %145 = arith.addf %144, %143 : vector<2x32xf32>
    %cst_53 = arith.constant 1.000000e+00 : f32
    %146 = vector.broadcast %cst_53 : f32 to vector<2x32xf32>
    %147 = arith.divf %146, %145 : vector<2x32xf32>
    %148 = arith.mulf %137, %115 : vector<2x32xf32>
    %149 = arith.mulf %129, %139 : vector<2x32xf32>
    %150 = arith.addf %148, %149 : vector<2x32xf32>
    %151 = math.tanh %150 : vector<2x32xf32>
    %152 = arith.mulf %147, %151 : vector<2x32xf32>
    %153 = vector.extract_strided_slice %1 {offsets = [4, 0], sizes = [2, 1], strides = [1, 1]} : vector<16x1xf32> to vector<2x1xf32>
    %154 = vector.broadcast %153 : vector<2x1xf32> to vector<2x32xf32>
    %155 = arith.mulf %154, %152 : vector<2x32xf32>
    %cst_54 = arith.constant 1.000000e+00 : f32
    %156 = vector.broadcast %cst_54 : f32 to vector<2x1xf32>
    %157 = arith.subf %156, %153 : vector<2x1xf32>
    %158 = vector.broadcast %157 : vector<2x1xf32> to vector<2x32xf32>
    %159 = arith.mulf %158, %108 : vector<2x32xf32>
    %160 = arith.addf %155, %159 : vector<2x32xf32>
    %161 = vector.broadcast %153 : vector<2x1xf32> to vector<2x32xf32>
    %162 = arith.mulf %161, %150 : vector<2x32xf32>
    %cst_55 = arith.constant 1.000000e+00 : f32
    %163 = vector.broadcast %cst_55 : f32 to vector<2x1xf32>
    %164 = arith.subf %163, %153 : vector<2x1xf32>
    %165 = vector.broadcast %164 : vector<2x1xf32> to vector<2x32xf32>
    %166 = arith.mulf %165, %115 : vector<2x32xf32>
    %167 = arith.addf %162, %166 : vector<2x32xf32>
    %168 = vector.broadcast %153 : vector<2x1xf32> to vector<2x32xf32>
    %169 = arith.mulf %168, %152 : vector<2x32xf32>
    %c4 = arith.constant 4 : index
    %c0_56 = arith.constant 0 : index
    %170 = vector.load %arg17[%c4, %c0_56] : memref<16x32xf32, #tpu.memory_space<vmem>>, vector<2x32xf32>
    tpu.vector_store %arg17[%c4, %c0_56], %169 {strides = array<i32>} : memref<16x32xf32, #tpu.memory_space<vmem>>, vector<2x32xf32>,
    %171 = vector.extract_strided_slice %6 {offsets = [6, 0], sizes = [2, 128], strides = [1, 1]} : vector<16x128xf32> to vector<2x128xf32>
    %cst_57 = arith.constant dense<0.000000e+00> : vector<2x128xf32>
    %172 = tpu.matmul %160, %12, %cst_57 {dimension_numbers = #tpu.dot_dimension_numbers<[1], [0], [0], [1], [0, 0, 1, 1], [], []>} : vector<2x32xf32>, vector<32x128xf32>, vector<2x128xf32> -> vector<2x128xf32>
    %173 = arith.addf %171, %172 : vector<2x128xf32>
    %174 = vector.extract_strided_slice %173 {offsets = [0, 0], sizes = [2, 32], strides = [1, 1]} : vector<2x128xf32> to vector<2x32xf32>
    %cst_58 = arith.constant 0.000000e+00 : f32
    %175 = vector.broadcast %cst_58 : f32 to vector<2x32xf32>
    %176 = arith.subf %175, %174 : vector<2x32xf32>
    %177 = math.exp %176 : vector<2x32xf32>
    %cst_59 = arith.constant 1.000000e+00 : f32
    %178 = vector.broadcast %cst_59 : f32 to vector<2x32xf32>
    %179 = arith.addf %178, %177 : vector<2x32xf32>
    %cst_60 = arith.constant 1.000000e+00 : f32
    %180 = vector.broadcast %cst_60 : f32 to vector<2x32xf32>
    %181 = arith.divf %180, %179 : vector<2x32xf32>
    %182 = vector.extract_strided_slice %173 {offsets = [0, 32], sizes = [2, 32], strides = [1, 1]} : vector<2x128xf32> to vector<2x32xf32>
    %cst_61 = arith.constant 0.000000e+00 : f32
    %183 = vector.broadcast %cst_61 : f32 to vector<2x32xf32>
    %184 = arith.subf %183, %182 : vector<2x32xf32>
    %185 = math.exp %184 : vector<2x32xf32>
    %cst_62 = arith.constant 1.000000e+00 : f32
    %186 = vector.broadcast %cst_62 : f32 to vector<2x32xf32>
    %187 = arith.addf %186, %185 : vector<2x32xf32>
    %cst_63 = arith.constant 1.000000e+00 : f32
    %188 = vector.broadcast %cst_63 : f32 to vector<2x32xf32>
    %189 = arith.divf %188, %187 : vector<2x32xf32>
    %190 = vector.extract_strided_slice %173 {offsets = [0, 64], sizes = [2, 32], strides = [1, 1]} : vector<2x128xf32> to vector<2x32xf32>
    %191 = math.tanh %190 : vector<2x32xf32>
    %192 = vector.extract_strided_slice %173 {offsets = [0, 96], sizes = [2, 32], strides = [1, 1]} : vector<2x128xf32> to vector<2x32xf32>
    %cst_64 = arith.constant 0.000000e+00 : f32
    %193 = vector.broadcast %cst_64 : f32 to vector<2x32xf32>
    %194 = arith.subf %193, %192 : vector<2x32xf32>
    %195 = math.exp %194 : vector<2x32xf32>
    %cst_65 = arith.constant 1.000000e+00 : f32
    %196 = vector.broadcast %cst_65 : f32 to vector<2x32xf32>
    %197 = arith.addf %196, %195 : vector<2x32xf32>
    %cst_66 = arith.constant 1.000000e+00 : f32
    %198 = vector.broadcast %cst_66 : f32 to vector<2x32xf32>
    %199 = arith.divf %198, %197 : vector<2x32xf32>
    %200 = arith.mulf %189, %167 : vector<2x32xf32>
    %201 = arith.mulf %181, %191 : vector<2x32xf32>
    %202 = arith.addf %200, %201 : vector<2x32xf32>
    %203 = math.tanh %202 : vector<2x32xf32>
    %204 = arith.mulf %199, %203 : vector<2x32xf32>
    %205 = vector.extract_strided_slice %1 {offsets = [6, 0], sizes = [2, 1], strides = [1, 1]} : vector<16x1xf32> to vector<2x1xf32>
    %206 = vector.broadcast %205 : vector<2x1xf32> to vector<2x32xf32>
    %207 = arith.mulf %206, %204 : vector<2x32xf32>
    %cst_67 = arith.constant 1.000000e+00 : f32
    %208 = vector.broadcast %cst_67 : f32 to vector<2x1xf32>
    %209 = arith.subf %208, %205 : vector<2x1xf32>
    %210 = vector.broadcast %209 : vector<2x1xf32> to vector<2x32xf32>
    %211 = arith.mulf %210, %160 : vector<2x32xf32>
    %212 = arith.addf %207, %211 : vector<2x32xf32>
    %213 = vector.broadcast %205 : vector<2x1xf32> to vector<2x32xf32>
    %214 = arith.mulf %213, %202 : vector<2x32xf32>
    %cst_68 = arith.constant 1.000000e+00 : f32
    %215 = vector.broadcast %cst_68 : f32 to vector<2x1xf32>
    %216 = arith.subf %215, %205 : vector<2x1xf32>
    %217 = vector.broadcast %216 : vector<2x1xf32> to vector<2x32xf32>
    %218 = arith.mulf %217, %167 : vector<2x32xf32>
    %219 = arith.addf %214, %218 : vector<2x32xf32>
    %220 = vector.broadcast %205 : vector<2x1xf32> to vector<2x32xf32>
    %221 = arith.mulf %220, %204 : vector<2x32xf32>
    %c6 = arith.constant 6 : index
    %c0_69 = arith.constant 0 : index
    %222 = vector.load %arg17[%c6, %c0_69] : memref<16x32xf32, #tpu.memory_space<vmem>>, vector<2x32xf32>
    tpu.vector_store %arg17[%c6, %c0_69], %221 {strides = array<i32>} : memref<16x32xf32, #tpu.memory_space<vmem>>, vector<2x32xf32>,
    %223 = vector.extract_strided_slice %6 {offsets = [8, 0], sizes = [2, 128], strides = [1, 1]} : vector<16x128xf32> to vector<2x128xf32>
    %cst_70 = arith.constant dense<0.000000e+00> : vector<2x128xf32>
    %224 = tpu.matmul %212, %12, %cst_70 {dimension_numbers = #tpu.dot_dimension_numbers<[1], [0], [0], [1], [0, 0, 1, 1], [], []>} : vector<2x32xf32>, vector<32x128xf32>, vector<2x128xf32> -> vector<2x128xf32>
    %225 = arith.addf %223, %224 : vector<2x128xf32>
    %226 = vector.extract_strided_slice %225 {offsets = [0, 0], sizes = [2, 32], strides = [1, 1]} : vector<2x128xf32> to vector<2x32xf32>
    %cst_71 = arith.constant 0.000000e+00 : f32
    %227 = vector.broadcast %cst_71 : f32 to vector<2x32xf32>
    %228 = arith.subf %227, %226 : vector<2x32xf32>
    %229 = math.exp %228 : vector<2x32xf32>
    %cst_72 = arith.constant 1.000000e+00 : f32
    %230 = vector.broadcast %cst_72 : f32 to vector<2x32xf32>
    %231 = arith.addf %230, %229 : vector<2x32xf32>
    %cst_73 = arith.constant 1.000000e+00 : f32
    %232 = vector.broadcast %cst_73 : f32 to vector<2x32xf32>
    %233 = arith.divf %232, %231 : vector<2x32xf32>
    %234 = vector.extract_strided_slice %225 {offsets = [0, 32], sizes = [2, 32], strides = [1, 1]} : vector<2x128xf32> to vector<2x32xf32>
    %cst_74 = arith.constant 0.000000e+00 : f32
    %235 = vector.broadcast %cst_74 : f32 to vector<2x32xf32>
    %236 = arith.subf %235, %234 : vector<2x32xf32>
    %237 = math.exp %236 : vector<2x32xf32>
    %cst_75 = arith.constant 1.000000e+00 : f32
    %238 = vector.broadcast %cst_75 : f32 to vector<2x32xf32>
    %239 = arith.addf %238, %237 : vector<2x32xf32>
    %cst_76 = arith.constant 1.000000e+00 : f32
    %240 = vector.broadcast %cst_76 : f32 to vector<2x32xf32>
    %241 = arith.divf %240, %239 : vector<2x32xf32>
    %242 = vector.extract_strided_slice %225 {offsets = [0, 64], sizes = [2, 32], strides = [1, 1]} : vector<2x128xf32> to vector<2x32xf32>
    %243 = math.tanh %242 : vector<2x32xf32>
    %244 = vector.extract_strided_slice %225 {offsets = [0, 96], sizes = [2, 32], strides = [1, 1]} : vector<2x128xf32> to vector<2x32xf32>
    %cst_77 = arith.constant 0.000000e+00 : f32
    %245 = vector.broadcast %cst_77 : f32 to vector<2x32xf32>
    %246 = arith.subf %245, %244 : vector<2x32xf32>
    %247 = math.exp %246 : vector<2x32xf32>
    %cst_78 = arith.constant 1.000000e+00 : f32
    %248 = vector.broadcast %cst_78 : f32 to vector<2x32xf32>
    %249 = arith.addf %248, %247 : vector<2x32xf32>
    %cst_79 = arith.constant 1.000000e+00 : f32
    %250 = vector.broadcast %cst_79 : f32 to vector<2x32xf32>
    %251 = arith.divf %250, %249 : vector<2x32xf32>
    %252 = arith.mulf %241, %219 : vector<2x32xf32>
    %253 = arith.mulf %233, %243 : vector<2x32xf32>
    %254 = arith.addf %252, %253 : vector<2x32xf32>
    %255 = math.tanh %254 : vector<2x32xf32>
    %256 = arith.mulf %251, %255 : vector<2x32xf32>
    %257 = vector.extract_strided_slice %1 {offsets = [8, 0], sizes = [2, 1], strides = [1, 1]} : vector<16x1xf32> to vector<2x1xf32>
    %258 = vector.broadcast %257 : vector<2x1xf32> to vector<2x32xf32>
    %259 = arith.mulf %258, %256 : vector<2x32xf32>
    %cst_80 = arith.constant 1.000000e+00 : f32
    %260 = vector.broadcast %cst_80 : f32 to vector<2x1xf32>
    %261 = arith.subf %260, %257 : vector<2x1xf32>
    %262 = vector.broadcast %261 : vector<2x1xf32> to vector<2x32xf32>
    %263 = arith.mulf %262, %212 : vector<2x32xf32>
    %264 = arith.addf %259, %263 : vector<2x32xf32>
    %265 = vector.broadcast %257 : vector<2x1xf32> to vector<2x32xf32>
    %266 = arith.mulf %265, %254 : vector<2x32xf32>
    %cst_81 = arith.constant 1.000000e+00 : f32
    %267 = vector.broadcast %cst_81 : f32 to vector<2x1xf32>
    %268 = arith.subf %267, %257 : vector<2x1xf32>
    %269 = vector.broadcast %268 : vector<2x1xf32> to vector<2x32xf32>
    %270 = arith.mulf %269, %219 : vector<2x32xf32>
    %271 = arith.addf %266, %270 : vector<2x32xf32>
    %272 = vector.broadcast %257 : vector<2x1xf32> to vector<2x32xf32>
    %273 = arith.mulf %272, %256 : vector<2x32xf32>
    %c8 = arith.constant 8 : index
    %c0_82 = arith.constant 0 : index
    %274 = vector.load %arg17[%c8, %c0_82] : memref<16x32xf32, #tpu.memory_space<vmem>>, vector<2x32xf32>
    tpu.vector_store %arg17[%c8, %c0_82], %273 {strides = array<i32>} : memref<16x32xf32, #tpu.memory_space<vmem>>, vector<2x32xf32>,
    %275 = vector.extract_strided_slice %6 {offsets = [10, 0], sizes = [2, 128], strides = [1, 1]} : vector<16x128xf32> to vector<2x128xf32>
    %cst_83 = arith.constant dense<0.000000e+00> : vector<2x128xf32>
    %276 = tpu.matmul %264, %12, %cst_83 {dimension_numbers = #tpu.dot_dimension_numbers<[1], [0], [0], [1], [0, 0, 1, 1], [], []>} : vector<2x32xf32>, vector<32x128xf32>, vector<2x128xf32> -> vector<2x128xf32>
    %277 = arith.addf %275, %276 : vector<2x128xf32>
    %278 = vector.extract_strided_slice %277 {offsets = [0, 0], sizes = [2, 32], strides = [1, 1]} : vector<2x128xf32> to vector<2x32xf32>
    %cst_84 = arith.constant 0.000000e+00 : f32
    %279 = vector.broadcast %cst_84 : f32 to vector<2x32xf32>
    %280 = arith.subf %279, %278 : vector<2x32xf32>
    %281 = math.exp %280 : vector<2x32xf32>
    %cst_85 = arith.constant 1.000000e+00 : f32
    %282 = vector.broadcast %cst_85 : f32 to vector<2x32xf32>
    %283 = arith.addf %282, %281 : vector<2x32xf32>
    %cst_86 = arith.constant 1.000000e+00 : f32
    %284 = vector.broadcast %cst_86 : f32 to vector<2x32xf32>
    %285 = arith.divf %284, %283 : vector<2x32xf32>
    %286 = vector.extract_strided_slice %277 {offsets = [0, 32], sizes = [2, 32], strides = [1, 1]} : vector<2x128xf32> to vector<2x32xf32>
    %cst_87 = arith.constant 0.000000e+00 : f32
    %287 = vector.broadcast %cst_87 : f32 to vector<2x32xf32>
    %288 = arith.subf %287, %286 : vector<2x32xf32>
    %289 = math.exp %288 : vector<2x32xf32>
    %cst_88 = arith.constant 1.000000e+00 : f32
    %290 = vector.broadcast %cst_88 : f32 to vector<2x32xf32>
    %291 = arith.addf %290, %289 : vector<2x32xf32>
    %cst_89 = arith.constant 1.000000e+00 : f32
    %292 = vector.broadcast %cst_89 : f32 to vector<2x32xf32>
    %293 = arith.divf %292, %291 : vector<2x32xf32>
    %294 = vector.extract_strided_slice %277 {offsets = [0, 64], sizes = [2, 32], strides = [1, 1]} : vector<2x128xf32> to vector<2x32xf32>
    %295 = math.tanh %294 : vector<2x32xf32>
    %296 = vector.extract_strided_slice %277 {offsets = [0, 96], sizes = [2, 32], strides = [1, 1]} : vector<2x128xf32> to vector<2x32xf32>
    %cst_90 = arith.constant 0.000000e+00 : f32
    %297 = vector.broadcast %cst_90 : f32 to vector<2x32xf32>
    %298 = arith.subf %297, %296 : vector<2x32xf32>
    %299 = math.exp %298 : vector<2x32xf32>
    %cst_91 = arith.constant 1.000000e+00 : f32
    %300 = vector.broadcast %cst_91 : f32 to vector<2x32xf32>
    %301 = arith.addf %300, %299 : vector<2x32xf32>
    %cst_92 = arith.constant 1.000000e+00 : f32
    %302 = vector.broadcast %cst_92 : f32 to vector<2x32xf32>
    %303 = arith.divf %302, %301 : vector<2x32xf32>
    %304 = arith.mulf %293, %271 : vector<2x32xf32>
    %305 = arith.mulf %285, %295 : vector<2x32xf32>
    %306 = arith.addf %304, %305 : vector<2x32xf32>
    %307 = math.tanh %306 : vector<2x32xf32>
    %308 = arith.mulf %303, %307 : vector<2x32xf32>
    %309 = vector.extract_strided_slice %1 {offsets = [10, 0], sizes = [2, 1], strides = [1, 1]} : vector<16x1xf32> to vector<2x1xf32>
    %310 = vector.broadcast %309 : vector<2x1xf32> to vector<2x32xf32>
    %311 = arith.mulf %310, %308 : vector<2x32xf32>
    %cst_93 = arith.constant 1.000000e+00 : f32
    %312 = vector.broadcast %cst_93 : f32 to vector<2x1xf32>
    %313 = arith.subf %312, %309 : vector<2x1xf32>
    %314 = vector.broadcast %313 : vector<2x1xf32> to vector<2x32xf32>
    %315 = arith.mulf %314, %264 : vector<2x32xf32>
    %316 = arith.addf %311, %315 : vector<2x32xf32>
    %317 = vector.broadcast %309 : vector<2x1xf32> to vector<2x32xf32>
    %318 = arith.mulf %317, %306 : vector<2x32xf32>
    %cst_94 = arith.constant 1.000000e+00 : f32
    %319 = vector.broadcast %cst_94 : f32 to vector<2x1xf32>
    %320 = arith.subf %319, %309 : vector<2x1xf32>
    %321 = vector.broadcast %320 : vector<2x1xf32> to vector<2x32xf32>
    %322 = arith.mulf %321, %271 : vector<2x32xf32>
    %323 = arith.addf %318, %322 : vector<2x32xf32>
    %324 = vector.broadcast %309 : vector<2x1xf32> to vector<2x32xf32>
    %325 = arith.mulf %324, %308 : vector<2x32xf32>
    %c10 = arith.constant 10 : index
    %c0_95 = arith.constant 0 : index
    %326 = vector.load %arg17[%c10, %c0_95] : memref<16x32xf32, #tpu.memory_space<vmem>>, vector<2x32xf32>
    tpu.vector_store %arg17[%c10, %c0_95], %325 {strides = array<i32>} : memref<16x32xf32, #tpu.memory_space<vmem>>, vector<2x32xf32>,
    %327 = vector.extract_strided_slice %6 {offsets = [12, 0], sizes = [2, 128], strides = [1, 1]} : vector<16x128xf32> to vector<2x128xf32>
    %cst_96 = arith.constant dense<0.000000e+00> : vector<2x128xf32>
    %328 = tpu.matmul %316, %12, %cst_96 {dimension_numbers = #tpu.dot_dimension_numbers<[1], [0], [0], [1], [0, 0, 1, 1], [], []>} : vector<2x32xf32>, vector<32x128xf32>, vector<2x128xf32> -> vector<2x128xf32>
    %329 = arith.addf %327, %328 : vector<2x128xf32>
    %330 = vector.extract_strided_slice %329 {offsets = [0, 0], sizes = [2, 32], strides = [1, 1]} : vector<2x128xf32> to vector<2x32xf32>
    %cst_97 = arith.constant 0.000000e+00 : f32
    %331 = vector.broadcast %cst_97 : f32 to vector<2x32xf32>
    %332 = arith.subf %331, %330 : vector<2x32xf32>
    %333 = math.exp %332 : vector<2x32xf32>
    %cst_98 = arith.constant 1.000000e+00 : f32
    %334 = vector.broadcast %cst_98 : f32 to vector<2x32xf32>
    %335 = arith.addf %334, %333 : vector<2x32xf32>
    %cst_99 = arith.constant 1.000000e+00 : f32
    %336 = vector.broadcast %cst_99 : f32 to vector<2x32xf32>
    %337 = arith.divf %336, %335 : vector<2x32xf32>
    %338 = vector.extract_strided_slice %329 {offsets = [0, 32], sizes = [2, 32], strides = [1, 1]} : vector<2x128xf32> to vector<2x32xf32>
    %cst_100 = arith.constant 0.000000e+00 : f32
    %339 = vector.broadcast %cst_100 : f32 to vector<2x32xf32>
    %340 = arith.subf %339, %338 : vector<2x32xf32>
    %341 = math.exp %340 : vector<2x32xf32>
    %cst_101 = arith.constant 1.000000e+00 : f32
    %342 = vector.broadcast %cst_101 : f32 to vector<2x32xf32>
    %343 = arith.addf %342, %341 : vector<2x32xf32>
    %cst_102 = arith.constant 1.000000e+00 : f32
    %344 = vector.broadcast %cst_102 : f32 to vector<2x32xf32>
    %345 = arith.divf %344, %343 : vector<2x32xf32>
    %346 = vector.extract_strided_slice %329 {offsets = [0, 64], sizes = [2, 32], strides = [1, 1]} : vector<2x128xf32> to vector<2x32xf32>
    %347 = math.tanh %346 : vector<2x32xf32>
    %348 = vector.extract_strided_slice %329 {offsets = [0, 96], sizes = [2, 32], strides = [1, 1]} : vector<2x128xf32> to vector<2x32xf32>
    %cst_103 = arith.constant 0.000000e+00 : f32
    %349 = vector.broadcast %cst_103 : f32 to vector<2x32xf32>
    %350 = arith.subf %349, %348 : vector<2x32xf32>
    %351 = math.exp %350 : vector<2x32xf32>
    %cst_104 = arith.constant 1.000000e+00 : f32
    %352 = vector.broadcast %cst_104 : f32 to vector<2x32xf32>
    %353 = arith.addf %352, %351 : vector<2x32xf32>
    %cst_105 = arith.constant 1.000000e+00 : f32
    %354 = vector.broadcast %cst_105 : f32 to vector<2x32xf32>
    %355 = arith.divf %354, %353 : vector<2x32xf32>
    %356 = arith.mulf %345, %323 : vector<2x32xf32>
    %357 = arith.mulf %337, %347 : vector<2x32xf32>
    %358 = arith.addf %356, %357 : vector<2x32xf32>
    %359 = math.tanh %358 : vector<2x32xf32>
    %360 = arith.mulf %355, %359 : vector<2x32xf32>
    %361 = vector.extract_strided_slice %1 {offsets = [12, 0], sizes = [2, 1], strides = [1, 1]} : vector<16x1xf32> to vector<2x1xf32>
    %362 = vector.broadcast %361 : vector<2x1xf32> to vector<2x32xf32>
    %363 = arith.mulf %362, %360 : vector<2x32xf32>
    %cst_106 = arith.constant 1.000000e+00 : f32
    %364 = vector.broadcast %cst_106 : f32 to vector<2x1xf32>
    %365 = arith.subf %364, %361 : vector<2x1xf32>
    %366 = vector.broadcast %365 : vector<2x1xf32> to vector<2x32xf32>
    %367 = arith.mulf %366, %316 : vector<2x32xf32>
    %368 = arith.addf %363, %367 : vector<2x32xf32>
    %369 = vector.broadcast %361 : vector<2x1xf32> to vector<2x32xf32>
    %370 = arith.mulf %369, %358 : vector<2x32xf32>
    %cst_107 = arith.constant 1.000000e+00 : f32
    %371 = vector.broadcast %cst_107 : f32 to vector<2x1xf32>
    %372 = arith.subf %371, %361 : vector<2x1xf32>
    %373 = vector.broadcast %372 : vector<2x1xf32> to vector<2x32xf32>
    %374 = arith.mulf %373, %323 : vector<2x32xf32>
    %375 = arith.addf %370, %374 : vector<2x32xf32>
    %376 = vector.broadcast %361 : vector<2x1xf32> to vector<2x32xf32>
    %377 = arith.mulf %376, %360 : vector<2x32xf32>
    %c12 = arith.constant 12 : index
    %c0_108 = arith.constant 0 : index
    %378 = vector.load %arg17[%c12, %c0_108] : memref<16x32xf32, #tpu.memory_space<vmem>>, vector<2x32xf32>
    tpu.vector_store %arg17[%c12, %c0_108], %377 {strides = array<i32>} : memref<16x32xf32, #tpu.memory_space<vmem>>, vector<2x32xf32>,
    %379 = vector.extract_strided_slice %6 {offsets = [14, 0], sizes = [2, 128], strides = [1, 1]} : vector<16x128xf32> to vector<2x128xf32>
    %cst_109 = arith.constant dense<0.000000e+00> : vector<2x128xf32>
    %380 = tpu.matmul %368, %12, %cst_109 {dimension_numbers = #tpu.dot_dimension_numbers<[1], [0], [0], [1], [0, 0, 1, 1], [], []>} : vector<2x32xf32>, vector<32x128xf32>, vector<2x128xf32> -> vector<2x128xf32>
    %381 = arith.addf %379, %380 : vector<2x128xf32>
    %382 = vector.extract_strided_slice %381 {offsets = [0, 0], sizes = [2, 32], strides = [1, 1]} : vector<2x128xf32> to vector<2x32xf32>
    %cst_110 = arith.constant 0.000000e+00 : f32
    %383 = vector.broadcast %cst_110 : f32 to vector<2x32xf32>
    %384 = arith.subf %383, %382 : vector<2x32xf32>
    %385 = math.exp %384 : vector<2x32xf32>
    %cst_111 = arith.constant 1.000000e+00 : f32
    %386 = vector.broadcast %cst_111 : f32 to vector<2x32xf32>
    %387 = arith.addf %386, %385 : vector<2x32xf32>
    %cst_112 = arith.constant 1.000000e+00 : f32
    %388 = vector.broadcast %cst_112 : f32 to vector<2x32xf32>
    %389 = arith.divf %388, %387 : vector<2x32xf32>
    %390 = vector.extract_strided_slice %381 {offsets = [0, 32], sizes = [2, 32], strides = [1, 1]} : vector<2x128xf32> to vector<2x32xf32>
    %cst_113 = arith.constant 0.000000e+00 : f32
    %391 = vector.broadcast %cst_113 : f32 to vector<2x32xf32>
    %392 = arith.subf %391, %390 : vector<2x32xf32>
    %393 = math.exp %392 : vector<2x32xf32>
    %cst_114 = arith.constant 1.000000e+00 : f32
    %394 = vector.broadcast %cst_114 : f32 to vector<2x32xf32>
    %395 = arith.addf %394, %393 : vector<2x32xf32>
    %cst_115 = arith.constant 1.000000e+00 : f32
    %396 = vector.broadcast %cst_115 : f32 to vector<2x32xf32>
    %397 = arith.divf %396, %395 : vector<2x32xf32>
    %398 = vector.extract_strided_slice %381 {offsets = [0, 64], sizes = [2, 32], strides = [1, 1]} : vector<2x128xf32> to vector<2x32xf32>
    %399 = math.tanh %398 : vector<2x32xf32>
    %400 = vector.extract_strided_slice %381 {offsets = [0, 96], sizes = [2, 32], strides = [1, 1]} : vector<2x128xf32> to vector<2x32xf32>
    %cst_116 = arith.constant 0.000000e+00 : f32
    %401 = vector.broadcast %cst_116 : f32 to vector<2x32xf32>
    %402 = arith.subf %401, %400 : vector<2x32xf32>
    %403 = math.exp %402 : vector<2x32xf32>
    %cst_117 = arith.constant 1.000000e+00 : f32
    %404 = vector.broadcast %cst_117 : f32 to vector<2x32xf32>
    %405 = arith.addf %404, %403 : vector<2x32xf32>
    %cst_118 = arith.constant 1.000000e+00 : f32
    %406 = vector.broadcast %cst_118 : f32 to vector<2x32xf32>
    %407 = arith.divf %406, %405 : vector<2x32xf32>
    %408 = arith.mulf %397, %375 : vector<2x32xf32>
    %409 = arith.mulf %389, %399 : vector<2x32xf32>
    %410 = arith.addf %408, %409 : vector<2x32xf32>
    %411 = math.tanh %410 : vector<2x32xf32>
    %412 = arith.mulf %407, %411 : vector<2x32xf32>
    %413 = vector.extract_strided_slice %1 {offsets = [14, 0], sizes = [2, 1], strides = [1, 1]} : vector<16x1xf32> to vector<2x1xf32>
    %414 = vector.broadcast %413 : vector<2x1xf32> to vector<2x32xf32>
    %415 = arith.mulf %414, %412 : vector<2x32xf32>
    %cst_119 = arith.constant 1.000000e+00 : f32
    %416 = vector.broadcast %cst_119 : f32 to vector<2x1xf32>
    %417 = arith.subf %416, %413 : vector<2x1xf32>
    %418 = vector.broadcast %417 : vector<2x1xf32> to vector<2x32xf32>
    %419 = arith.mulf %418, %368 : vector<2x32xf32>
    %420 = arith.addf %415, %419 : vector<2x32xf32>
    %421 = vector.broadcast %413 : vector<2x1xf32> to vector<2x32xf32>
    %422 = arith.mulf %421, %410 : vector<2x32xf32>
    %cst_120 = arith.constant 1.000000e+00 : f32
    %423 = vector.broadcast %cst_120 : f32 to vector<2x1xf32>
    %424 = arith.subf %423, %413 : vector<2x1xf32>
    %425 = vector.broadcast %424 : vector<2x1xf32> to vector<2x32xf32>
    %426 = arith.mulf %425, %375 : vector<2x32xf32>
    %427 = arith.addf %422, %426 : vector<2x32xf32>
    %428 = vector.broadcast %413 : vector<2x1xf32> to vector<2x32xf32>
    %429 = arith.mulf %428, %412 : vector<2x32xf32>
    %c14 = arith.constant 14 : index
    %c0_121 = arith.constant 0 : index
    %430 = vector.load %arg17[%c14, %c0_121] : memref<16x32xf32, #tpu.memory_space<vmem>>, vector<2x32xf32>
    tpu.vector_store %arg17[%c14, %c0_121], %429 {strides = array<i32>} : memref<16x32xf32, #tpu.memory_space<vmem>>, vector<2x32xf32>,
    %431 = vector.extract_strided_slice %11 {offsets = [14, 0], sizes = [2, 128], strides = [1, 1]} : vector<16x128xf32> to vector<2x128xf32>
    %cst_122 = arith.constant dense<0.000000e+00> : vector<2x128xf32>
    %432 = tpu.matmul %14, %13, %cst_122 {dimension_numbers = #tpu.dot_dimension_numbers<[1], [0], [0], [1], [0, 0, 1, 1], [], []>} : vector<2x32xf32>, vector<32x128xf32>, vector<2x128xf32> -> vector<2x128xf32>
    %433 = arith.addf %431, %432 : vector<2x128xf32>
    %434 = vector.extract_strided_slice %433 {offsets = [0, 0], sizes = [2, 32], strides = [1, 1]} : vector<2x128xf32> to vector<2x32xf32>
    %cst_123 = arith.constant 0.000000e+00 : f32
    %435 = vector.broadcast %cst_123 : f32 to vector<2x32xf32>
    %436 = arith.subf %435, %434 : vector<2x32xf32>
    %437 = math.exp %436 : vector<2x32xf32>
    %cst_124 = arith.constant 1.000000e+00 : f32
    %438 = vector.broadcast %cst_124 : f32 to vector<2x32xf32>
    %439 = arith.addf %438, %437 : vector<2x32xf32>
    %cst_125 = arith.constant 1.000000e+00 : f32
    %440 = vector.broadcast %cst_125 : f32 to vector<2x32xf32>
    %441 = arith.divf %440, %439 : vector<2x32xf32>
    %442 = vector.extract_strided_slice %433 {offsets = [0, 32], sizes = [2, 32], strides = [1, 1]} : vector<2x128xf32> to vector<2x32xf32>
    %cst_126 = arith.constant 0.000000e+00 : f32
    %443 = vector.broadcast %cst_126 : f32 to vector<2x32xf32>
    %444 = arith.subf %443, %442 : vector<2x32xf32>
    %445 = math.exp %444 : vector<2x32xf32>
    %cst_127 = arith.constant 1.000000e+00 : f32
    %446 = vector.broadcast %cst_127 : f32 to vector<2x32xf32>
    %447 = arith.addf %446, %445 : vector<2x32xf32>
    %cst_128 = arith.constant 1.000000e+00 : f32
    %448 = vector.broadcast %cst_128 : f32 to vector<2x32xf32>
    %449 = arith.divf %448, %447 : vector<2x32xf32>
    %450 = vector.extract_strided_slice %433 {offsets = [0, 64], sizes = [2, 32], strides = [1, 1]} : vector<2x128xf32> to vector<2x32xf32>
    %451 = math.tanh %450 : vector<2x32xf32>
    %452 = vector.extract_strided_slice %433 {offsets = [0, 96], sizes = [2, 32], strides = [1, 1]} : vector<2x128xf32> to vector<2x32xf32>
    %cst_129 = arith.constant 0.000000e+00 : f32
    %453 = vector.broadcast %cst_129 : f32 to vector<2x32xf32>
    %454 = arith.subf %453, %452 : vector<2x32xf32>
    %455 = math.exp %454 : vector<2x32xf32>
    %cst_130 = arith.constant 1.000000e+00 : f32
    %456 = vector.broadcast %cst_130 : f32 to vector<2x32xf32>
    %457 = arith.addf %456, %455 : vector<2x32xf32>
    %cst_131 = arith.constant 1.000000e+00 : f32
    %458 = vector.broadcast %cst_131 : f32 to vector<2x32xf32>
    %459 = arith.divf %458, %457 : vector<2x32xf32>
    %460 = arith.mulf %449, %14 : vector<2x32xf32>
    %461 = arith.mulf %441, %451 : vector<2x32xf32>
    %462 = arith.addf %460, %461 : vector<2x32xf32>
    %463 = math.tanh %462 : vector<2x32xf32>
    %464 = arith.mulf %459, %463 : vector<2x32xf32>
    %465 = vector.extract_strided_slice %1 {offsets = [14, 0], sizes = [2, 1], strides = [1, 1]} : vector<16x1xf32> to vector<2x1xf32>
    %466 = vector.broadcast %465 : vector<2x1xf32> to vector<2x32xf32>
    %467 = arith.mulf %466, %464 : vector<2x32xf32>
    %cst_132 = arith.constant 1.000000e+00 : f32
    %468 = vector.broadcast %cst_132 : f32 to vector<2x1xf32>
    %469 = arith.subf %468, %465 : vector<2x1xf32>
    %470 = vector.broadcast %469 : vector<2x1xf32> to vector<2x32xf32>
    %471 = arith.mulf %470, %14 : vector<2x32xf32>
    %472 = arith.addf %467, %471 : vector<2x32xf32>
    %473 = vector.broadcast %465 : vector<2x1xf32> to vector<2x32xf32>
    %474 = arith.mulf %473, %462 : vector<2x32xf32>
    %cst_133 = arith.constant 1.000000e+00 : f32
    %475 = vector.broadcast %cst_133 : f32 to vector<2x1xf32>
    %476 = arith.subf %475, %465 : vector<2x1xf32>
    %477 = vector.broadcast %476 : vector<2x1xf32> to vector<2x32xf32>
    %478 = arith.mulf %477, %14 : vector<2x32xf32>
    %479 = arith.addf %474, %478 : vector<2x32xf32>
    %480 = vector.broadcast %465 : vector<2x1xf32> to vector<2x32xf32>
    %481 = arith.mulf %480, %464 : vector<2x32xf32>
    %c14_134 = arith.constant 14 : index
    %c0_135 = arith.constant 0 : index
    %482 = vector.load %arg18[%c14_134, %c0_135] : memref<16x32xf32, #tpu.memory_space<vmem>>, vector<2x32xf32>
    tpu.vector_store %arg18[%c14_134, %c0_135], %481 {strides = array<i32>} : memref<16x32xf32, #tpu.memory_space<vmem>>, vector<2x32xf32>,
    %483 = vector.extract_strided_slice %11 {offsets = [12, 0], sizes = [2, 128], strides = [1, 1]} : vector<16x128xf32> to vector<2x128xf32>
    %cst_136 = arith.constant dense<0.000000e+00> : vector<2x128xf32>
    %484 = tpu.matmul %472, %13, %cst_136 {dimension_numbers = #tpu.dot_dimension_numbers<[1], [0], [0], [1], [0, 0, 1, 1], [], []>} : vector<2x32xf32>, vector<32x128xf32>, vector<2x128xf32> -> vector<2x128xf32>
    %485 = arith.addf %483, %484 : vector<2x128xf32>
    %486 = vector.extract_strided_slice %485 {offsets = [0, 0], sizes = [2, 32], strides = [1, 1]} : vector<2x128xf32> to vector<2x32xf32>
    %cst_137 = arith.constant 0.000000e+00 : f32
    %487 = vector.broadcast %cst_137 : f32 to vector<2x32xf32>
    %488 = arith.subf %487, %486 : vector<2x32xf32>
    %489 = math.exp %488 : vector<2x32xf32>
    %cst_138 = arith.constant 1.000000e+00 : f32
    %490 = vector.broadcast %cst_138 : f32 to vector<2x32xf32>
    %491 = arith.addf %490, %489 : vector<2x32xf32>
    %cst_139 = arith.constant 1.000000e+00 : f32
    %492 = vector.broadcast %cst_139 : f32 to vector<2x32xf32>
    %493 = arith.divf %492, %491 : vector<2x32xf32>
    %494 = vector.extract_strided_slice %485 {offsets = [0, 32], sizes = [2, 32], strides = [1, 1]} : vector<2x128xf32> to vector<2x32xf32>
    %cst_140 = arith.constant 0.000000e+00 : f32
    %495 = vector.broadcast %cst_140 : f32 to vector<2x32xf32>
    %496 = arith.subf %495, %494 : vector<2x32xf32>
    %497 = math.exp %496 : vector<2x32xf32>
    %cst_141 = arith.constant 1.000000e+00 : f32
    %498 = vector.broadcast %cst_141 : f32 to vector<2x32xf32>
    %499 = arith.addf %498, %497 : vector<2x32xf32>
    %cst_142 = arith.constant 1.000000e+00 : f32
    %500 = vector.broadcast %cst_142 : f32 to vector<2x32xf32>
    %501 = arith.divf %500, %499 : vector<2x32xf32>
    %502 = vector.extract_strided_slice %485 {offsets = [0, 64], sizes = [2, 32], strides = [1, 1]} : vector<2x128xf32> to vector<2x32xf32>
    %503 = math.tanh %502 : vector<2x32xf32>
    %504 = vector.extract_strided_slice %485 {offsets = [0, 96], sizes = [2, 32], strides = [1, 1]} : vector<2x128xf32> to vector<2x32xf32>
    %cst_143 = arith.constant 0.000000e+00 : f32
    %505 = vector.broadcast %cst_143 : f32 to vector<2x32xf32>
    %506 = arith.subf %505, %504 : vector<2x32xf32>
    %507 = math.exp %506 : vector<2x32xf32>
    %cst_144 = arith.constant 1.000000e+00 : f32
    %508 = vector.broadcast %cst_144 : f32 to vector<2x32xf32>
    %509 = arith.addf %508, %507 : vector<2x32xf32>
    %cst_145 = arith.constant 1.000000e+00 : f32
    %510 = vector.broadcast %cst_145 : f32 to vector<2x32xf32>
    %511 = arith.divf %510, %509 : vector<2x32xf32>
    %512 = arith.mulf %501, %479 : vector<2x32xf32>
    %513 = arith.mulf %493, %503 : vector<2x32xf32>
    %514 = arith.addf %512, %513 : vector<2x32xf32>
    %515 = math.tanh %514 : vector<2x32xf32>
    %516 = arith.mulf %511, %515 : vector<2x32xf32>
    %517 = vector.extract_strided_slice %1 {offsets = [12, 0], sizes = [2, 1], strides = [1, 1]} : vector<16x1xf32> to vector<2x1xf32>
    %518 = vector.broadcast %517 : vector<2x1xf32> to vector<2x32xf32>
    %519 = arith.mulf %518, %516 : vector<2x32xf32>
    %cst_146 = arith.constant 1.000000e+00 : f32
    %520 = vector.broadcast %cst_146 : f32 to vector<2x1xf32>
    %521 = arith.subf %520, %517 : vector<2x1xf32>
    %522 = vector.broadcast %521 : vector<2x1xf32> to vector<2x32xf32>
    %523 = arith.mulf %522, %472 : vector<2x32xf32>
    %524 = arith.addf %519, %523 : vector<2x32xf32>
    %525 = vector.broadcast %517 : vector<2x1xf32> to vector<2x32xf32>
    %526 = arith.mulf %525, %514 : vector<2x32xf32>
    %cst_147 = arith.constant 1.000000e+00 : f32
    %527 = vector.broadcast %cst_147 : f32 to vector<2x1xf32>
    %528 = arith.subf %527, %517 : vector<2x1xf32>
    %529 = vector.broadcast %528 : vector<2x1xf32> to vector<2x32xf32>
    %530 = arith.mulf %529, %479 : vector<2x32xf32>
    %531 = arith.addf %526, %530 : vector<2x32xf32>
    %532 = vector.broadcast %517 : vector<2x1xf32> to vector<2x32xf32>
    %533 = arith.mulf %532, %516 : vector<2x32xf32>
    %c12_148 = arith.constant 12 : index
    %c0_149 = arith.constant 0 : index
    %534 = vector.load %arg18[%c12_148, %c0_149] : memref<16x32xf32, #tpu.memory_space<vmem>>, vector<2x32xf32>
    tpu.vector_store %arg18[%c12_148, %c0_149], %533 {strides = array<i32>} : memref<16x32xf32, #tpu.memory_space<vmem>>, vector<2x32xf32>,
    %535 = vector.extract_strided_slice %11 {offsets = [10, 0], sizes = [2, 128], strides = [1, 1]} : vector<16x128xf32> to vector<2x128xf32>
    %cst_150 = arith.constant dense<0.000000e+00> : vector<2x128xf32>
    %536 = tpu.matmul %524, %13, %cst_150 {dimension_numbers = #tpu.dot_dimension_numbers<[1], [0], [0], [1], [0, 0, 1, 1], [], []>} : vector<2x32xf32>, vector<32x128xf32>, vector<2x128xf32> -> vector<2x128xf32>
    %537 = arith.addf %535, %536 : vector<2x128xf32>
    %538 = vector.extract_strided_slice %537 {offsets = [0, 0], sizes = [2, 32], strides = [1, 1]} : vector<2x128xf32> to vector<2x32xf32>
    %cst_151 = arith.constant 0.000000e+00 : f32
    %539 = vector.broadcast %cst_151 : f32 to vector<2x32xf32>
    %540 = arith.subf %539, %538 : vector<2x32xf32>
    %541 = math.exp %540 : vector<2x32xf32>
    %cst_152 = arith.constant 1.000000e+00 : f32
    %542 = vector.broadcast %cst_152 : f32 to vector<2x32xf32>
    %543 = arith.addf %542, %541 : vector<2x32xf32>
    %cst_153 = arith.constant 1.000000e+00 : f32
    %544 = vector.broadcast %cst_153 : f32 to vector<2x32xf32>
    %545 = arith.divf %544, %543 : vector<2x32xf32>
    %546 = vector.extract_strided_slice %537 {offsets = [0, 32], sizes = [2, 32], strides = [1, 1]} : vector<2x128xf32> to vector<2x32xf32>
    %cst_154 = arith.constant 0.000000e+00 : f32
    %547 = vector.broadcast %cst_154 : f32 to vector<2x32xf32>
    %548 = arith.subf %547, %546 : vector<2x32xf32>
    %549 = math.exp %548 : vector<2x32xf32>
    %cst_155 = arith.constant 1.000000e+00 : f32
    %550 = vector.broadcast %cst_155 : f32 to vector<2x32xf32>
    %551 = arith.addf %550, %549 : vector<2x32xf32>
    %cst_156 = arith.constant 1.000000e+00 : f32
    %552 = vector.broadcast %cst_156 : f32 to vector<2x32xf32>
    %553 = arith.divf %552, %551 : vector<2x32xf32>
    %554 = vector.extract_strided_slice %537 {offsets = [0, 64], sizes = [2, 32], strides = [1, 1]} : vector<2x128xf32> to vector<2x32xf32>
    %555 = math.tanh %554 : vector<2x32xf32>
    %556 = vector.extract_strided_slice %537 {offsets = [0, 96], sizes = [2, 32], strides = [1, 1]} : vector<2x128xf32> to vector<2x32xf32>
    %cst_157 = arith.constant 0.000000e+00 : f32
    %557 = vector.broadcast %cst_157 : f32 to vector<2x32xf32>
    %558 = arith.subf %557, %556 : vector<2x32xf32>
    %559 = math.exp %558 : vector<2x32xf32>
    %cst_158 = arith.constant 1.000000e+00 : f32
    %560 = vector.broadcast %cst_158 : f32 to vector<2x32xf32>
    %561 = arith.addf %560, %559 : vector<2x32xf32>
    %cst_159 = arith.constant 1.000000e+00 : f32
    %562 = vector.broadcast %cst_159 : f32 to vector<2x32xf32>
    %563 = arith.divf %562, %561 : vector<2x32xf32>
    %564 = arith.mulf %553, %531 : vector<2x32xf32>
    %565 = arith.mulf %545, %555 : vector<2x32xf32>
    %566 = arith.addf %564, %565 : vector<2x32xf32>
    %567 = math.tanh %566 : vector<2x32xf32>
    %568 = arith.mulf %563, %567 : vector<2x32xf32>
    %569 = vector.extract_strided_slice %1 {offsets = [10, 0], sizes = [2, 1], strides = [1, 1]} : vector<16x1xf32> to vector<2x1xf32>
    %570 = vector.broadcast %569 : vector<2x1xf32> to vector<2x32xf32>
    %571 = arith.mulf %570, %568 : vector<2x32xf32>
    %cst_160 = arith.constant 1.000000e+00 : f32
    %572 = vector.broadcast %cst_160 : f32 to vector<2x1xf32>
    %573 = arith.subf %572, %569 : vector<2x1xf32>
    %574 = vector.broadcast %573 : vector<2x1xf32> to vector<2x32xf32>
    %575 = arith.mulf %574, %524 : vector<2x32xf32>
    %576 = arith.addf %571, %575 : vector<2x32xf32>
    %577 = vector.broadcast %569 : vector<2x1xf32> to vector<2x32xf32>
    %578 = arith.mulf %577, %566 : vector<2x32xf32>
    %cst_161 = arith.constant 1.000000e+00 : f32
    %579 = vector.broadcast %cst_161 : f32 to vector<2x1xf32>
    %580 = arith.subf %579, %569 : vector<2x1xf32>
    %581 = vector.broadcast %580 : vector<2x1xf32> to vector<2x32xf32>
    %582 = arith.mulf %581, %531 : vector<2x32xf32>
    %583 = arith.addf %578, %582 : vector<2x32xf32>
    %584 = vector.broadcast %569 : vector<2x1xf32> to vector<2x32xf32>
    %585 = arith.mulf %584, %568 : vector<2x32xf32>
    %c10_162 = arith.constant 10 : index
    %c0_163 = arith.constant 0 : index
    %586 = vector.load %arg18[%c10_162, %c0_163] : memref<16x32xf32, #tpu.memory_space<vmem>>, vector<2x32xf32>
    tpu.vector_store %arg18[%c10_162, %c0_163], %585 {strides = array<i32>} : memref<16x32xf32, #tpu.memory_space<vmem>>, vector<2x32xf32>,
    %587 = vector.extract_strided_slice %11 {offsets = [8, 0], sizes = [2, 128], strides = [1, 1]} : vector<16x128xf32> to vector<2x128xf32>
    %cst_164 = arith.constant dense<0.000000e+00> : vector<2x128xf32>
    %588 = tpu.matmul %576, %13, %cst_164 {dimension_numbers = #tpu.dot_dimension_numbers<[1], [0], [0], [1], [0, 0, 1, 1], [], []>} : vector<2x32xf32>, vector<32x128xf32>, vector<2x128xf32> -> vector<2x128xf32>
    %589 = arith.addf %587, %588 : vector<2x128xf32>
    %590 = vector.extract_strided_slice %589 {offsets = [0, 0], sizes = [2, 32], strides = [1, 1]} : vector<2x128xf32> to vector<2x32xf32>
    %cst_165 = arith.constant 0.000000e+00 : f32
    %591 = vector.broadcast %cst_165 : f32 to vector<2x32xf32>
    %592 = arith.subf %591, %590 : vector<2x32xf32>
    %593 = math.exp %592 : vector<2x32xf32>
    %cst_166 = arith.constant 1.000000e+00 : f32
    %594 = vector.broadcast %cst_166 : f32 to vector<2x32xf32>
    %595 = arith.addf %594, %593 : vector<2x32xf32>
    %cst_167 = arith.constant 1.000000e+00 : f32
    %596 = vector.broadcast %cst_167 : f32 to vector<2x32xf32>
    %597 = arith.divf %596, %595 : vector<2x32xf32>
    %598 = vector.extract_strided_slice %589 {offsets = [0, 32], sizes = [2, 32], strides = [1, 1]} : vector<2x128xf32> to vector<2x32xf32>
    %cst_168 = arith.constant 0.000000e+00 : f32
    %599 = vector.broadcast %cst_168 : f32 to vector<2x32xf32>
    %600 = arith.subf %599, %598 : vector<2x32xf32>
    %601 = math.exp %600 : vector<2x32xf32>
    %cst_169 = arith.constant 1.000000e+00 : f32
    %602 = vector.broadcast %cst_169 : f32 to vector<2x32xf32>
    %603 = arith.addf %602, %601 : vector<2x32xf32>
    %cst_170 = arith.constant 1.000000e+00 : f32
    %604 = vector.broadcast %cst_170 : f32 to vector<2x32xf32>
    %605 = arith.divf %604, %603 : vector<2x32xf32>
    %606 = vector.extract_strided_slice %589 {offsets = [0, 64], sizes = [2, 32], strides = [1, 1]} : vector<2x128xf32> to vector<2x32xf32>
    %607 = math.tanh %606 : vector<2x32xf32>
    %608 = vector.extract_strided_slice %589 {offsets = [0, 96], sizes = [2, 32], strides = [1, 1]} : vector<2x128xf32> to vector<2x32xf32>
    %cst_171 = arith.constant 0.000000e+00 : f32
    %609 = vector.broadcast %cst_171 : f32 to vector<2x32xf32>
    %610 = arith.subf %609, %608 : vector<2x32xf32>
    %611 = math.exp %610 : vector<2x32xf32>
    %cst_172 = arith.constant 1.000000e+00 : f32
    %612 = vector.broadcast %cst_172 : f32 to vector<2x32xf32>
    %613 = arith.addf %612, %611 : vector<2x32xf32>
    %cst_173 = arith.constant 1.000000e+00 : f32
    %614 = vector.broadcast %cst_173 : f32 to vector<2x32xf32>
    %615 = arith.divf %614, %613 : vector<2x32xf32>
    %616 = arith.mulf %605, %583 : vector<2x32xf32>
    %617 = arith.mulf %597, %607 : vector<2x32xf32>
    %618 = arith.addf %616, %617 : vector<2x32xf32>
    %619 = math.tanh %618 : vector<2x32xf32>
    %620 = arith.mulf %615, %619 : vector<2x32xf32>
    %621 = vector.extract_strided_slice %1 {offsets = [8, 0], sizes = [2, 1], strides = [1, 1]} : vector<16x1xf32> to vector<2x1xf32>
    %622 = vector.broadcast %621 : vector<2x1xf32> to vector<2x32xf32>
    %623 = arith.mulf %622, %620 : vector<2x32xf32>
    %cst_174 = arith.constant 1.000000e+00 : f32
    %624 = vector.broadcast %cst_174 : f32 to vector<2x1xf32>
    %625 = arith.subf %624, %621 : vector<2x1xf32>
    %626 = vector.broadcast %625 : vector<2x1xf32> to vector<2x32xf32>
    %627 = arith.mulf %626, %576 : vector<2x32xf32>
    %628 = arith.addf %623, %627 : vector<2x32xf32>
    %629 = vector.broadcast %621 : vector<2x1xf32> to vector<2x32xf32>
    %630 = arith.mulf %629, %618 : vector<2x32xf32>
    %cst_175 = arith.constant 1.000000e+00 : f32
    %631 = vector.broadcast %cst_175 : f32 to vector<2x1xf32>
    %632 = arith.subf %631, %621 : vector<2x1xf32>
    %633 = vector.broadcast %632 : vector<2x1xf32> to vector<2x32xf32>
    %634 = arith.mulf %633, %583 : vector<2x32xf32>
    %635 = arith.addf %630, %634 : vector<2x32xf32>
    %636 = vector.broadcast %621 : vector<2x1xf32> to vector<2x32xf32>
    %637 = arith.mulf %636, %620 : vector<2x32xf32>
    %c8_176 = arith.constant 8 : index
    %c0_177 = arith.constant 0 : index
    %638 = vector.load %arg18[%c8_176, %c0_177] : memref<16x32xf32, #tpu.memory_space<vmem>>, vector<2x32xf32>
    tpu.vector_store %arg18[%c8_176, %c0_177], %637 {strides = array<i32>} : memref<16x32xf32, #tpu.memory_space<vmem>>, vector<2x32xf32>,
    %639 = vector.extract_strided_slice %11 {offsets = [6, 0], sizes = [2, 128], strides = [1, 1]} : vector<16x128xf32> to vector<2x128xf32>
    %cst_178 = arith.constant dense<0.000000e+00> : vector<2x128xf32>
    %640 = tpu.matmul %628, %13, %cst_178 {dimension_numbers = #tpu.dot_dimension_numbers<[1], [0], [0], [1], [0, 0, 1, 1], [], []>} : vector<2x32xf32>, vector<32x128xf32>, vector<2x128xf32> -> vector<2x128xf32>
    %641 = arith.addf %639, %640 : vector<2x128xf32>
    %642 = vector.extract_strided_slice %641 {offsets = [0, 0], sizes = [2, 32], strides = [1, 1]} : vector<2x128xf32> to vector<2x32xf32>
    %cst_179 = arith.constant 0.000000e+00 : f32
    %643 = vector.broadcast %cst_179 : f32 to vector<2x32xf32>
    %644 = arith.subf %643, %642 : vector<2x32xf32>
    %645 = math.exp %644 : vector<2x32xf32>
    %cst_180 = arith.constant 1.000000e+00 : f32
    %646 = vector.broadcast %cst_180 : f32 to vector<2x32xf32>
    %647 = arith.addf %646, %645 : vector<2x32xf32>
    %cst_181 = arith.constant 1.000000e+00 : f32
    %648 = vector.broadcast %cst_181 : f32 to vector<2x32xf32>
    %649 = arith.divf %648, %647 : vector<2x32xf32>
    %650 = vector.extract_strided_slice %641 {offsets = [0, 32], sizes = [2, 32], strides = [1, 1]} : vector<2x128xf32> to vector<2x32xf32>
    %cst_182 = arith.constant 0.000000e+00 : f32
    %651 = vector.broadcast %cst_182 : f32 to vector<2x32xf32>
    %652 = arith.subf %651, %650 : vector<2x32xf32>
    %653 = math.exp %652 : vector<2x32xf32>
    %cst_183 = arith.constant 1.000000e+00 : f32
    %654 = vector.broadcast %cst_183 : f32 to vector<2x32xf32>
    %655 = arith.addf %654, %653 : vector<2x32xf32>
    %cst_184 = arith.constant 1.000000e+00 : f32
    %656 = vector.broadcast %cst_184 : f32 to vector<2x32xf32>
    %657 = arith.divf %656, %655 : vector<2x32xf32>
    %658 = vector.extract_strided_slice %641 {offsets = [0, 64], sizes = [2, 32], strides = [1, 1]} : vector<2x128xf32> to vector<2x32xf32>
    %659 = math.tanh %658 : vector<2x32xf32>
    %660 = vector.extract_strided_slice %641 {offsets = [0, 96], sizes = [2, 32], strides = [1, 1]} : vector<2x128xf32> to vector<2x32xf32>
    %cst_185 = arith.constant 0.000000e+00 : f32
    %661 = vector.broadcast %cst_185 : f32 to vector<2x32xf32>
    %662 = arith.subf %661, %660 : vector<2x32xf32>
    %663 = math.exp %662 : vector<2x32xf32>
    %cst_186 = arith.constant 1.000000e+00 : f32
    %664 = vector.broadcast %cst_186 : f32 to vector<2x32xf32>
    %665 = arith.addf %664, %663 : vector<2x32xf32>
    %cst_187 = arith.constant 1.000000e+00 : f32
    %666 = vector.broadcast %cst_187 : f32 to vector<2x32xf32>
    %667 = arith.divf %666, %665 : vector<2x32xf32>
    %668 = arith.mulf %657, %635 : vector<2x32xf32>
    %669 = arith.mulf %649, %659 : vector<2x32xf32>
    %670 = arith.addf %668, %669 : vector<2x32xf32>
    %671 = math.tanh %670 : vector<2x32xf32>
    %672 = arith.mulf %667, %671 : vector<2x32xf32>
    %673 = vector.extract_strided_slice %1 {offsets = [6, 0], sizes = [2, 1], strides = [1, 1]} : vector<16x1xf32> to vector<2x1xf32>
    %674 = vector.broadcast %673 : vector<2x1xf32> to vector<2x32xf32>
    %675 = arith.mulf %674, %672 : vector<2x32xf32>
    %cst_188 = arith.constant 1.000000e+00 : f32
    %676 = vector.broadcast %cst_188 : f32 to vector<2x1xf32>
    %677 = arith.subf %676, %673 : vector<2x1xf32>
    %678 = vector.broadcast %677 : vector<2x1xf32> to vector<2x32xf32>
    %679 = arith.mulf %678, %628 : vector<2x32xf32>
    %680 = arith.addf %675, %679 : vector<2x32xf32>
    %681 = vector.broadcast %673 : vector<2x1xf32> to vector<2x32xf32>
    %682 = arith.mulf %681, %670 : vector<2x32xf32>
    %cst_189 = arith.constant 1.000000e+00 : f32
    %683 = vector.broadcast %cst_189 : f32 to vector<2x1xf32>
    %684 = arith.subf %683, %673 : vector<2x1xf32>
    %685 = vector.broadcast %684 : vector<2x1xf32> to vector<2x32xf32>
    %686 = arith.mulf %685, %635 : vector<2x32xf32>
    %687 = arith.addf %682, %686 : vector<2x32xf32>
    %688 = vector.broadcast %673 : vector<2x1xf32> to vector<2x32xf32>
    %689 = arith.mulf %688, %672 : vector<2x32xf32>
    %c6_190 = arith.constant 6 : index
    %c0_191 = arith.constant 0 : index
    %690 = vector.load %arg18[%c6_190, %c0_191] : memref<16x32xf32, #tpu.memory_space<vmem>>, vector<2x32xf32>
    tpu.vector_store %arg18[%c6_190, %c0_191], %689 {strides = array<i32>} : memref<16x32xf32, #tpu.memory_space<vmem>>, vector<2x32xf32>,
    %691 = vector.extract_strided_slice %11 {offsets = [4, 0], sizes = [2, 128], strides = [1, 1]} : vector<16x128xf32> to vector<2x128xf32>
    %cst_192 = arith.constant dense<0.000000e+00> : vector<2x128xf32>
    %692 = tpu.matmul %680, %13, %cst_192 {dimension_numbers = #tpu.dot_dimension_numbers<[1], [0], [0], [1], [0, 0, 1, 1], [], []>} : vector<2x32xf32>, vector<32x128xf32>, vector<2x128xf32> -> vector<2x128xf32>
    %693 = arith.addf %691, %692 : vector<2x128xf32>
    %694 = vector.extract_strided_slice %693 {offsets = [0, 0], sizes = [2, 32], strides = [1, 1]} : vector<2x128xf32> to vector<2x32xf32>
    %cst_193 = arith.constant 0.000000e+00 : f32
    %695 = vector.broadcast %cst_193 : f32 to vector<2x32xf32>
    %696 = arith.subf %695, %694 : vector<2x32xf32>
    %697 = math.exp %696 : vector<2x32xf32>
    %cst_194 = arith.constant 1.000000e+00 : f32
    %698 = vector.broadcast %cst_194 : f32 to vector<2x32xf32>
    %699 = arith.addf %698, %697 : vector<2x32xf32>
    %cst_195 = arith.constant 1.000000e+00 : f32
    %700 = vector.broadcast %cst_195 : f32 to vector<2x32xf32>
    %701 = arith.divf %700, %699 : vector<2x32xf32>
    %702 = vector.extract_strided_slice %693 {offsets = [0, 32], sizes = [2, 32], strides = [1, 1]} : vector<2x128xf32> to vector<2x32xf32>
    %cst_196 = arith.constant 0.000000e+00 : f32
    %703 = vector.broadcast %cst_196 : f32 to vector<2x32xf32>
    %704 = arith.subf %703, %702 : vector<2x32xf32>
    %705 = math.exp %704 : vector<2x32xf32>
    %cst_197 = arith.constant 1.000000e+00 : f32
    %706 = vector.broadcast %cst_197 : f32 to vector<2x32xf32>
    %707 = arith.addf %706, %705 : vector<2x32xf32>
    %cst_198 = arith.constant 1.000000e+00 : f32
    %708 = vector.broadcast %cst_198 : f32 to vector<2x32xf32>
    %709 = arith.divf %708, %707 : vector<2x32xf32>
    %710 = vector.extract_strided_slice %693 {offsets = [0, 64], sizes = [2, 32], strides = [1, 1]} : vector<2x128xf32> to vector<2x32xf32>
    %711 = math.tanh %710 : vector<2x32xf32>
    %712 = vector.extract_strided_slice %693 {offsets = [0, 96], sizes = [2, 32], strides = [1, 1]} : vector<2x128xf32> to vector<2x32xf32>
    %cst_199 = arith.constant 0.000000e+00 : f32
    %713 = vector.broadcast %cst_199 : f32 to vector<2x32xf32>
    %714 = arith.subf %713, %712 : vector<2x32xf32>
    %715 = math.exp %714 : vector<2x32xf32>
    %cst_200 = arith.constant 1.000000e+00 : f32
    %716 = vector.broadcast %cst_200 : f32 to vector<2x32xf32>
    %717 = arith.addf %716, %715 : vector<2x32xf32>
    %cst_201 = arith.constant 1.000000e+00 : f32
    %718 = vector.broadcast %cst_201 : f32 to vector<2x32xf32>
    %719 = arith.divf %718, %717 : vector<2x32xf32>
    %720 = arith.mulf %709, %687 : vector<2x32xf32>
    %721 = arith.mulf %701, %711 : vector<2x32xf32>
    %722 = arith.addf %720, %721 : vector<2x32xf32>
    %723 = math.tanh %722 : vector<2x32xf32>
    %724 = arith.mulf %719, %723 : vector<2x32xf32>
    %725 = vector.extract_strided_slice %1 {offsets = [4, 0], sizes = [2, 1], strides = [1, 1]} : vector<16x1xf32> to vector<2x1xf32>
    %726 = vector.broadcast %725 : vector<2x1xf32> to vector<2x32xf32>
    %727 = arith.mulf %726, %724 : vector<2x32xf32>
    %cst_202 = arith.constant 1.000000e+00 : f32
    %728 = vector.broadcast %cst_202 : f32 to vector<2x1xf32>
    %729 = arith.subf %728, %725 : vector<2x1xf32>
    %730 = vector.broadcast %729 : vector<2x1xf32> to vector<2x32xf32>
    %731 = arith.mulf %730, %680 : vector<2x32xf32>
    %732 = arith.addf %727, %731 : vector<2x32xf32>
    %733 = vector.broadcast %725 : vector<2x1xf32> to vector<2x32xf32>
    %734 = arith.mulf %733, %722 : vector<2x32xf32>
    %cst_203 = arith.constant 1.000000e+00 : f32
    %735 = vector.broadcast %cst_203 : f32 to vector<2x1xf32>
    %736 = arith.subf %735, %725 : vector<2x1xf32>
    %737 = vector.broadcast %736 : vector<2x1xf32> to vector<2x32xf32>
    %738 = arith.mulf %737, %687 : vector<2x32xf32>
    %739 = arith.addf %734, %738 : vector<2x32xf32>
    %740 = vector.broadcast %725 : vector<2x1xf32> to vector<2x32xf32>
    %741 = arith.mulf %740, %724 : vector<2x32xf32>
    %c4_204 = arith.constant 4 : index
    %c0_205 = arith.constant 0 : index
    %742 = vector.load %arg18[%c4_204, %c0_205] : memref<16x32xf32, #tpu.memory_space<vmem>>, vector<2x32xf32>
    tpu.vector_store %arg18[%c4_204, %c0_205], %741 {strides = array<i32>} : memref<16x32xf32, #tpu.memory_space<vmem>>, vector<2x32xf32>,
    %743 = vector.extract_strided_slice %11 {offsets = [2, 0], sizes = [2, 128], strides = [1, 1]} : vector<16x128xf32> to vector<2x128xf32>
    %cst_206 = arith.constant dense<0.000000e+00> : vector<2x128xf32>
    %744 = tpu.matmul %732, %13, %cst_206 {dimension_numbers = #tpu.dot_dimension_numbers<[1], [0], [0], [1], [0, 0, 1, 1], [], []>} : vector<2x32xf32>, vector<32x128xf32>, vector<2x128xf32> -> vector<2x128xf32>
    %745 = arith.addf %743, %744 : vector<2x128xf32>
    %746 = vector.extract_strided_slice %745 {offsets = [0, 0], sizes = [2, 32], strides = [1, 1]} : vector<2x128xf32> to vector<2x32xf32>
    %cst_207 = arith.constant 0.000000e+00 : f32
    %747 = vector.broadcast %cst_207 : f32 to vector<2x32xf32>
    %748 = arith.subf %747, %746 : vector<2x32xf32>
    %749 = math.exp %748 : vector<2x32xf32>
    %cst_208 = arith.constant 1.000000e+00 : f32
    %750 = vector.broadcast %cst_208 : f32 to vector<2x32xf32>
    %751 = arith.addf %750, %749 : vector<2x32xf32>
    %cst_209 = arith.constant 1.000000e+00 : f32
    %752 = vector.broadcast %cst_209 : f32 to vector<2x32xf32>
    %753 = arith.divf %752, %751 : vector<2x32xf32>
    %754 = vector.extract_strided_slice %745 {offsets = [0, 32], sizes = [2, 32], strides = [1, 1]} : vector<2x128xf32> to vector<2x32xf32>
    %cst_210 = arith.constant 0.000000e+00 : f32
    %755 = vector.broadcast %cst_210 : f32 to vector<2x32xf32>
    %756 = arith.subf %755, %754 : vector<2x32xf32>
    %757 = math.exp %756 : vector<2x32xf32>
    %cst_211 = arith.constant 1.000000e+00 : f32
    %758 = vector.broadcast %cst_211 : f32 to vector<2x32xf32>
    %759 = arith.addf %758, %757 : vector<2x32xf32>
    %cst_212 = arith.constant 1.000000e+00 : f32
    %760 = vector.broadcast %cst_212 : f32 to vector<2x32xf32>
    %761 = arith.divf %760, %759 : vector<2x32xf32>
    %762 = vector.extract_strided_slice %745 {offsets = [0, 64], sizes = [2, 32], strides = [1, 1]} : vector<2x128xf32> to vector<2x32xf32>
    %763 = math.tanh %762 : vector<2x32xf32>
    %764 = vector.extract_strided_slice %745 {offsets = [0, 96], sizes = [2, 32], strides = [1, 1]} : vector<2x128xf32> to vector<2x32xf32>
    %cst_213 = arith.constant 0.000000e+00 : f32
    %765 = vector.broadcast %cst_213 : f32 to vector<2x32xf32>
    %766 = arith.subf %765, %764 : vector<2x32xf32>
    %767 = math.exp %766 : vector<2x32xf32>
    %cst_214 = arith.constant 1.000000e+00 : f32
    %768 = vector.broadcast %cst_214 : f32 to vector<2x32xf32>
    %769 = arith.addf %768, %767 : vector<2x32xf32>
    %cst_215 = arith.constant 1.000000e+00 : f32
    %770 = vector.broadcast %cst_215 : f32 to vector<2x32xf32>
    %771 = arith.divf %770, %769 : vector<2x32xf32>
    %772 = arith.mulf %761, %739 : vector<2x32xf32>
    %773 = arith.mulf %753, %763 : vector<2x32xf32>
    %774 = arith.addf %772, %773 : vector<2x32xf32>
    %775 = math.tanh %774 : vector<2x32xf32>
    %776 = arith.mulf %771, %775 : vector<2x32xf32>
    %777 = vector.extract_strided_slice %1 {offsets = [2, 0], sizes = [2, 1], strides = [1, 1]} : vector<16x1xf32> to vector<2x1xf32>
    %778 = vector.broadcast %777 : vector<2x1xf32> to vector<2x32xf32>
    %779 = arith.mulf %778, %776 : vector<2x32xf32>
    %cst_216 = arith.constant 1.000000e+00 : f32
    %780 = vector.broadcast %cst_216 : f32 to vector<2x1xf32>
    %781 = arith.subf %780, %777 : vector<2x1xf32>
    %782 = vector.broadcast %781 : vector<2x1xf32> to vector<2x32xf32>
    %783 = arith.mulf %782, %732 : vector<2x32xf32>
    %784 = arith.addf %779, %783 : vector<2x32xf32>
    %785 = vector.broadcast %777 : vector<2x1xf32> to vector<2x32xf32>
    %786 = arith.mulf %785, %774 : vector<2x32xf32>
    %cst_217 = arith.constant 1.000000e+00 : f32
    %787 = vector.broadcast %cst_217 : f32 to vector<2x1xf32>
    %788 = arith.subf %787, %777 : vector<2x1xf32>
    %789 = vector.broadcast %788 : vector<2x1xf32> to vector<2x32xf32>
    %790 = arith.mulf %789, %739 : vector<2x32xf32>
    %791 = arith.addf %786, %790 : vector<2x32xf32>
    %792 = vector.broadcast %777 : vector<2x1xf32> to vector<2x32xf32>
    %793 = arith.mulf %792, %776 : vector<2x32xf32>
    %c2_218 = arith.constant 2 : index
    %c0_219 = arith.constant 0 : index
    %794 = vector.load %arg18[%c2_218, %c0_219] : memref<16x32xf32, #tpu.memory_space<vmem>>, vector<2x32xf32>
    tpu.vector_store %arg18[%c2_218, %c0_219], %793 {strides = array<i32>} : memref<16x32xf32, #tpu.memory_space<vmem>>, vector<2x32xf32>,
    %795 = vector.extract_strided_slice %11 {offsets = [0, 0], sizes = [2, 128], strides = [1, 1]} : vector<16x128xf32> to vector<2x128xf32>
    %cst_220 = arith.constant dense<0.000000e+00> : vector<2x128xf32>
    %796 = tpu.matmul %784, %13, %cst_220 {dimension_numbers = #tpu.dot_dimension_numbers<[1], [0], [0], [1], [0, 0, 1, 1], [], []>} : vector<2x32xf32>, vector<32x128xf32>, vector<2x128xf32> -> vector<2x128xf32>
    %797 = arith.addf %795, %796 : vector<2x128xf32>
    %798 = vector.extract_strided_slice %797 {offsets = [0, 0], sizes = [2, 32], strides = [1, 1]} : vector<2x128xf32> to vector<2x32xf32>
    %cst_221 = arith.constant 0.000000e+00 : f32
    %799 = vector.broadcast %cst_221 : f32 to vector<2x32xf32>
    %800 = arith.subf %799, %798 : vector<2x32xf32>
    %801 = math.exp %800 : vector<2x32xf32>
    %cst_222 = arith.constant 1.000000e+00 : f32
    %802 = vector.broadcast %cst_222 : f32 to vector<2x32xf32>
    %803 = arith.addf %802, %801 : vector<2x32xf32>
    %cst_223 = arith.constant 1.000000e+00 : f32
    %804 = vector.broadcast %cst_223 : f32 to vector<2x32xf32>
    %805 = arith.divf %804, %803 : vector<2x32xf32>
    %806 = vector.extract_strided_slice %797 {offsets = [0, 32], sizes = [2, 32], strides = [1, 1]} : vector<2x128xf32> to vector<2x32xf32>
    %cst_224 = arith.constant 0.000000e+00 : f32
    %807 = vector.broadcast %cst_224 : f32 to vector<2x32xf32>
    %808 = arith.subf %807, %806 : vector<2x32xf32>
    %809 = math.exp %808 : vector<2x32xf32>
    %cst_225 = arith.constant 1.000000e+00 : f32
    %810 = vector.broadcast %cst_225 : f32 to vector<2x32xf32>
    %811 = arith.addf %810, %809 : vector<2x32xf32>
    %cst_226 = arith.constant 1.000000e+00 : f32
    %812 = vector.broadcast %cst_226 : f32 to vector<2x32xf32>
    %813 = arith.divf %812, %811 : vector<2x32xf32>
    %814 = vector.extract_strided_slice %797 {offsets = [0, 64], sizes = [2, 32], strides = [1, 1]} : vector<2x128xf32> to vector<2x32xf32>
    %815 = math.tanh %814 : vector<2x32xf32>
    %816 = vector.extract_strided_slice %797 {offsets = [0, 96], sizes = [2, 32], strides = [1, 1]} : vector<2x128xf32> to vector<2x32xf32>
    %cst_227 = arith.constant 0.000000e+00 : f32
    %817 = vector.broadcast %cst_227 : f32 to vector<2x32xf32>
    %818 = arith.subf %817, %816 : vector<2x32xf32>
    %819 = math.exp %818 : vector<2x32xf32>
    %cst_228 = arith.constant 1.000000e+00 : f32
    %820 = vector.broadcast %cst_228 : f32 to vector<2x32xf32>
    %821 = arith.addf %820, %819 : vector<2x32xf32>
    %cst_229 = arith.constant 1.000000e+00 : f32
    %822 = vector.broadcast %cst_229 : f32 to vector<2x32xf32>
    %823 = arith.divf %822, %821 : vector<2x32xf32>
    %824 = arith.mulf %813, %791 : vector<2x32xf32>
    %825 = arith.mulf %805, %815 : vector<2x32xf32>
    %826 = arith.addf %824, %825 : vector<2x32xf32>
    %827 = math.tanh %826 : vector<2x32xf32>
    %828 = arith.mulf %823, %827 : vector<2x32xf32>
    %829 = vector.extract_strided_slice %1 {offsets = [0, 0], sizes = [2, 1], strides = [1, 1]} : vector<16x1xf32> to vector<2x1xf32>
    %830 = vector.broadcast %829 : vector<2x1xf32> to vector<2x32xf32>
    %831 = arith.mulf %830, %828 : vector<2x32xf32>
    %cst_230 = arith.constant 1.000000e+00 : f32
    %832 = vector.broadcast %cst_230 : f32 to vector<2x1xf32>
    %833 = arith.subf %832, %829 : vector<2x1xf32>
    %834 = vector.broadcast %833 : vector<2x1xf32> to vector<2x32xf32>
    %835 = arith.mulf %834, %784 : vector<2x32xf32>
    %836 = arith.addf %831, %835 : vector<2x32xf32>
    %837 = vector.broadcast %829 : vector<2x1xf32> to vector<2x32xf32>
    %838 = arith.mulf %837, %826 : vector<2x32xf32>
    %cst_231 = arith.constant 1.000000e+00 : f32
    %839 = vector.broadcast %cst_231 : f32 to vector<2x1xf32>
    %840 = arith.subf %839, %829 : vector<2x1xf32>
    %841 = vector.broadcast %840 : vector<2x1xf32> to vector<2x32xf32>
    %842 = arith.mulf %841, %791 : vector<2x32xf32>
    %843 = arith.addf %838, %842 : vector<2x32xf32>
    %844 = vector.broadcast %829 : vector<2x1xf32> to vector<2x32xf32>
    %845 = arith.mulf %844, %828 : vector<2x32xf32>
    %c0_232 = arith.constant 0 : index
    %c0_233 = arith.constant 0 : index
    %846 = vector.load %arg18[%c0_232, %c0_233] : memref<16x32xf32, #tpu.memory_space<vmem>>, vector<2x32xf32>
    tpu.vector_store %arg18[%c0_232, %c0_233], %845 {strides = array<i32>} : memref<16x32xf32, #tpu.memory_space<vmem>>, vector<2x32xf32>,
    %c0_234 = arith.constant 0 : index
    %c0_235 = arith.constant 0 : index
    %847 = vector.load %arg17[%c0_234, %c0_235] : memref<16x32xf32, #tpu.memory_space<vmem>>, vector<16x32xf32>
    %c0_236 = arith.constant 0 : index
    %c0_237 = arith.constant 0 : index
    %848 = vector.load %arg8[%c0_236, %c0_237] : memref<32x32xf32, #tpu.memory_space<vmem>>, vector<32x32xf32>
    %cst_238 = arith.constant dense<0.000000e+00> : vector<16x32xf32>
    %849 = tpu.matmul %847, %848, %cst_238 {dimension_numbers = #tpu.dot_dimension_numbers<[1], [0], [0], [1], [0, 0, 1, 1], [], []>} : vector<16x32xf32>, vector<32x32xf32>, vector<16x32xf32> -> vector<16x32xf32>
    %c0_239 = arith.constant 0 : index
    %c0_240 = arith.constant 0 : index
    %850 = vector.load %arg18[%c0_239, %c0_240] : memref<16x32xf32, #tpu.memory_space<vmem>>, vector<16x32xf32>
    %c0_241 = arith.constant 0 : index
    %c0_242 = arith.constant 0 : index
    %851 = vector.load %arg9[%c0_241, %c0_242] : memref<32x32xf32, #tpu.memory_space<vmem>>, vector<32x32xf32>
    %cst_243 = arith.constant dense<0.000000e+00> : vector<16x32xf32>
    %852 = tpu.matmul %850, %851, %cst_243 {dimension_numbers = #tpu.dot_dimension_numbers<[1], [0], [0], [1], [0, 0, 1, 1], [], []>} : vector<16x32xf32>, vector<32x32xf32>, vector<16x32xf32> -> vector<16x32xf32>
    %853 = arith.addf %849, %852 : vector<16x32xf32>
    %c0_244 = arith.constant 0 : index
    %c0_245 = arith.constant 0 : index
    %854 = vector.load %arg10[%c0_244, %c0_245] : memref<1x32xf32, #tpu.memory_space<vmem>>, vector<1x32xf32>
    %855 = vector.broadcast %854 : vector<1x32xf32> to vector<16x32xf32>
    %856 = arith.addf %853, %855 : vector<16x32xf32>
    %c0_246 = arith.constant 0 : index
    %c0_247 = arith.constant 0 : index
    %857 = vector.load %arg14[%c0_246, %c0_247] : memref<16x32xf32, #tpu.memory_space<vmem>>, vector<16x32xf32>
    tpu.vector_store %arg14[%c0_246, %c0_247], %856 {strides = array<i32>} : memref<16x32xf32, #tpu.memory_space<vmem>>, vector<16x32xf32>,
    %c0_248 = arith.constant 0 : index
    %c0_249 = arith.constant 0 : index
    %858 = vector.load %arg11[%c0_248, %c0_249] : memref<32x32xf32, #tpu.memory_space<vmem>>, vector<32x32xf32>
    %cst_250 = arith.constant dense<0.000000e+00> : vector<2x32xf32>
    %859 = tpu.matmul %420, %858, %cst_250 {dimension_numbers = #tpu.dot_dimension_numbers<[1], [0], [0], [1], [0, 0, 1, 1], [], []>} : vector<2x32xf32>, vector<32x32xf32>, vector<2x32xf32> -> vector<2x32xf32>
    %c0_251 = arith.constant 0 : index
    %c0_252 = arith.constant 0 : index
    %860 = vector.load %arg12[%c0_251, %c0_252] : memref<32x32xf32, #tpu.memory_space<vmem>>, vector<32x32xf32>
    %cst_253 = arith.constant dense<0.000000e+00> : vector<2x32xf32>
    %861 = tpu.matmul %836, %860, %cst_253 {dimension_numbers = #tpu.dot_dimension_numbers<[1], [0], [0], [1], [0, 0, 1, 1], [], []>} : vector<2x32xf32>, vector<32x32xf32>, vector<2x32xf32> -> vector<2x32xf32>
    %862 = arith.addf %859, %861 : vector<2x32xf32>
    %c0_254 = arith.constant 0 : index
    %c0_255 = arith.constant 0 : index
    %863 = vector.load %arg13[%c0_254, %c0_255] : memref<1x32xf32, #tpu.memory_space<vmem>>, vector<1x32xf32>
    %864 = vector.broadcast %863 : vector<1x32xf32> to vector<2x32xf32>
    %865 = arith.addf %862, %864 : vector<2x32xf32>
    %c0_256 = arith.constant 0 : index
    %c0_257 = arith.constant 0 : index
    %866 = vector.load %arg15[%c0_256, %c0_257] : memref<2x32xf32, #tpu.memory_space<vmem>>, vector<2x32xf32>
    tpu.vector_store %arg15[%c0_256, %c0_257], %865 {strides = array<i32>} : memref<2x32xf32, #tpu.memory_space<vmem>>, vector<2x32xf32>,
    %c0_258 = arith.constant 0 : index
    %c0_259 = arith.constant 0 : index
    %867 = vector.load %arg11[%c0_258, %c0_259] : memref<32x32xf32, #tpu.memory_space<vmem>>, vector<32x32xf32>
    %cst_260 = arith.constant dense<0.000000e+00> : vector<2x32xf32>
    %868 = tpu.matmul %427, %867, %cst_260 {dimension_numbers = #tpu.dot_dimension_numbers<[1], [0], [0], [1], [0, 0, 1, 1], [], []>} : vector<2x32xf32>, vector<32x32xf32>, vector<2x32xf32> -> vector<2x32xf32>
    %c0_261 = arith.constant 0 : index
    %c0_262 = arith.constant 0 : index
    %869 = vector.load %arg12[%c0_261, %c0_262] : memref<32x32xf32, #tpu.memory_space<vmem>>, vector<32x32xf32>
    %cst_263 = arith.constant dense<0.000000e+00> : vector<2x32xf32>
    %870 = tpu.matmul %843, %869, %cst_263 {dimension_numbers = #tpu.dot_dimension_numbers<[1], [0], [0], [1], [0, 0, 1, 1], [], []>} : vector<2x32xf32>, vector<32x32xf32>, vector<2x32xf32> -> vector<2x32xf32>
    %871 = arith.addf %868, %870 : vector<2x32xf32>
    %c0_264 = arith.constant 0 : index
    %c0_265 = arith.constant 0 : index
    %872 = vector.load %arg13[%c0_264, %c0_265] : memref<1x32xf32, #tpu.memory_space<vmem>>, vector<1x32xf32>
    %873 = vector.broadcast %872 : vector<1x32xf32> to vector<2x32xf32>
    %874 = arith.addf %871, %873 : vector<2x32xf32>
    %c0_266 = arith.constant 0 : index
    %c0_267 = arith.constant 0 : index
    %875 = vector.load %arg16[%c0_266, %c0_267] : memref<2x32xf32, #tpu.memory_space<vmem>>, vector<2x32xf32>
    tpu.vector_store %arg16[%c0_266, %c0_267], %874 {strides = array<i32>} : memref<2x32xf32, #tpu.memory_space<vmem>>, vector<2x32xf32>,
    return
  }
}

</mosaic_0001>

<bundles_post_ra>
// kernel: tpu_custom_call.1
= control target key start
LH: loop header
LB: loop body
LE: loop exit
PB: predicated region body
PF: predicated region fallthrough
CT: control target
= control target key end

     0   :  { %s4805_s0 = inlined_call_operand.hbm [shape: f32[16,16], index: 0, kind: input, shape index: {}]   ;;  %s4806_s1 = inlined_call_operand.vmem [shape: f32[16,1], index: 1, kind: input, shape index: {}]   ;;  %s4807_s2 = inlined_call_operand.hbm [shape: f32[16,128], index: 2, kind: input, shape index: {}]   ;;  %s4808_s3 = inlined_call_operand.hbm [shape: f32[32,128], index: 3, kind: input, shape index: {}]   ;;  %s4809_s4 = inlined_call_operand.vmem [shape: f32[1,128], index: 4, kind: input, shape index: {}]   ;;  %s4810_s5 = inlined_call_operand.hbm [shape: f32[16,128], index: 5, kind: input, shape index: {}]   ;;  %s4811_s6 = inlined_call_operand.vmem [shape: f32[32,128], index: 6, kind: input, shape index: {}]   ;;  %s4812_s7 = inlined_call_operand.vmem [shape: f32[1,128], index: 7, kind: input, shape index: {}]   ;;  %s4813_s8 = inlined_call_operand.hbm [shape: f32[32,32], index: 8, kind: input, shape index: {}]   ;;  %s4814_s9 = inlined_call_operand.hbm [shape: f32[32,32], index: 9, kind: input, shape index: {}]   ;;  %s4815_s10 = inlined_call_operand.vmem [shape: f32[1,32], index: 10, kind: input, shape index: {}]   ;;  %s4816_s11 = inlined_call_operand.hbm [shape: f32[32,32], index: 11, kind: input, shape index: {}]   ;;  %s4817_s12 = inlined_call_operand.hbm [shape: f32[32,32], index: 12, kind: input, shape index: {}]   ;;  %s4818_s13 = inlined_call_operand.vmem [shape: f32[1,32], index: 13, kind: input, shape index: {}]   ;;  %s4819_s14 = inlined_call_operand.hbm [shape: f32[16,32], index: 14, kind: output, shape index: {0}]   ;;  %s4820_s15 = inlined_call_operand.hbm [shape: f32[2,32], index: 15, kind: output, shape index: {1}]   ;;  %s4821_s16 = inlined_call_operand.hbm [shape: f32[2,32], index: 16, kind: output, shape index: {2}]  }
   0x1   :  { %4823 = sst [smem:[#allocation29_spill]] %s4805_s0 }
   0x2   :  { %22 = vsyncpa [#allocation5], 0 }
   0x3   :  { %23 = vsyncpa [#allocation8], 0 }
   0x4   :  { %24 = vsyncpa [#allocation11], 0 }
   0x5   :  { %25 = vsyncpa [#allocation14], 0 }
   0x6   :  { %26 = vsyncpa [#allocation17], 0 }
   0x7   :  { %27 = vsyncpa [#allocation6], 0 }
   0x8   :  { %28 = vsyncpa [#allocation20], 0  ;;  %s3960_s21 = smov [#allocation7]   ;;  %s3961_s23 = smov [#allocation10]  }
   0x9   :  { %s48_s22 = sshll.u32 %s3960_s21, 4  ;;  %s74_s24 = sshll.u32 %s3961_s23, 4  ;;  %s49_s22 = int_to_ptr.vmem [resolvable:$true] %s48_s22  ;;  %s4065_s24 = int_to_ptr.vmem [resolvable:$true] %s74_s24 }
   0xa   :  { %s3704_s27 = scalar_lea.hbm %s4807_s2, 256 }
   0xb   :  { %p3705_p0 = scmp.ne.s32.totalorder %s4807_s2, %s3704_s27  ;;  %p3708_p1 = scmp.lt.u32.totalorder %s3704_s27, %s4807_s2 }
   0xd   :  { %p3710_p2 = pnand %p3708_p1, %p3705_p0 }
   0xf   :  { %3713 = shalt.err (!%p3710_p2)
}
  0x10   :  { %s3714_s17 = scalar_lea.vmem %s49_s22, 256  ;;  %p3719_p4 = scmp.lt.s32.totalorder %s49_s22, %s49_s22 }
  0x11   :  { %p3715_p3 = scmp.ne.s32.totalorder %s49_s22, %s3714_s17  ;;  %p3720_p5 = scmp.lt.s32.totalorder %s3714_s17, %s3714_s17 }
  0x13   :  { %p3721_p6 = por %p3720_p5, %p3719_p4 }
  0x15   :  { %p3722_p7 = pnand %p3721_p6, %p3715_p3 }
  0x17   :  { %3725 = shalt.err (!%p3722_p7)
}
  0x18   :  { %s3962_s18 = smov 128   ;;  %s3963_s19 = smov 8  }
  0x19   :  { %54 = dma.hbm_to_vmem [thread:$0]  %s4807_s2, 256, %s49_s22, [#allocation8], %s3962_s18, %s3962_s18, %s3963_s19  }
  0x1a   :  { %s3726_s26 = scalar_lea.hbm %s4810_s5, 256 }
  0x1b   :  { %p3727_p8 = scmp.ne.s32.totalorder %s4810_s5, %s3726_s26  ;;  %p3730_p9 = scmp.lt.u32.totalorder %s3726_s26, %s4810_s5 }
  0x1d   :  { %p3732_p10 = pnand %p3730_p9, %p3727_p8 }
  0x1f   :  { %3735 = shalt.err (!%p3732_p10)
}
  0x20   :  { %s3736_s0 = scalar_lea.vmem %s4065_s24, 256  ;;  %p3741_p12 = scmp.lt.s32.totalorder %s4065_s24, %s4065_s24 }
  0x21   :  { %p3737_p11 = scmp.ne.s32.totalorder %s4065_s24, %s3736_s0  ;;  %p3742_p13 = scmp.lt.s32.totalorder %s3736_s0, %s3736_s0 }
  0x23   :  { %p3743_p0 = por %p3742_p13, %p3741_p12 }
  0x25   :  { %p3744_p1 = pnand %p3743_p0, %p3737_p11 }
  0x27   :  { %3747 = shalt.err (!%p3744_p1)
}
  0x28   :  { %80 = dma.hbm_to_vmem [thread:$0]  %s4810_s5, 256, %s4065_s24, [#allocation11], %s3962_s18, %s3962_s18, %s3963_s19  }
  0x29   :  { %s3964_s17 = smov [#allocation13]   ;;  %s3965_s21 = smov [#allocation4]  }
  0x2a   :  { %s102_s20 = sshll.u32 %s3964_s17, 4  ;;  %s34_s23 = sshll.u32 %s3965_s21, 4  ;;  %s103_s20 = int_to_ptr.vmem [resolvable:$true] %s102_s20  ;;  %s4102_s23 = int_to_ptr.vmem [resolvable:$true] %s34_s23 }
  0x2b   :  { %s3748_s27 = scalar_lea.hbm %s4814_s9, 512 }
  0x2c   :  { %p3749_p2 = scmp.ne.s32.totalorder %s4814_s9, %s3748_s27  ;;  %p3752_p3 = scmp.lt.u32.totalorder %s3748_s27, %s4814_s9 }
  0x2e   :  { %p3754_p4 = pnand %p3752_p3, %p3749_p2 }
  0x30   :  { %3757 = shalt.err (!%p3754_p4)
}
  0x31   :  { %s3758_s5 = scalar_lea.vmem %s103_s20, 512  ;;  %p3763_p6 = scmp.lt.s32.totalorder %s103_s20, %s103_s20 }
  0x32   :  { %p3759_p5 = scmp.ne.s32.totalorder %s103_s20, %s3758_s5  ;;  %p3764_p7 = scmp.lt.s32.totalorder %s3758_s5, %s3758_s5 }
  0x34   :  { %p3765_p8 = por %p3764_p7, %p3763_p6 }
  0x36   :  { %p3766_p9 = pnand %p3765_p8, %p3759_p5 }
  0x38   :  { %3769 = shalt.err (!%p3766_p9)
}
  0x39   :  { %108 = dma.hbm_to_vmem [thread:$0]  %s4814_s9, 512, %s103_s20, [#allocation14], %s3962_s18, %s3962_s18, %s3963_s19  }
  0x3a   :  { %s4824_s21 = sld [smem:[#allocation29_spill]] }
  0x40   :  { %s3770_s25 = scalar_lea.hbm %s4824_s21, 256 }
  0x41   :  { %p3771_p10 = scmp.ne.s32.totalorder %s4824_s21, %s3770_s25  ;;  %p3774_p11 = scmp.lt.u32.totalorder %s3770_s25, %s4824_s21 }
  0x43   :  { %p3776_p12 = pnand %p3774_p11, %p3771_p10 }
  0x45   :  { %3779 = shalt.err (!%p3776_p12)
}
  0x46   :  { %s3780_s30 = scalar_lea.vmem %s4102_s23, 256  ;;  %p3785_p0 = scmp.lt.s32.totalorder %s4102_s23, %s4102_s23 }
  0x47   :  { %p3781_p13 = scmp.ne.s32.totalorder %s4102_s23, %s3780_s30  ;;  %p3786_p1 = scmp.lt.s32.totalorder %s3780_s30, %s3780_s30 }
  0x49   :  { %p3787_p2 = por %p3786_p1, %p3785_p0 }
  0x4b   :  { %p3788_p3 = pnand %p3787_p2, %p3781_p13 }
  0x4d   :  { %3791 = shalt.err (!%p3788_p3)
}
  0x4e   :  { %40 = dma.hbm_to_vmem [thread:$0]  %s4824_s21, 256, %s4102_s23, [#allocation5], %s3962_s18, %s3962_s18, %s3963_s19  }
  0x4f   :  { %s3966_s0 = smov [#allocation9]   ;;  %s3967_s24 = smov [#allocation12]  }
  0x50   :  { %s60_s5 = sshll.u32 %s3966_s0, 4  ;;  %s90_s2 = sshll.u32 %s3967_s24, 4  ;;  %s61_s5 = int_to_ptr.vmem [resolvable:$true] %s60_s5  ;;  %s4139_s2 = int_to_ptr.vmem [resolvable:$true] %s90_s2 }
  0x51   :  { %s3792_s25 = scalar_lea.hbm %s4808_s3, 512 }
  0x52   :  { %p3793_p4 = scmp.ne.s32.totalorder %s4808_s3, %s3792_s25  ;;  %p3796_p5 = scmp.lt.u32.totalorder %s3792_s25, %s4808_s3 }
  0x54   :  { %p3798_p6 = pnand %p3796_p5, %p3793_p4 }
  0x56   :  { %3801 = shalt.err (!%p3798_p6)
}
  0x57   :  { %s3802_s23 = scalar_lea.vmem %s61_s5, 512  ;;  %p3807_p8 = scmp.lt.s32.totalorder %s61_s5, %s61_s5 }
  0x58   :  { %p3803_p7 = scmp.ne.s32.totalorder %s61_s5, %s3802_s23  ;;  %p3808_p9 = scmp.lt.s32.totalorder %s3802_s23, %s3802_s23 }
  0x5a   :  { %p3809_p10 = por %p3808_p9, %p3807_p8 }
  0x5c   :  { %p3810_p11 = pnand %p3809_p10, %p3803_p7 }
  0x5e   :  { %3813 = shalt.err (!%p3810_p11)
}
  0x5f   :  { %66 = dma.hbm_to_vmem [thread:$0]  %s4808_s3, 512, %s61_s5, [#allocation8], %s3962_s18, %s3962_s18, %s3963_s19  }
  0x60   :  { %s3814_s0 = scalar_lea.hbm %s4813_s8, 512 }
  0x61   :  { %p3815_p12 = scmp.ne.s32.totalorder %s4813_s8, %s3814_s0  ;;  %p3818_p13 = scmp.lt.u32.totalorder %s3814_s0, %s4813_s8 }
  0x63   :  { %p3820_p0 = pnand %p3818_p13, %p3815_p12 }
  0x65   :  { %3823 = shalt.err (!%p3820_p0)
}
  0x66   :  { %s3824_s26 = scalar_lea.vmem %s4139_s2, 512  ;;  %p3829_p2 = scmp.lt.s32.totalorder %s4139_s2, %s4139_s2 }
  0x67   :  { %p3825_p1 = scmp.ne.s32.totalorder %s4139_s2, %s3824_s26  ;;  %p3830_p3 = scmp.lt.s32.totalorder %s3824_s26, %s3824_s26 }
  0x69   :  { %p3831_p4 = por %p3830_p3, %p3829_p2 }
  0x6b   :  { %p3832_p5 = pnand %p3831_p4, %p3825_p1 }
  0x6d   :  { %3835 = shalt.err (!%p3832_p5)
}
  0x6e   :  { %96 = dma.hbm_to_vmem [thread:$0]  %s4813_s8, 512, %s4139_s2, [#allocation11], %s3962_s18, %s3962_s18, %s3963_s19  }
  0x6f   :  { %s3968_s27 = smov [#allocation15]   ;;  %s3969_s29 = smov [#allocation16]  }
  0x70   :  { %s116_s28 = sshll.u32 %s3968_s27, 4  ;;  %s128_s23 = sshll.u32 %s3969_s29, 4  ;;  %s117_s28 = int_to_ptr.vmem [resolvable:$true] %s116_s28  ;;  %s4176_s23 = int_to_ptr.vmem [resolvable:$true] %s128_s23 }
  0x71   :  { %s3836_s9 = scalar_lea.hbm %s4816_s11, 512 }
  0x72   :  { %p3837_p6 = scmp.ne.s32.totalorder %s4816_s11, %s3836_s9  ;;  %p3840_p7 = scmp.lt.u32.totalorder %s3836_s9, %s4816_s11 }
  0x74   :  { %p3842_p8 = pnand %p3840_p7, %p3837_p6 }
  0x76   :  { %3845 = shalt.err (!%p3842_p8)
}
  0x77   :  { %s3846_s8 = scalar_lea.vmem %s117_s28, 512  ;;  %p3851_p10 = scmp.lt.s32.totalorder %s117_s28, %s117_s28 }
  0x78   :  { %p3847_p9 = scmp.ne.s32.totalorder %s117_s28, %s3846_s8  ;;  %p3852_p11 = scmp.lt.s32.totalorder %s3846_s8, %s3846_s8 }
  0x7a   :  { %p3853_p12 = por %p3852_p11, %p3851_p10 }
  0x7c   :  { %p3854_p13 = pnand %p3853_p12, %p3847_p9 }
  0x7e   :  { %3857 = shalt.err (!%p3854_p13)
}
  0x7f   :  { %122 = dma.hbm_to_vmem [thread:$0]  %s4816_s11, 512, %s117_s28, [#allocation14], %s3962_s18, %s3962_s18, %s3963_s19  }
  0x80   :  { %s3858_s3 = scalar_lea.hbm %s4817_s12, 512 }
  0x81   :  { %p3859_p0 = scmp.ne.s32.totalorder %s4817_s12, %s3858_s3  ;;  %p3862_p1 = scmp.lt.u32.totalorder %s3858_s3, %s4817_s12 }
  0x83   :  { %p3864_p2 = pnand %p3862_p1, %p3859_p0 }
  0x85   :  { %3867 = shalt.err (!%p3864_p2)
}
  0x86   :  { %s3868_s30 = scalar_lea.vmem %s4176_s23, 512  ;;  %p3873_p4 = scmp.lt.s32.totalorder %s4176_s23, %s4176_s23 }
  0x87   :  { %p3869_p3 = scmp.ne.s32.totalorder %s4176_s23, %s3868_s30  ;;  %p3874_p5 = scmp.lt.s32.totalorder %s3868_s30, %s3868_s30 }
  0x89   :  { %p3875_p6 = por %p3874_p5, %p3873_p4 }
  0x8b   :  { %p3876_p7 = pnand %p3875_p6, %p3869_p3 }
  0x8d   :  { %3879 = shalt.err (!%p3876_p7)
}
  0x8e   :  { %134 = dma.hbm_to_vmem [thread:$0]  %s4817_s12, 512, %s4176_s23, [#allocation17], %s3962_s18, %s3962_s18, %s3963_s19  }
  0x8f   :  { %3946 = dma.done.wait [#allocation5], 256  }
  0x90   :  { %3947 = vsyncadd [#allocation5], 4294967040 }
  0x91   :  { %3948 = dma.done.wait [#allocation8], 768  }
  0x92   :  { %3949 = vsyncadd [#allocation8], 4294966528 }
  0x93   :  { %3950 = dma.done.wait [#allocation11], 768  }
  0x94   :  { %3951 = vsyncadd [#allocation11], 4294966528 }
  0x95   :  { %3952 = dma.done.wait [#allocation14], 1024  }
  0x96   :  { %3953 = vsyncadd [#allocation14], 4294966272 }
  0x97   :  { %3954 = dma.done.wait [#allocation17], 512  }
  0x98   :  { %3955 = vsyncadd [#allocation17], 4294966784  ;;  %vm174_vm0 = vcmask 130048   ;;  %v165_v0 = vld [vmem:[#allocation7] sm:$0xff]  ;;  %v166_v1 = vld [vmem:[#allocation7 + $0x8] sm:$0xff]  ;;  %v3970_v8 = vmov 0.0|0.0  }
  0x99   :  { %v161_v2 = vld [vmem:[#allocation4] sm:$0xff]  ;;  %v3408_v3 = vpack.c.bf16 %v166_v1, %v165_v0  ;;  %v341_v5 = vld [vmem:[#allocation9 + $0x8] sm:$0xff]  ;;  %v342_v9 = vld [vmem:[#allocation9 + $0x10] sm:$0xff]  ;;  %vm3971_vm1 = vmmov 0   ;;  %v3972_v12 = vmov 0.0   ;;  %v3973_v14 = vmov 0  }
  0x9a   :  { %3156 = vmatprep.mubr.msk.f32.mxu0 %vm174_vm0, %v161_v2  ;;  %v340_v4 = vld [vmem:[#allocation9] sm:$0xff]  ;;  %3163 = vmatprep.mubr.msk.f32.mxu1 %vm174_vm0, %v161_v2  ;;  %v4215_v6 = vld [vmem:[#allocation4 + $0x8] sm:$0xff]  ;;  %v343_v10 = vld [vmem:[#allocation9 + $0x18] sm:$0xff]  ;;  %s3974_s0 = smov 64   ;;  %vm348_vm2 = vcmask 261120   ;;  %vm734_vm3 = vcmask 259076  }
  0x9b   :  { %3409 = vmatprep.subr.bf16.mxu0 %v3408_v3  ;;  %v4217_v7 = vpack.c.bf16 %v341_v5, %v340_v4  ;;  %v4223_v11 = vpack.c.bf16 %v343_v10, %v342_v9  ;;  %v163_v13 = vld [vmem:[%s4806_s1] sm:$0xff]  ;;  %3574 = vset.pattern.permute.xlu1 %v3973_v14  ;;  %v257_v36 = vld [vmem:[#allocation10 + $0x8] sm:$0xff]  ;;  %vm467_vm4 = vcmask 254976   ;;  %vm868_vm5 = vcmask 261126   ;;  %s3977_s30 = smov [#allocation19]   ;;  %s3978_s23 = smov [#allocation18]  }
  0x9c   :  { %3411 = vmatpush3.bf16.msra.mxu0 %v3408_v3  ;;  %3575 = vset.pattern.permute.xlu0 %v3973_v14  ;;  %v453_v15 = vsub.f32 1.0, %v163_v13  ;;  %v3001_v16 = vld [vmem:[%s4809_s4] ss:$0 sm:$0xff]  ;;  %s3975_s4 = smov 32   ;;  %vm600_vm6 = vcmask 257026   ;;  %s2971_s11 = sshll.u32 %s3977_s30, 4  ;;  %s2972_s11 = int_to_ptr.vmem [resolvable:$true] %s2971_s11 }
  0x9d   :  { %3416 = vmatprep.subr.bf16.mxu0 %v3970_v8  ;;  %449 = vperm.xlu1 %3574, %v163_v13   ;;  %v256_v35 = vld [vmem:[#allocation10] sm:$0xff]  ;;  %s2958_s9 = sshll.u32 %s3978_s23, 4  ;;  %p3885_p9 = scmp.lt.s32.totalorder %s2972_s11, %s2972_s11  ;;  %s4756_s9 = int_to_ptr.vmem [resolvable:$true] %s2958_s9 }
  0x9e   :  { %v3412_v37 = vpack.c.bf16 %v257_v36, %v256_v35  ;;  %v4273_v46 = vld [vmem:[%s4812_s7] ss:$0 sm:$0xff]  ;;  %s3976_s7 = smov 96  }
  0x9f   :  { %3157 = vmatmul.mubr.msk.f32.vlgmr.msra.gmra.mrb[0].mxu0 %vm174_vm0, %v4215_v6 }
  0xa0   :  { %3418 = vmatpush3.bf16.msra.mxu0 %v4217_v7  ;;  %3174 = vmatprep.mubr.msk.f32.mxu0 %vm3971_vm1, %v3972_v12 }
  0xa1   :  { %3419 = vmatprep.subr.bf16.mxu0 %v3970_v8  ;;  %456 = vperm.xlu1 %3574, %v453_v15  }
  0xa2   :  { %3413 = vmatprep.subr.bf16.mxu1 %v3412_v37 }
  0xa3   :  { %3415 = vmatpush3.bf16.msra.mxu1 %v3412_v37 }
  0xa4   :  { %3421 = vmatpush3.bf16.msra.mxu0 %v4223_v11  ;;  %3422 = vmatprep.subr.bf16.mxu1 %v3970_v8 }
  0xa5   :  { %3428 = vmatprep.subr.bf16.mxu0 %v3970_v8 }
  0xa6   :  { %3164 = vmatmul.mubr.msk.f32.vlgmr.msra.gmra.mrb[0].mxu1 %vm174_vm0, %v4215_v6 }
  0xa7   :  { %3175 = vmatmul.mubr.f32.vlgmr.msra.gmra.mrb[2].mxu0 %v3972_v12  ;;  %3424 = vmatpush3.bf16.msra.mxu1 %v4217_v7 }
  0xa8   :  { %3430 = vmatpush3.bf16.msra.mxu0 %v4217_v7  ;;  %3196 = vmatprep.mubr.msk.f32.mxu0 %vm3971_vm1, %v3972_v12 }
  0xa9   :  { %3431 = vmatprep.subr.bf16.mxu0 %v3970_v8  ;;  %3185 = vmatprep.mubr.msk.f32.mxu1 %vm3971_vm1, %v3972_v12 }
  0xaa   :  { %3425 = vmatprep.subr.bf16.mxu1 %v3970_v8 }
  0xab   :  { %3427 = vmatpush3.bf16.msra.mxu1 %v4223_v11 }
  0xac   :  { %3433 = vmatpush3.bf16.msra.mxu0 %v4223_v11  ;;  %3434 = vmatprep.subr.bf16.mxu1 %v3970_v8 }
  0xad   :  { %3440 = vmatprep.subr.bf16.mxu0 %v3970_v8 }
 0x11c   :  { %v4260_v39 = vpop.permute.xlu1 %449 }
 0x120   :  { %v4262_v40 = vpop.permute.xlu1 %456 }
 0x121   :  { %v459_v44 = vmul.f32 0.0, %v4262_v40 }
 0x172   :  { %v3158_v17 = vpop.f32.mrb[0].mxu0 }
 0x173   :  { %v4243_v18 = vadd.f32 %v3158_v17, %v3001_v16  ;;  %v247_v19 = vpop.f32.mrb[1].mxu0 }
 0x174   :  { %v4245_v20 = vadd.f32 %v3001_v16, %v247_v19 }
 0x179   :  { %v4275_v47 = vpop.f32.mrb[0].mxu1 }
 0x17a   :  { %v418_v21 = vpop.f32.mrb[2].mxu0  ;;  %v331_v48 = vpop.f32.mrb[1].mxu1 }
 0x17b   :  { %v422_v22 = vadd.f32 %v418_v21, %v4245_v20  ;;  %v3176_v23 = vpop.f32.mrb[3].mxu0  ;;  %v4278_v49 = vadd.f32 %v4273_v46, %v331_v48 }
 0x17d   :  { %3576 = vtanh.f32 %v422_v22  ;;  %v423_v25 = vsub.f32 0.0, %v422_v22 }
 0x17f   :  { %v424_v26 = vmul.f32 1.442695, %v423_v25 }
 0x181   :  { %3578 = vpow2.f32 %v424_v26 }
 0x187   :  { %v3577_v24 = vpop.eup %3576 }
 0x188   :  { %432 = vrot.lane.b32.xlu0 %v3577_v24, %s3974_s0 }
 0x18b   :  { %v3579_v27 = vpop.eup %3578 }
 0x18c   :  { %v426_v28 = vadd.f32 1.0, %v3579_v27 }
 0x18e   :  { %3580 = vrcp.f32 %v426_v28 }
 0x198   :  { %v3581_v29 = vpop.eup %3580 }
 0x199   :  { %v430_v32 = vmul.f32 0.0, %v3581_v29 }
 0x1fa   :  { %v433_v30 = vpop.permute.xlu0 %432 }
 0x1fb   :  { %v435_v31 = vmul.f32 %v3581_v29, %v433_v30 }
 0x1fd   :  { %437 = vrot.lane.b32.xlu0 %v435_v31, %s3975_s4 }
 0x26f   :  { %v438_v33 = vpop.permute.xlu0 %437 }
 0x270   :  { %v440_v34 = vadd.f32 %v438_v33, %v430_v32 }
 0x272   :  { %3582 = vtanh.f32 %v440_v34  ;;  %v461_v63 = vmul.f32 %v4260_v39, %v440_v34 }
 0x274   :  { %v462_v3 = vadd.f32 %v461_v63, %v459_v44 }
 0x276   :  { %v556_v4 = vrot.slane %v462_v3, 6 }
 0x27c   :  { %v3583_v38 = vpop.eup %3582 }
 0x27d   :  { %443 = vrot.lane.b32.xlu0 %v3583_v38, %s3974_s0 }
 0x2ef   :  { %v444_v41 = vpop.permute.xlu0 %443 }
 0x2f0   :  { %v446_v42 = vmul.f32 %v3581_v29, %v444_v41 }
 0x2f2   :  { %v4265_v43 = vmul.f32 %v4260_v39, %v446_v42 }
 0x2f4   :  { %v460_v45 = vadd.f32 %v459_v44, %v4265_v43 }
 0x2f6   :  { %470 = vrot.lane.b32.xlu1 %v460_v45, %s3975_s4  ;;  %v576_v56 = vrot.slane %v460_v45, 6 }
 0x368   :  { %v471_v50 = vpop.permute.xlu1 %470 }
 0x369   :  { %3186 = vmatmul.mubr.msk.f32.vlgmr.msra.gmra.mrb[2].mxu1 %vm348_vm2, %v471_v50 }
 0x36a   :  { %3436 = vmatpush3.bf16.msra.mxu1 %v4217_v7  ;;  %3207 = vmatprep.mubr.msk.f32.mxu1 %vm3971_vm1, %v3972_v12 }
 0x36b   :  { %3437 = vmatprep.subr.bf16.mxu1 %v3970_v8 }
 0x36e   :  { %3439 = vmatpush3.bf16.msra.mxu1 %v4223_v11 }
 0x36f   :  { %3446 = vmatprep.subr.bf16.mxu1 %v3970_v8 }
 0x43c   :  { %v540_v51 = vpop.f32.mrb[2].mxu1 }
 0x43d   :  { %v545_v52 = vrot.slane %v540_v51, 6  ;;  %v3187_v53 = vpop.f32.mrb[3].mxu1 }
 0x43f   :  { %v547_v54 = vadd.f32 %v545_v52, %v4245_v20 }
 0x441   :  { %3584 = vtanh.f32 %v547_v54  ;;  %v548_v57 = vsub.f32 0.0, %v547_v54 }
 0x443   :  { %v549_v58 = vmul.f32 1.442695, %v548_v57 }
 0x445   :  { %3586 = vpow2.f32 %v549_v58 }
 0x44b   :  { %v3585_v55 = vpop.eup %3584 }
 0x44c   :  { %560 = vrot.lane.b32.xlu0 %v3585_v55, %s3974_s0 }
 0x44f   :  { %v3587_v59 = vpop.eup %3586 }
 0x450   :  { %577 = vrot.lane.b32.xlu0 %v576_v56, %s3975_s4  ;;  %v551_v60 = vadd.f32 1.0, %v3587_v59 }
 0x452   :  { %3588 = vrcp.f32 %v551_v60 }
 0x45c   :  { %v3589_v61 = vpop.eup %3588 }
 0x45d   :  { %v558_v5 = vmul.f32 %v3589_v61, %v556_v4 }
 0x4be   :  { %v561_v62 = vpop.permute.xlu0 %560 }
 0x4bf   :  { %v563_v0 = vmul.f32 %v3589_v61, %v561_v62 }
 0x4c1   :  { %565 = vrot.lane.b32.xlu1 %v563_v0, %s3975_s4 }
 0x4c2   :  { %v578_v1 = vpop.permute.xlu0 %577 }
 0x4c3   :  { %v580_v2 = vmul.f32 %v578_v1, %v4262_v40 }
 0x4c5   :  { %582 = vrot.lane.b32.xlu0 %v580_v2, %s3976_s7 }
 0x4c9   :  { %587 = vrot.lane.b32.xlu0 %v556_v4, %s3976_s7 }
 0x533   :  { %v566_v6 = vpop.permute.xlu1 %565 }
 0x534   :  { %v568_v9 = vadd.f32 %v566_v6, %v558_v5 }
 0x536   :  { %3590 = vtanh.f32 %v568_v9  ;;  %v586_v25 = vmul.f32 %v568_v9, %v4260_v39 }
 0x537   :  { %v583_v10 = vpop.permute.xlu0 %582 }
 0x53b   :  { %v588_v13 = vpop.permute.xlu0 %587 }
 0x53c   :  { %v590_v14 = vmul.f32 %v588_v13, %v4262_v40 }
 0x53e   :  { %592 = vrot.lane.b32.xlu0 %v590_v14, %s3975_s4 }
 0x540   :  { %v3591_v15 = vpop.eup %3590 }
 0x541   :  { %571 = vrot.lane.b32.xlu1 %v3591_v15, %s3974_s0 }
 0x5b0   :  { %v593_v24 = vpop.permute.xlu0 %592 }
 0x5b1   :  { %v595_v28 = vadd.f32 %v593_v24, %v586_v25 }
 0x5b3   :  { %v572_v16 = vpop.permute.xlu1 %571  ;;  %v690_v30 = vrot.slane %v595_v28, 6 }
 0x5b4   :  { %v574_v17 = vmul.f32 %v3589_v61, %v572_v16 }
 0x5b6   :  { %v4299_v19 = vmul.f32 %v574_v17, %v4260_v39 }
 0x5b8   :  { %v585_v21 = vadd.f32 %v583_v10, %v4299_v19 }
 0x5ba   :  { %v603_v22 = vrot.slane %v585_v21, 2  ;;  %v710_v23 = vrot.slane %v585_v21, 6 }
 0x5bc   :  { %604 = vrot.lane.b32.xlu1 %v603_v22, %s3975_s4  ;;  %711 = vrot.lane.b32.xlu0 %v710_v23, %s3975_s4 }
 0x62e   :  { %v605_v26 = vpop.permute.xlu1 %604  ;;  %v712_v27 = vpop.permute.xlu0 %711 }
 0x62f   :  { %v714_v29 = vmul.f32 %v712_v27, %v4262_v40  ;;  %3197 = vmatmul.mubr.msk.f32.vlgmr.msra.gmra.mrb[4].mxu0 %vm348_vm2, %v605_v26  ;;  %v164_v27 = vld [vmem:[%s4806_s1 + $0x8] sm:$0xff] }
 0x630   :  { %3442 = vmatpush3.bf16.msra.mxu0 %v4217_v7  ;;  %3218 = vmatprep.mubr.msk.f32.mxu0 %vm3971_vm1, %v3972_v12 }
 0x631   :  { %716 = vrot.lane.b32.xlu0 %v714_v29, %s3976_s7  ;;  %3443 = vmatprep.subr.bf16.mxu0 %v3970_v8 }
 0x634   :  { %3445 = vmatpush3.bf16.msra.mxu0 %v4223_v11 }
 0x635   :  { %721 = vrot.lane.b32.xlu0 %v690_v30, %s3976_s7  ;;  %3452 = vmatprep.subr.bf16.mxu0 %v3970_v8 }
 0x6a3   :  { %v717_v31 = vpop.permute.xlu0 %716 }
 0x6a7   :  { %v722_v32 = vpop.permute.xlu0 %721 }
 0x6a8   :  { %v724_v33 = vmul.f32 %v722_v32, %v4262_v40 }
 0x6aa   :  { %726 = vrot.lane.b32.xlu0 %v724_v33, %s3975_s4 }
 0x702   :  { %v674_v34 = vpop.f32.mrb[4].mxu0 }
 0x703   :  { %v679_v35 = vrot.slane %v674_v34, 4  ;;  %v3198_v36 = vpop.f32.mrb[5].mxu0 }
 0x705   :  { %v681_v37 = vadd.f32 %v679_v35, %v4245_v20 }
 0x707   :  { %3592 = vtanh.f32 %v681_v37  ;;  %v682_v41 = vsub.f32 0.0, %v681_v37 }
 0x709   :  { %v683_v42 = vmul.f32 1.442695, %v682_v41 }
 0x70b   :  { %3594 = vpow2.f32 %v683_v42 }
 0x711   :  { %v3593_v38 = vpop.eup %3592 }
 0x712   :  { %694 = vrot.lane.b32.xlu1 %v3593_v38, %s3974_s0 }
 0x715   :  { %v3595_v44 = vpop.eup %3594 }
 0x716   :  { %v685_v45 = vadd.f32 1.0, %v3595_v44 }
 0x718   :  { %3596 = vrcp.f32 %v685_v45 }
 0x71c   :  { %v727_v62 = vpop.permute.xlu0 %726 }
 0x722   :  { %v3597_v48 = vpop.eup %3596 }
 0x723   :  { %v692_v52 = vmul.f32 %v3597_v48, %v690_v30 }
 0x784   :  { %v695_v50 = vpop.permute.xlu1 %694 }
 0x785   :  { %v697_v51 = vmul.f32 %v3597_v48, %v695_v50 }
 0x787   :  { %699 = vrot.lane.b32.xlu1 %v697_v51, %s3975_s4 }
 0x7f9   :  { %v700_v53 = vpop.permute.xlu1 %699 }
 0x7fa   :  { %v702_v54 = vadd.f32 %v700_v53, %v692_v52 }
 0x7fc   :  { %3598 = vtanh.f32 %v702_v54  ;;  %v720_v63 = vmul.f32 %v702_v54, %v4260_v39 }
 0x7fe   :  { %v729_v3 = vadd.f32 %v727_v62, %v720_v63 }
 0x800   :  { %v824_v4 = vrot.slane %v729_v3, 6 }
 0x806   :  { %v3599_v55 = vpop.eup %3598 }
 0x807   :  { %705 = vrot.lane.b32.xlu1 %v3599_v55, %s3974_s0 }
 0x879   :  { %v706_v56 = vpop.permute.xlu1 %705 }
 0x87a   :  { %v708_v57 = vmul.f32 %v3597_v48, %v706_v56 }
 0x87c   :  { %v4322_v58 = vmul.f32 %v708_v57, %v4260_v39 }
 0x87e   :  { %v719_v59 = vadd.f32 %v717_v31, %v4322_v58 }
 0x880   :  { %v737_v60 = vrot.slane %v719_v59, 4  ;;  %v844_v61 = vrot.slane %v719_v59, 6 }
 0x882   :  { %738 = vrot.lane.b32.xlu1 %v737_v60, %s3975_s4  ;;  %845 = vrot.lane.b32.xlu0 %v844_v61, %s3975_s4 }
 0x8f4   :  { %v739_v0 = vpop.permute.xlu1 %738  ;;  %v846_v1 = vpop.permute.xlu0 %845 }
 0x8f5   :  { %v848_v2 = vmul.f32 %v846_v1, %v4262_v40  ;;  %3208 = vmatmul.mubr.msk.f32.vlgmr.msra.gmra.mrb[4].mxu1 %vm348_vm2, %v739_v0 }
 0x8f6   :  { %3448 = vmatpush3.bf16.msra.mxu1 %v4217_v7  ;;  %3229 = vmatprep.mubr.msk.f32.mxu1 %vm3971_vm1, %v3972_v12 }
 0x8f7   :  { %850 = vrot.lane.b32.xlu0 %v848_v2, %s3976_s7  ;;  %3449 = vmatprep.subr.bf16.mxu1 %v3970_v8 }
 0x8fa   :  { %3451 = vmatpush3.bf16.msra.mxu1 %v4223_v11 }
 0x8fb   :  { %855 = vrot.lane.b32.xlu0 %v824_v4, %s3976_s7  ;;  %3458 = vmatprep.subr.bf16.mxu1 %v3970_v8 }
 0x969   :  { %v851_v5 = vpop.permute.xlu0 %850 }
 0x96d   :  { %v856_v6 = vpop.permute.xlu0 %855 }
 0x96e   :  { %v858_v9 = vmul.f32 %v856_v6, %v4262_v40 }
 0x970   :  { %860 = vrot.lane.b32.xlu0 %v858_v9, %s3975_s4 }
 0x9c8   :  { %v808_v10 = vpop.f32.mrb[4].mxu1 }
 0x9c9   :  { %v813_v13 = vrot.slane %v808_v10, 2  ;;  %v3209_v14 = vpop.f32.mrb[5].mxu1 }
 0x9cb   :  { %v815_v15 = vadd.f32 %v813_v13, %v4245_v20  ;;  %v980_v20 = vsub.f32 1.0, %v164_v27 }
 0x9cd   :  { %3600 = vtanh.f32 %v815_v15  ;;  %v816_v17 = vsub.f32 0.0, %v815_v15  ;;  %983 = vperm.xlu0 %3575, %v980_v20  }
 0x9cf   :  { %v817_v21 = vmul.f32 1.442695, %v816_v17 }
 0x9d1   :  { %3602 = vpow2.f32 %v817_v21 }
 0x9d7   :  { %v3601_v16 = vpop.eup %3600 }
 0x9d8   :  { %828 = vrot.lane.b32.xlu1 %v3601_v16, %s3974_s0 }
 0x9db   :  { %v3603_v22 = vpop.eup %3602 }
 0x9dc   :  { %v819_v23 = vadd.f32 1.0, %v3603_v22 }
 0x9de   :  { %3604 = vrcp.f32 %v819_v23 }
 0x9e2   :  { %v861_v37 = vpop.permute.xlu0 %860 }
 0x9e8   :  { %v3605_v24 = vpop.eup %3604 }
 0x9e9   :  { %v826_v28 = vmul.f32 %v3605_v24, %v824_v4 }
 0xa4a   :  { %v829_v25 = vpop.permute.xlu1 %828 }
 0xa4b   :  { %v831_v26 = vmul.f32 %v3605_v24, %v829_v25 }
 0xa4c   :  { %v4353_v41 = vpop.permute.xlu0 %983 }
 0xa4d   :  { %833 = vrot.lane.b32.xlu1 %v831_v26, %s3975_s4 }
 0xabf   :  { %v834_v29 = vpop.permute.xlu1 %833 }
 0xac0   :  { %v836_v30 = vadd.f32 %v834_v29, %v826_v28 }
 0xac2   :  { %3606 = vtanh.f32 %v836_v30  ;;  %v854_v38 = vmul.f32 %v836_v30, %v4260_v39 }
 0xac4   :  { %v863_v45 = vadd.f32 %v861_v37, %v854_v38 }
 0xac6   :  { %v955_v48 = vrot.slane %v863_v45, 6 }
 0xacc   :  { %v3607_v31 = vpop.eup %3606 }
 0xacd   :  { %839 = vrot.lane.b32.xlu1 %v3607_v31, %s3974_s0 }
 0xb3f   :  { %v840_v32 = vpop.permute.xlu1 %839 }
 0xb40   :  { %v842_v33 = vmul.f32 %v3605_v24, %v840_v32 }
 0xb42   :  { %v4348_v34 = vmul.f32 %v842_v33, %v4260_v39 }
 0xb44   :  { %v853_v35 = vadd.f32 %v851_v5, %v4348_v34 }
 0xb46   :  { %v871_v36 = vrot.slane %v853_v35, 6 }
 0xb48   :  { %872 = vrot.lane.b32.xlu1 %v871_v36, %s3975_s4 }
 0xbba   :  { %v873_v42 = vpop.permute.xlu1 %872 }
 0xbbb   :  { %3219 = vmatmul.mubr.msk.f32.vlgmr.msra.gmra.mrb[6].mxu0 %vm348_vm2, %v873_v42  ;;  %v987_v44 = vmul.f32 %v4353_v41, %v873_v42 }
 0xbbc   :  { %3454 = vmatpush3.bf16.msra.mxu0 %v4217_v7  ;;  %3240 = vmatprep.mubr.msk.f32.mxu0 %vm3971_vm1, %v3972_v12 }
 0xbbd   :  { %989 = vrot.lane.b32.xlu0 %v987_v44, %s3976_s7  ;;  %3455 = vmatprep.subr.bf16.mxu0 %v3970_v8 }
 0xbc0   :  { %3457 = vmatpush3.bf16.msra.mxu0 %v4223_v11 }
 0xbc1   :  { %994 = vrot.lane.b32.xlu0 %v955_v48, %s3976_s7  ;;  %3464 = vmatprep.subr.bf16.mxu0 %v3970_v8 }
 0xc2f   :  { %v990_v50 = vpop.permute.xlu0 %989 }
 0xc33   :  { %v995_v51 = vpop.permute.xlu0 %994 }
 0xc34   :  { %v997_v52 = vmul.f32 %v995_v51, %v4353_v41 }
 0xc36   :  { %999 = vrot.lane.b32.xlu0 %v997_v52, %s3975_s4  ;;  %v344_v52 = vld [vmem:[%s4811_s6] sm:$0xff] }
 0xc8e   :  { %v942_v53 = vpop.f32.mrb[6].mxu0 }
 0xc8f   :  { %v946_v54 = vadd.f32 %v942_v53, %v4243_v18  ;;  %v3220_v55 = vpop.f32.mrb[7].mxu0  ;;  %v345_v53 = vld [vmem:[%s4811_s6 + $0x8] sm:$0xff] }
 0xc90   :  { %v346_v55 = vld [vmem:[%s4811_s6 + $0x10] sm:$0xff] }
 0xc91   :  { %3608 = vtanh.f32 %v946_v54  ;;  %v947_v57 = vsub.f32 0.0, %v946_v54  ;;  %v4408_v54 = vpack.c.bf16 %v345_v53, %v344_v52 }
 0xc93   :  { %v948_v59 = vmul.f32 1.442695, %v947_v57 }
 0xc95   :  { %3610 = vpow2.f32 %v948_v59 }
 0xc9b   :  { %v3609_v56 = vpop.eup %3608 }
 0xc9c   :  { %959 = vrot.lane.b32.xlu1 %v3609_v56, %s3974_s0  ;;  %v347_v56 = vld [vmem:[%s4811_s6 + $0x18] sm:$0xff] }
 0xc9d   :  { %v4418_v59 = vpack.c.bf16 %v347_v56, %v346_v55 }
 0xc9f   :  { %v3611_v60 = vpop.eup %3610 }
 0xca0   :  { %v950_v61 = vadd.f32 1.0, %v3611_v60 }
 0xca2   :  { %3612 = vrcp.f32 %v950_v61 }
 0xca8   :  { %v1000_v15 = vpop.permute.xlu0 %999 }
 0xcac   :  { %v3613_v62 = vpop.eup %3612 }
 0xcad   :  { %v957_v1 = vmul.f32 %v3613_v62, %v955_v48 }
 0xd0e   :  { %v960_v63 = vpop.permute.xlu1 %959 }
 0xd0f   :  { %v962_v0 = vmul.f32 %v3613_v62, %v960_v63 }
 0xd11   :  { %964 = vrot.lane.b32.xlu1 %v962_v0, %s3975_s4 }
 0xd15   :  { %976 = vperm.xlu1 %3574, %v164_v27  }
 0xd83   :  { %v965_v2 = vpop.permute.xlu1 %964 }
 0xd84   :  { %v967_v3 = vadd.f32 %v965_v2, %v957_v1  ;;  %v4435_v1 = vadd.f32 %v4275_v47, %v4273_v46 }
 0xd86   :  { %3614 = vtanh.f32 %v967_v3 }
 0xd90   :  { %v3615_v4 = vpop.eup %3614 }
 0xd91   :  { %970 = vrot.lane.b32.xlu1 %v3615_v4, %s3974_s0 }
 0xd94   :  { %v4371_v5 = vpop.permute.xlu1 %976 }
 0xd95   :  { %v993_v16 = vmul.f32 %v4371_v5, %v967_v3 }
 0xd97   :  { %v1002_v23 = vadd.f32 %v1000_v15, %v993_v16 }
 0xd99   :  { %v1095_v24 = vrot.slane %v1002_v23, 6 }
 0xe03   :  { %v971_v6 = vpop.permute.xlu1 %970 }
 0xe04   :  { %v973_v9 = vmul.f32 %v3613_v62, %v971_v6 }
 0xe06   :  { %v4374_v10 = vmul.f32 %v4371_v5, %v973_v9 }
 0xe08   :  { %v992_v13 = vadd.f32 %v990_v50, %v4374_v10 }
 0xe0a   :  { %1009 = vrot.lane.b32.xlu1 %v992_v13, %s3975_s4  ;;  %v1115_v14 = vrot.slane %v992_v13, 6 }
 0xe0c   :  { %1116 = vrot.lane.b32.xlu0 %v1115_v14, %s3975_s4 }
 0xe7c   :  { %v1010_v17 = vpop.permute.xlu1 %1009 }
 0xe7d   :  { %3230 = vmatmul.mubr.msk.f32.vlgmr.msra.gmra.mrb[6].mxu1 %vm348_vm2, %v1010_v17 }
 0xe7e   :  { %v1117_v21 = vpop.permute.xlu0 %1116  ;;  %3460 = vmatpush3.bf16.msra.mxu1 %v4217_v7  ;;  %3251 = vmatprep.mubr.msk.f32.mxu1 %vm3971_vm1, %v3972_v12 }
 0xe7f   :  { %v1119_v22 = vmul.f32 %v1117_v21, %v4353_v41  ;;  %3461 = vmatprep.subr.bf16.mxu1 %v3970_v8 }
 0xe81   :  { %1121 = vrot.lane.b32.xlu0 %v1119_v22, %s3976_s7 }
 0xe82   :  { %3463 = vmatpush3.bf16.msra.mxu1 %v4223_v11 }
 0xe83   :  { %3470 = vmatprep.subr.bf16.mxu1 %v3970_v8 }
 0xe85   :  { %1126 = vrot.lane.b32.xlu0 %v1095_v24, %s3976_s7 }
 0xef3   :  { %v1122_v48 = vpop.permute.xlu0 %1121 }
 0xef7   :  { %v1127_v9 = vpop.permute.xlu0 %1126 }
 0xef8   :  { %v1129_v13 = vmul.f32 %v1127_v9, %v4353_v41 }
 0xf50   :  { %v1079_v25 = vpop.f32.mrb[6].mxu1 }
 0xf51   :  { %v1084_v26 = vrot.slane %v1079_v25, 6  ;;  %v3231_v7 = vpop.f32.mrb[7].mxu1 }
 0xf53   :  { %v1086_v27 = vadd.f32 %v1084_v26, %v4243_v18 }
 0xf55   :  { %3616 = vtanh.f32 %v1086_v27  ;;  %v1087_v28 = vsub.f32 0.0, %v1086_v27 }
 0xf57   :  { %v1088_v29 = vmul.f32 1.442695, %v1087_v28 }
 0xf59   :  { %3618 = vpow2.f32 %v1088_v29 }
 0xf5f   :  { %v3617_v20 = vpop.eup %3616 }
 0xf60   :  { %1099 = vrot.lane.b32.xlu1 %v3617_v20, %s3974_s0 }
 0xf63   :  { %v3619_v30 = vpop.eup %3618 }
 0xf64   :  { %v1090_v31 = vadd.f32 1.0, %v3619_v30 }
 0xf66   :  { %3620 = vrcp.f32 %v1090_v31 }
 0xf70   :  { %v3621_v11 = vpop.eup %3620 }
 0xf71   :  { %v1097_v35 = vmul.f32 %v3621_v11, %v1095_v24 }
 0xfd2   :  { %v1100_v32 = vpop.permute.xlu1 %1099 }
 0xfd3   :  { %v1102_v33 = vmul.f32 %v3621_v11, %v1100_v32 }
 0xfd5   :  { %1104 = vrot.lane.b32.xlu1 %v1102_v33, %s3975_s4 }
0x1047   :  { %v1105_v36 = vpop.permute.xlu1 %1104 }
0x1048   :  { %v4393_v37 = vadd.f32 %v1105_v36, %v1097_v35 }
0x104a   :  { %3622 = vtanh.f32 %v4393_v37  ;;  %v1125_v30 = vmul.f32 %v4393_v37, %v4371_v5 }
0x1054   :  { %v3623_v38 = vpop.eup %3622 }
0x1055   :  { %1110 = vrot.lane.b32.xlu1 %v3623_v38, %s3974_s0 }
0x10c7   :  { %v1111_v42 = vpop.permute.xlu1 %1110 }
0x10c8   :  { %v1113_v44 = vmul.f32 %v3621_v11, %v1111_v42 }
0x10ca   :  { %v4398_v45 = vmul.f32 %v1113_v44, %v4371_v5 }
0x10cc   :  { %v1124_v50 = vadd.f32 %v1122_v48, %v4398_v45 }
0x10ce   :  { %v1141_v51 = vrot.slane %v1124_v50, 2  ;;  %v1248_v7 = vrot.slane %v1124_v50, 6 }
0x10d0   :  { %1142 = vrot.lane.b32.xlu1 %v1141_v51, %s3975_s4 }
0x1142   :  { %v1143_v57 = vpop.permute.xlu1 %1142 }
0x1143   :  { %3241 = vmatmul.mubr.msk.f32.vlgmr.msra.gmra.mrb[8].mxu0 %vm348_vm2, %v1143_v57 }
0x1144   :  { %3466 = vmatpush3.bf16.msra.mxu0 %v4408_v54  ;;  %3262 = vmatprep.mubr.msk.f32.mxu0 %vm3971_vm1, %v3972_v12 }
0x1145   :  { %3467 = vmatprep.subr.bf16.mxu0 %v3970_v8 }
0x1148   :  { %3469 = vmatpush3.bf16.msra.mxu0 %v4418_v59 }
0x1149   :  { %3476 = vmatprep.subr.bf16.mxu0 %v3970_v8 }
0x114b   :  { %3263 = vmatmul.mubr.f32.vlgmr.msra.gmra.mrb[10].mxu0 %v3972_v12 }
0x114c   :  { %3478 = vmatpush3.bf16.msra.mxu0 %v4408_v54  ;;  %3284 = vmatprep.mubr.msk.f32.mxu0 %vm3971_vm1, %v3972_v12 }
0x114d   :  { %3479 = vmatprep.subr.bf16.mxu0 %v3970_v8 }
0x1150   :  { %3481 = vmatpush3.bf16.msra.mxu0 %v4418_v59 }
0x1151   :  { %3488 = vmatprep.subr.bf16.mxu0 %v3970_v8 }
0x1216   :  { %v1212_v60 = vpop.f32.mrb[8].mxu0 }
0x1217   :  { %v1217_v61 = vrot.slane %v1212_v60, 4  ;;  %v3242_v62 = vpop.f32.mrb[9].mxu0 }
0x1218   :  { %v1505_v62 = vmul.f32 0.0, %v4353_v41 }
0x1219   :  { %v1219_v63 = vadd.f32 %v1217_v61, %v4243_v18 }
0x121b   :  { %3624 = vtanh.f32 %v1219_v63  ;;  %v1220_v15 = vsub.f32 0.0, %v1219_v63 }
0x121d   :  { %v1221_v16 = vmul.f32 1.442695, %v1220_v15 }
0x121e   :  { %v1472_v0 = vpop.f32.mrb[10].mxu0 }
0x121f   :  { %v1477_v2 = vrot.slane %v1472_v0, 2  ;;  %v3264_v3 = vpop.f32.mrb[11].mxu0 }
0x1221   :  { %v1479_v4 = vadd.f32 %v1477_v2, %v4435_v1 }
0x1223   :  { %3626 = vtanh.f32 %v1479_v4  ;;  %v1480_v46 = vsub.f32 0.0, %v1479_v4 }
0x1224   :  { %3628 = vpow2.f32 %v1221_v16 }
0x1225   :  { %v3625_v6 = vpop.eup %3624  ;;  %v1481_v47 = vmul.f32 1.442695, %v1480_v46 }
0x1226   :  { %1232 = vrot.lane.b32.xlu1 %v3625_v6, %s3974_s0 }
0x1227   :  { %3630 = vpow2.f32 %v1481_v47 }
0x122a   :  { %1131 = vrot.lane.b32.xlu1 %v1129_v13, %s3975_s4 }
0x122d   :  { %v3627_v14 = vpop.eup %3626 }
0x122e   :  { %1489 = vrot.lane.b32.xlu0 %v3627_v14, %s3974_s0  ;;  %v3629_v17 = vpop.eup %3628 }
0x122f   :  { %v1223_v21 = vadd.f32 1.0, %v3629_v17 }
0x1231   :  { %3632 = vrcp.f32 %v1223_v21  ;;  %v3631_v22 = vpop.eup %3630 }
0x1232   :  { %v1483_v23 = vadd.f32 1.0, %v3631_v22 }
0x1234   :  { %3634 = vrcp.f32 %v1483_v23 }
0x123b   :  { %v3633_v24 = vpop.eup %3632 }
0x123e   :  { %v3635_v27 = vpop.eup %3634 }
0x123f   :  { %v1487_v42 = vmul.f32 0.0, %v3635_v27 }
0x1298   :  { %v1233_v25 = vpop.permute.xlu1 %1232 }
0x1299   :  { %v1235_v26 = vmul.f32 %v3633_v24, %v1233_v25 }
0x129b   :  { %1237 = vrot.lane.b32.xlu0 %v1235_v26, %s3975_s4 }
0x129c   :  { %v1132_v29 = vpop.permute.xlu1 %1131 }
0x129d   :  { %v4447_v31 = vadd.f32 %v1132_v29, %v1125_v30 }
0x129f   :  { %1249 = vrot.lane.b32.xlu0 %v1248_v7, %s3975_s4  ;;  %v1228_v11 = vrot.slane %v4447_v31, 6 }
0x12a0   :  { %v1490_v20 = vpop.permute.xlu0 %1489 }
0x12a1   :  { %v1492_v28 = vmul.f32 %v3635_v27, %v1490_v20  ;;  %v1230_v32 = vmul.f32 %v3633_v24, %v1228_v11 }
0x12a3   :  { %1494 = vrot.lane.b32.xlu1 %v1492_v28, %s3975_s4 }
0x130d   :  { %v1238_v33 = vpop.permute.xlu0 %1237 }
0x130e   :  { %v4452_v35 = vadd.f32 %v1238_v33, %v1230_v32 }
0x1310   :  { %3636 = vtanh.f32 %v4452_v35 }
0x1311   :  { %v1250_v36 = vpop.permute.xlu0 %1249 }
0x1312   :  { %v1252_v38 = vmul.f32 %v1250_v36, %v4353_v41 }
0x1314   :  { %1254 = vrot.lane.b32.xlu0 %v1252_v38, %s3976_s7 }
0x1315   :  { %v1495_v44 = vpop.permute.xlu1 %1494 }
0x1316   :  { %v1497_v37 = vadd.f32 %v1495_v44, %v1487_v42 }
0x1318   :  { %3638 = vtanh.f32 %v1497_v37  ;;  %v1507_v26 = vmul.f32 %v1497_v37, %v4371_v5 }
0x131a   :  { %v3637_v48 = vpop.eup %3636  ;;  %v1508_v28 = vadd.f32 %v1507_v26, %v1505_v62 }
0x131b   :  { %1243 = vrot.lane.b32.xlu1 %v3637_v48, %s3974_s0 }
0x131c   :  { %v1602_v29 = vrot.slane %v1508_v28, 2 }
0x1322   :  { %v3639_v50 = vpop.eup %3638 }
0x1323   :  { %1500 = vrot.lane.b32.xlu1 %v3639_v50, %s3974_s0 }
0x1386   :  { %v1255_v55 = vpop.permute.xlu0 %1254 }
0x138d   :  { %v1244_v51 = vpop.permute.xlu1 %1243 }
0x138e   :  { %v1246_v52 = vmul.f32 %v3633_v24, %v1244_v51 }
0x1390   :  { %v4460_v53 = vmul.f32 %v1246_v52, %v4371_v5 }
0x1392   :  { %v4463_v56 = vadd.f32 %v1255_v55, %v4460_v53 }
0x1394   :  { %v1274_v57 = vrot.slane %v4463_v56, 4 }
0x1395   :  { %v1501_v60 = vpop.permute.xlu1 %1500 }
0x1396   :  { %v1503_v61 = vmul.f32 %v3635_v27, %v1501_v60  ;;  %1275 = vrot.lane.b32.xlu0 %v1274_v57, %s3975_s4 }
0x1398   :  { %v4469_v63 = vmul.f32 %v1503_v61, %v4371_v5 }
0x139a   :  { %v1506_v0 = vadd.f32 %v1505_v62, %v4469_v63 }
0x139c   :  { %v1515_v2 = vrot.slane %v1506_v0, 6  ;;  %v1622_v47 = vrot.slane %v1506_v0, 2 }
0x139e   :  { %1516 = vrot.lane.b32.xlu1 %v1515_v2, %s3975_s4 }
0x1408   :  { %v1276_v3 = vpop.permute.xlu0 %1275 }
0x1409   :  { %3252 = vmatmul.mubr.msk.f32.vlgmr.msra.gmra.mrb[8].mxu1 %vm348_vm2, %v1276_v3 }
0x140a   :  { %3472 = vmatpush3.bf16.msra.mxu1 %v4408_v54  ;;  %3273 = vmatprep.mubr.msk.f32.mxu1 %vm3971_vm1, %v3972_v12 }
0x140b   :  { %3473 = vmatprep.subr.bf16.mxu1 %v3970_v8 }
0x140e   :  { %3475 = vmatpush3.bf16.msra.mxu1 %v4418_v59 }
0x140f   :  { %3482 = vmatprep.subr.bf16.mxu1 %v3970_v8 }
0x1410   :  { %v1517_v4 = vpop.permute.xlu1 %1516 }
0x1411   :  { %3274 = vmatmul.mubr.msk.f32.vlgmr.msra.gmra.mrb[10].mxu1 %vm348_vm2, %v1517_v4 }
0x1412   :  { %3484 = vmatpush3.bf16.msra.mxu1 %v4408_v54  ;;  %3295 = vmatprep.mubr.msk.f32.mxu1 %vm3971_vm1, %v3972_v12 }
0x1413   :  { %3485 = vmatprep.subr.bf16.mxu1 %v3970_v8 }
0x1416   :  { %3487 = vmatpush3.bf16.msra.mxu1 %v4418_v59 }
0x1417   :  { %3494 = vmatprep.subr.bf16.mxu1 %v3970_v8 }
0x14dc   :  { %v4487_v6 = vpop.f32.mrb[8].mxu1 }
0x14dd   :  { %v3253_v9 = vpop.f32.mrb[9].mxu1 }
0x14e4   :  { %v1586_v13 = vpop.f32.mrb[10].mxu1 }
0x14e5   :  { %v1591_v14 = vrot.slane %v1586_v13, 4  ;;  %v3275_v15 = vpop.f32.mrb[11].mxu1 }
0x14e7   :  { %v1593_v16 = vadd.f32 %v1591_v14, %v4435_v1 }
0x14e9   :  { %3640 = vtanh.f32 %v1593_v16  ;;  %v1594_v17 = vsub.f32 0.0, %v1593_v16 }
0x14eb   :  { %v1595_v21 = vmul.f32 1.442695, %v1594_v17 }
0x14ed   :  { %3642 = vpow2.f32 %v1595_v21 }
0x14f3   :  { %v3641_v46 = vpop.eup %3640 }
0x14f4   :  { %1606 = vrot.lane.b32.xlu0 %v3641_v46, %s3974_s0 }
0x14f7   :  { %v3643_v22 = vpop.eup %3642 }
0x14f8   :  { %1623 = vrot.lane.b32.xlu0 %v1622_v47, %s3975_s4  ;;  %v1597_v23 = vadd.f32 1.0, %v3643_v22 }
0x14fa   :  { %3644 = vrcp.f32 %v1597_v23 }
0x1504   :  { %v3645_v24 = vpop.eup %3644 }
0x1505   :  { %v1604_v30 = vmul.f32 %v3645_v24, %v1602_v29 }
0x1566   :  { %v1607_v25 = vpop.permute.xlu0 %1606 }
0x1567   :  { %v1609_v7 = vmul.f32 %v3645_v24, %v1607_v25 }
0x1569   :  { %1611 = vrot.lane.b32.xlu1 %v1609_v7, %s3975_s4 }
0x156a   :  { %v1624_v27 = vpop.permute.xlu0 %1623 }
0x156b   :  { %v1626_v20 = vmul.f32 %v1624_v27, %v4353_v41 }
0x156d   :  { %1628 = vrot.lane.b32.xlu0 %v1626_v20, %s3976_s7 }
0x1571   :  { %1633 = vrot.lane.b32.xlu0 %v1602_v29, %s3976_s7 }
0x15db   :  { %v1612_v32 = vpop.permute.xlu1 %1611 }
0x15dc   :  { %v1614_v33 = vadd.f32 %v1612_v32, %v1604_v30 }
0x15de   :  { %3646 = vtanh.f32 %v1614_v33  ;;  %v1632_v60 = vmul.f32 %v1614_v33, %v4371_v5 }
0x15df   :  { %v1629_v36 = vpop.permute.xlu0 %1628 }
0x15e3   :  { %v1634_v38 = vpop.permute.xlu0 %1633 }
0x15e4   :  { %v1636_v42 = vmul.f32 %v1634_v38, %v4353_v41 }
0x15e6   :  { %1638 = vrot.lane.b32.xlu0 %v1636_v42, %s3975_s4 }
0x15e8   :  { %v3647_v44 = vpop.eup %3646 }
0x15e9   :  { %1617 = vrot.lane.b32.xlu1 %v3647_v44, %s3974_s0 }
0x1658   :  { %v1639_v57 = vpop.permute.xlu0 %1638 }
0x1659   :  { %v1641_v0 = vadd.f32 %v1639_v57, %v1632_v60 }
0x165b   :  { %v1618_v37 = vpop.permute.xlu1 %1617  ;;  %v1735_v3 = vrot.slane %v1641_v0, 2 }
0x165c   :  { %v1620_v48 = vmul.f32 %v3645_v24, %v1618_v37 }
0x165e   :  { %v4501_v50 = vmul.f32 %v1620_v48, %v4371_v5 }
0x1660   :  { %v1631_v51 = vadd.f32 %v1629_v36, %v4501_v50 }
0x1662   :  { %v1755_v52 = vrot.slane %v1631_v51, 2  ;;  %v1648_v55 = vrot.slane %v1631_v51, 4 }
0x1664   :  { %1756 = vrot.lane.b32.xlu0 %v1755_v52, %s3975_s4  ;;  %1649 = vrot.lane.b32.xlu1 %v1648_v55, %s3975_s4 }
0x16d6   :  { %v1757_v61 = vpop.permute.xlu0 %1756  ;;  %v1650_v62 = vpop.permute.xlu1 %1649 }
0x16d7   :  { %v1759_v2 = vmul.f32 %v1757_v61, %v4353_v41  ;;  %3285 = vmatmul.mubr.msk.f32.vlgmr.msra.gmra.mrb[12].mxu0 %vm348_vm2, %v1650_v62 }
0x16d8   :  { %3490 = vmatpush3.bf16.msra.mxu0 %v4408_v54  ;;  %3306 = vmatprep.mubr.msk.f32.mxu0 %vm3971_vm1, %v3972_v12 }
0x16d9   :  { %1761 = vrot.lane.b32.xlu0 %v1759_v2, %s3976_s7  ;;  %3491 = vmatprep.subr.bf16.mxu0 %v3970_v8 }
0x16dc   :  { %3493 = vmatpush3.bf16.msra.mxu0 %v4418_v59 }
0x16dd   :  { %1766 = vrot.lane.b32.xlu0 %v1735_v3, %s3976_s7  ;;  %3500 = vmatprep.subr.bf16.mxu0 %v3970_v8 }
0x174b   :  { %v1762_v4 = vpop.permute.xlu0 %1761 }
0x174f   :  { %v1767_v9 = vpop.permute.xlu0 %1766 }
0x1750   :  { %v1769_v13 = vmul.f32 %v1767_v9, %v4353_v41 }
0x1752   :  { %1771 = vrot.lane.b32.xlu0 %v1769_v13, %s3975_s4 }
0x17aa   :  { %v1719_v14 = vpop.f32.mrb[12].mxu0 }
0x17ab   :  { %v1724_v15 = vrot.slane %v1719_v14, 6  ;;  %v3286_v16 = vpop.f32.mrb[13].mxu0 }
0x17ad   :  { %v1726_v46 = vadd.f32 %v1724_v15, %v4435_v1 }
0x17af   :  { %3648 = vtanh.f32 %v1726_v46  ;;  %v1727_v17 = vsub.f32 0.0, %v1726_v46 }
0x17b1   :  { %v1728_v21 = vmul.f32 1.442695, %v1727_v17 }
0x17b3   :  { %3650 = vpow2.f32 %v1728_v21 }
0x17b9   :  { %v3649_v47 = vpop.eup %3648 }
0x17ba   :  { %1739 = vrot.lane.b32.xlu1 %v3649_v47, %s3974_s0 }
0x17bd   :  { %v3651_v22 = vpop.eup %3650 }
0x17be   :  { %v1730_v23 = vadd.f32 1.0, %v3651_v22 }
0x17c0   :  { %3652 = vrcp.f32 %v1730_v23 }
0x17c4   :  { %v1772_v2 = vpop.permute.xlu0 %1771 }
0x17ca   :  { %v3653_v24 = vpop.eup %3652 }
0x17cb   :  { %v1737_v7 = vmul.f32 %v3653_v24, %v1735_v3 }
0x182c   :  { %v1740_v25 = vpop.permute.xlu1 %1739 }
0x182d   :  { %v1742_v26 = vmul.f32 %v3653_v24, %v1740_v25 }
0x182f   :  { %1744 = vrot.lane.b32.xlu1 %v1742_v26, %s3975_s4 }
0x18a1   :  { %v1745_v27 = vpop.permute.xlu1 %1744 }
0x18a2   :  { %v1747_v20 = vadd.f32 %v1745_v27, %v1737_v7 }
0x18a4   :  { %3654 = vtanh.f32 %v1747_v20  ;;  %v1765_v62 = vmul.f32 %v1747_v20, %v4371_v5 }
0x18a6   :  { %v1774_v3 = vadd.f32 %v1772_v2, %v1765_v62 }
0x18ae   :  { %v3655_v28 = vpop.eup %3654 }
0x18af   :  { %1750 = vrot.lane.b32.xlu1 %v3655_v28, %s3974_s0 }
0x1921   :  { %v1751_v29 = vpop.permute.xlu1 %1750 }
0x1922   :  { %v1753_v30 = vmul.f32 %v3653_v24, %v1751_v29 }
0x1924   :  { %v4524_v32 = vmul.f32 %v1753_v30, %v4371_v5 }
0x1926   :  { %v1764_v33 = vadd.f32 %v1762_v4, %v4524_v32  ;;  %v1865_v4 = vrot.slane %v1774_v3, 2 }
0x1928   :  { %v1781_v36 = vrot.slane %v1764_v33, 2 }
0x192a   :  { %1782 = vrot.lane.b32.xlu1 %v1781_v36, %s3975_s4 }
0x199c   :  { %v1783_v38 = vpop.permute.xlu1 %1782 }
0x199d   :  { %3296 = vmatmul.mubr.msk.f32.vlgmr.msra.gmra.mrb[12].mxu1 %vm348_vm2, %v1783_v38 }
0x199e   :  { %3496 = vmatpush3.bf16.msra.mxu1 %v4408_v54  ;;  %3317 = vmatprep.mubr.msk.f32.mxu1 %vm3971_vm1, %v3972_v12 }
0x199f   :  { %3497 = vmatprep.subr.bf16.mxu1 %v3970_v8 }
0x19a2   :  { %3499 = vmatpush3.bf16.msra.mxu1 %v4418_v59 }
0x19a3   :  { %3506 = vmatprep.subr.bf16.mxu1 %v3970_v8 }
0x1a70   :  { %v1852_v42 = vpop.f32.mrb[12].mxu1 }
0x1a71   :  { %v1856_v44 = vadd.f32 %v1852_v42, %v4435_v1  ;;  %v3297_v37 = vpop.f32.mrb[13].mxu1  ;;  %v1886_v1 = vmul.f32 %v1783_v38, %v4353_v41 }
0x1a73   :  { %3656 = vtanh.f32 %v1856_v44  ;;  %v1857_v51 = vsub.f32 0.0, %v1856_v44 }
0x1a75   :  { %v1858_v52 = vmul.f32 1.442695, %v1857_v51 }
0x1a77   :  { %3658 = vpow2.f32 %v1858_v52 }
0x1a7d   :  { %v3657_v48 = vpop.eup %3656 }
0x1a7e   :  { %1869 = vrot.lane.b32.xlu1 %v3657_v48, %s3974_s0 }
0x1a81   :  { %v3659_v55 = vpop.eup %3658 }
0x1a82   :  { %v1860_v57 = vadd.f32 1.0, %v3659_v55 }
0x1a84   :  { %3660 = vrcp.f32 %v1860_v57 }
0x1a8e   :  { %v3661_v60 = vpop.eup %3660 }
0x1a8f   :  { %v1867_v9 = vmul.f32 %v3661_v60, %v1865_v4 }
0x1af0   :  { %v1870_v61 = vpop.permute.xlu1 %1869 }
0x1af1   :  { %v1872_v0 = vmul.f32 %v3661_v60, %v1870_v61 }
0x1af3   :  { %1874 = vrot.lane.b32.xlu1 %v1872_v0, %s3975_s4 }
0x1af7   :  { %1888 = vrot.lane.b32.xlu1 %v1886_v1, %s3976_s7 }
0x1afb   :  { %1893 = vrot.lane.b32.xlu1 %v1865_v4, %s3976_s7 }
0x1b65   :  { %v1875_v13 = vpop.permute.xlu1 %1874 }
0x1b66   :  { %v1877_v14 = vadd.f32 %v1875_v13, %v1867_v9 }
0x1b68   :  { %3662 = vtanh.f32 %v1877_v14  ;;  %v1892_v7 = vmul.f32 %v1877_v14, %v4371_v5 }
0x1b69   :  { %v1889_v15 = vpop.permute.xlu1 %1888 }
0x1b6d   :  { %v1894_v16 = vpop.permute.xlu1 %1893 }
0x1b6e   :  { %v1896_v46 = vmul.f32 %v1894_v16, %v4353_v41 }
0x1b70   :  { %1898 = vrot.lane.b32.xlu1 %v1896_v46, %s3975_s4 }
0x1b72   :  { %v3663_v47 = vpop.eup %3662 }
0x1b73   :  { %1880 = vrot.lane.b32.xlu0 %v3663_v47, %s3974_s0 }
0x1be2   :  { %v1899_v25 = vpop.permute.xlu1 %1898 }
0x1be3   :  { %v1901_v20 = vadd.f32 %v1899_v25, %v1892_v7 }
0x1be5   :  { %v1881_v17 = vpop.permute.xlu0 %1880  ;;  %v1994_v29 = vrot.slane %v1901_v20, 2 }
0x1be6   :  { %v1883_v21 = vmul.f32 %v3661_v60, %v1881_v17 }
0x1be8   :  { %v4546_v22 = vmul.f32 %v1883_v21, %v4371_v5 }
0x1bea   :  { %v1891_v23 = vadd.f32 %v1889_v15, %v4546_v22 }
0x1bec   :  { %1908 = vrot.lane.b32.xlu0 %v1891_v23, %s3975_s4  ;;  %v2014_v24 = vrot.slane %v1891_v23, 2 }
0x1bee   :  { %2015 = vrot.lane.b32.xlu1 %v2014_v24, %s3975_s4 }
0x1c5e   :  { %v1909_v26 = vpop.permute.xlu0 %1908 }
0x1c5f   :  { %3307 = vmatmul.mubr.msk.f32.vlgmr.msra.gmra.mrb[14].mxu0 %vm348_vm2, %v1909_v26 }
0x1c60   :  { %v2016_v27 = vpop.permute.xlu1 %2015  ;;  %3502 = vmatpush3.bf16.msra.mxu0 %v4408_v54  ;;  %3328 = vmatprep.mubr.msk.f32.mxu0 %vm3971_vm1, %v3972_v12 }
0x1c61   :  { %v2018_v28 = vmul.f32 %v2016_v27, %v4262_v40  ;;  %3503 = vmatprep.subr.bf16.mxu0 %v3970_v8 }
0x1c63   :  { %2020 = vrot.lane.b32.xlu1 %v2018_v28, %s3976_s7 }
0x1c64   :  { %3505 = vmatpush3.bf16.msra.mxu0 %v4418_v59 }
0x1c67   :  { %2025 = vrot.lane.b32.xlu1 %v1994_v29, %s3976_s7 }
0x1cd5   :  { %v2021_v30 = vpop.permute.xlu1 %2020 }
0x1cd9   :  { %v2026_v33 = vpop.permute.xlu1 %2025 }
0x1cda   :  { %v2028_v36 = vmul.f32 %v2026_v33, %v4262_v40 }
0x1cdc   :  { %2030 = vrot.lane.b32.xlu1 %v2028_v36, %s3975_s4 }
0x1d32   :  { %v1978_v38 = vpop.f32.mrb[14].mxu0 }
0x1d33   :  { %v1983_v42 = vrot.slane %v1978_v38, 2  ;;  %v3308_v44 = vpop.f32.mrb[15].mxu0 }
0x1d35   :  { %v1985_v37 = vadd.f32 %v1983_v42, %v4278_v49 }
0x1d37   :  { %3664 = vtanh.f32 %v1985_v37  ;;  %v1986_v51 = vsub.f32 0.0, %v1985_v37 }
0x1d39   :  { %v1987_v52 = vmul.f32 1.442695, %v1986_v51 }
0x1d3b   :  { %3666 = vpow2.f32 %v1987_v52 }
0x1d41   :  { %v3665_v48 = vpop.eup %3664 }
0x1d42   :  { %1998 = vrot.lane.b32.xlu0 %v3665_v48, %s3974_s0 }
0x1d45   :  { %v3667_v55 = vpop.eup %3666 }
0x1d46   :  { %v1989_v57 = vadd.f32 1.0, %v3667_v55 }
0x1d48   :  { %3668 = vrcp.f32 %v1989_v57 }
0x1d4e   :  { %v2031_v46 = vpop.permute.xlu1 %2030 }
0x1d52   :  { %v3669_v60 = vpop.eup %3668 }
0x1d53   :  { %v1996_v0 = vmul.f32 %v3669_v60, %v1994_v29 }
0x1db4   :  { %v1999_v61 = vpop.permute.xlu0 %1998 }
0x1db5   :  { %v2001_v62 = vmul.f32 %v3669_v60, %v1999_v61 }
0x1db7   :  { %2003 = vrot.lane.b32.xlu0 %v2001_v62, %s3975_s4 }
0x1e29   :  { %v2004_v2 = vpop.permute.xlu0 %2003 }
0x1e2a   :  { %v2006_v1 = vadd.f32 %v2004_v2, %v1996_v0 }
0x1e2c   :  { %3670 = vtanh.f32 %v2006_v1  ;;  %v2024_v47 = vmul.f32 %v2006_v1, %v4260_v39 }
0x1e2e   :  { %v2033_v24 = vadd.f32 %v2031_v46, %v2024_v47 }
0x1e30   :  { %v2127_v25 = vrot.slane %v2033_v24, 2 }
0x1e36   :  { %v3671_v3 = vpop.eup %3670 }
0x1e37   :  { %2009 = vrot.lane.b32.xlu0 %v3671_v3, %s3974_s0 }
0x1ea9   :  { %v2010_v4 = vpop.permute.xlu0 %2009 }
0x1eaa   :  { %v2012_v9 = vmul.f32 %v3669_v60, %v2010_v4 }
0x1eac   :  { %v4568_v13 = vmul.f32 %v2012_v9, %v4260_v39 }
0x1eae   :  { %v2023_v14 = vadd.f32 %v2021_v30, %v4568_v13 }
0x1eb0   :  { %v2040_v15 = vrot.slane %v2023_v14, 6  ;;  %v2147_v16 = vrot.slane %v2023_v14, 2 }
0x1eb2   :  { %2041 = vrot.lane.b32.xlu0 %v2040_v15, %s3975_s4  ;;  %2148 = vrot.lane.b32.xlu1 %v2147_v16, %s3975_s4 }
0x1f24   :  { %v2042_v17 = vpop.permute.xlu0 %2041  ;;  %v2149_v21 = vpop.permute.xlu1 %2148 }
0x1f25   :  { %v2151_v23 = vmul.f32 %v2149_v21, %v4262_v40  ;;  %3318 = vmatmul.mubr.msk.f32.vlgmr.msra.gmra.mrb[14].mxu1 %vm348_vm2, %v2042_v17 }
0x1f26   :  { %3508 = vmatpush3.bf16.msra.mxu1 %v4408_v54  ;;  %3339 = vmatprep.mubr.msk.f32.mxu1 %vm3971_vm1, %v3972_v12 }
0x1f27   :  { %2153 = vrot.lane.b32.xlu1 %v2151_v23, %s3976_s7  ;;  %3509 = vmatprep.subr.bf16.mxu1 %v3970_v8 }
0x1f2a   :  { %3511 = vmatpush3.bf16.msra.mxu1 %v4418_v59 }
0x1f2b   :  { %2158 = vrot.lane.b32.xlu1 %v2127_v25, %s3976_s7  ;;  %3528 = vmatprep.subr.bf16.mxu1 %v3970_v8 }
0x1f99   :  { %v2154_v26 = vpop.permute.xlu1 %2153 }
0x1f9d   :  { %v2159_v7 = vpop.permute.xlu1 %2158 }
0x1f9e   :  { %v2161_v27 = vmul.f32 %v2159_v7, %v4262_v40 }
0x1fa0   :  { %2163 = vrot.lane.b32.xlu1 %v2161_v27, %s3975_s4 }
0x1ff8   :  { %v2111_v54 = vpop.f32.mrb[14].mxu1 }
0x1ff9   :  { %v2116_v20 = vrot.slane %v2111_v54, 4  ;;  %v3319_v28 = vpop.f32.mrb[15].mxu1 }
0x1ffb   :  { %v2118_v29 = vadd.f32 %v2116_v20, %v4278_v49 }
0x1ffd   :  { %3672 = vtanh.f32 %v2118_v29  ;;  %v2119_v59 = vsub.f32 0.0, %v2118_v29 }
0x1fff   :  { %v2120_v33 = vmul.f32 1.442695, %v2119_v59 }
0x2001   :  { %3674 = vpow2.f32 %v2120_v33 }
0x2007   :  { %v3673_v30 = vpop.eup %3672 }
0x2008   :  { %2131 = vrot.lane.b32.xlu0 %v3673_v30, %s3974_s0  ;;  %v1350_v30 = vrot.slane %v4487_v6, 2 }
0x200b   :  { %v3675_v36 = vpop.eup %3674 }
0x200c   :  { %v2122_v38 = vadd.f32 1.0, %v3675_v36  ;;  %v1352_v36 = vadd.f32 %v1350_v30, %v4243_v18 }
0x200e   :  { %3676 = vrcp.f32 %v2122_v38  ;;  %v1353_v6 = vsub.f32 0.0, %v1352_v36 }
0x2012   :  { %v2164_v1 = vpop.permute.xlu1 %2163 }
0x2018   :  { %v3677_v42 = vpop.eup %3676 }
0x2019   :  { %v2129_v48 = vmul.f32 %v3677_v42, %v2127_v25 }
0x207a   :  { %v2132_v44 = vpop.permute.xlu0 %2131 }
0x207b   :  { %v2134_v37 = vmul.f32 %v3677_v42, %v2132_v44 }
0x207d   :  { %2136 = vrot.lane.b32.xlu0 %v2134_v37, %s3975_s4 }
0x20ef   :  { %v2137_v51 = vpop.permute.xlu0 %2136 }
0x20f0   :  { %v2139_v52 = vadd.f32 %v2137_v51, %v2129_v48  ;;  %v1354_v51 = vmul.f32 1.442695, %v1353_v6 }
0x20f2   :  { %3678 = vtanh.f32 %v2139_v52  ;;  %v2157_v31 = vmul.f32 %v2139_v52, %v4260_v39 }
0x20fc   :  { %v3679_v55 = vpop.eup %3678 }
0x20fd   :  { %2142 = vrot.lane.b32.xlu0 %v3679_v55, %s3974_s0 }
0x216f   :  { %v2143_v57 = vpop.permute.xlu0 %2142 }
0x2170   :  { %v2145_v60 = vmul.f32 %v3677_v42, %v2143_v57 }
0x2172   :  { %v4591_v61 = vmul.f32 %v2145_v60, %v4260_v39 }
0x2174   :  { %v2156_v62 = vadd.f32 %v2154_v26, %v4591_v61 }
0x2176   :  { %v2280_v0 = vrot.slane %v2156_v62, 2  ;;  %v2173_v2 = vrot.slane %v2156_v62, 4 }
0x2178   :  { %2281 = vrot.lane.b32.xlu1 %v2280_v0, %s3975_s4  ;;  %2174 = vrot.lane.b32.xlu0 %v2173_v2, %s3975_s4 }
0x21ea   :  { %v2282_v3 = vpop.permute.xlu1 %2281  ;;  %v2175_v4 = vpop.permute.xlu0 %2174 }
0x21eb   :  { %v2284_v9 = vmul.f32 %v2282_v3, %v4262_v40  ;;  %3329 = vmatmul.mubr.msk.f32.vlgmr.msra.gmra.mrb[16].mxu0 %vm348_vm2, %v2175_v4 }
0x21ed   :  { %2286 = vrot.lane.b32.xlu1 %v2284_v9, %s3976_s7 }
0x21f1   :  { %1259 = vrot.lane.b32.xlu1 %v1228_v11, %s3976_s7  ;;  %v2166_v11 = vadd.f32 %v2164_v1, %v2157_v31  ;;  %v1381_v31 = vrot.slane %v4463_v56, 6 }
0x21f3   :  { %v2260_v27 = vrot.slane %v2166_v11, 2 }
0x225f   :  { %v2287_v42 = vpop.permute.xlu1 %2286 }
0x22be   :  { %v2244_v14 = vpop.f32.mrb[16].mxu0 }
0x22bf   :  { %v2249_v15 = vrot.slane %v2244_v14, 6  ;;  %v3330_v16 = vpop.f32.mrb[17].mxu0  ;;  %v1260_v14 = vpop.permute.xlu1 %1259 }
0x22c1   :  { %v2251_v46 = vadd.f32 %v2249_v15, %v4278_v49  ;;  %v1262_v15 = vmul.f32 %v1260_v14, %v4353_v41 }
0x22c3   :  { %3680 = vtanh.f32 %v2251_v46  ;;  %v2252_v17 = vsub.f32 0.0, %v2251_v46 }
0x22c5   :  { %v2253_v21 = vmul.f32 1.442695, %v2252_v17 }
0x22c7   :  { %3682 = vpow2.f32 %v2253_v21 }
0x22cd   :  { %v3681_v47 = vpop.eup %3680 }
0x22ce   :  { %2264 = vrot.lane.b32.xlu0 %v3681_v47, %s3974_s0 }
0x22d1   :  { %v3683_v23 = vpop.eup %3682 }
0x22d2   :  { %v2255_v24 = vadd.f32 1.0, %v3683_v23 }
0x22d4   :  { %3684 = vrcp.f32 %v2255_v24 }
0x22de   :  { %v3685_v25 = vpop.eup %3684 }
0x22df   :  { %v2262_v54 = vmul.f32 %v3685_v25, %v2260_v27 }
0x2340   :  { %v2265_v26 = vpop.permute.xlu0 %2264 }
0x2341   :  { %v2267_v7 = vmul.f32 %v3685_v25, %v2265_v26  ;;  %v1258_v26 = vmul.f32 %v4452_v35, %v4371_v5 }
0x2343   :  { %2269 = vrot.lane.b32.xlu0 %v2267_v7, %s3975_s4 }
0x23b5   :  { %v2270_v20 = vpop.permute.xlu0 %2269 }
0x23b6   :  { %v2272_v28 = vadd.f32 %v2270_v20, %v2262_v54 }
0x23b8   :  { %3686 = vtanh.f32 %v2272_v28 }
0x23b9   :  { %3688 = vtanh.f32 %v1352_v36 }
0x23ba   :  { %3690 = vpow2.f32 %v1354_v51 }
0x23c2   :  { %v3687_v29 = vpop.eup %3686 }
0x23c3   :  { %2275 = vrot.lane.b32.xlu0 %v3687_v29, %s3974_s0  ;;  %v3689_v48 = vpop.eup %3688 }
0x23c4   :  { %v3691_v52 = vpop.eup %3690 }
0x23c5   :  { %v1356_v18 = vadd.f32 1.0, %v3691_v52 }
0x23c7   :  { %3692 = vrcp.f32 %v1356_v18  ;;  %v2442_v18 = vld [vmem:[#allocation13 + $0x10] sm:$0xff] }
0x23d1   :  { %v4621_v62 = vpop.eup %3692 }
0x2435   :  { %v2276_v59 = vpop.permute.xlu0 %2275 }
0x2436   :  { %v2278_v33 = vmul.f32 %v3685_v25, %v2276_v59  ;;  %v2290_v25 = vmul.f32 %v2272_v28, %v4260_v39 }
0x2438   :  { %v4610_v38 = vmul.f32 %v2278_v33, %v4260_v39 }
0x243a   :  { %v2289_v44 = vadd.f32 %v2287_v42, %v4610_v38 }
0x243c   :  { %v2306_v37 = vrot.slane %v2289_v44, 2 }
0x243e   :  { %2307 = vrot.lane.b32.xlu0 %v2306_v37, %s3975_s4 }
0x2442   :  { %2291 = vrot.lane.b32.xlu0 %v2260_v27, %s3976_s7 }
0x2446   :  { %1365 = vrot.lane.b32.xlu0 %v3689_v48, %s3974_s0 }
0x24b0   :  { %v2308_v55 = vpop.permute.xlu0 %2307 }
0x24b1   :  { %3340 = vmatmul.mubr.msk.f32.vlgmr.msra.gmra.mrb[16].mxu1 %vm348_vm2, %v2308_v55  ;;  %v2411_v6 = vmul.f32 %v2308_v55, %v4262_v40  ;;  %v2443_v55 = vld [vmem:[#allocation13 + $0x18] sm:$0xff] }
0x24b2   :  { %3372 = vmatprep.mubr.msk.f32.mxu1 %vm3971_vm1, %v3972_v12 }
0x24b4   :  { %v2292_v57 = vpop.permute.xlu0 %2291 }
0x24b5   :  { %v2294_v60 = vmul.f32 %v2292_v57, %v4262_v40 }
0x24b7   :  { %2296 = vrot.lane.b32.xlu0 %v2294_v60, %s3975_s4 }
0x24b8   :  { %v1366_v0 = vpop.permute.xlu0 %1365 }
0x24b9   :  { %v1368_v2 = vmul.f32 %v4621_v62, %v1366_v0  ;;  %v2434_v0 = vld [vmem:[#allocation12] sm:$0xff] }
0x24bb   :  { %1370 = vrot.lane.b32.xlu0 %v1368_v2, %s3975_s4 }
0x2529   :  { %v2297_v24 = vpop.permute.xlu0 %2296 }
0x252a   :  { %v2299_v11 = vadd.f32 %v2297_v24, %v2290_v25 }
0x252c   :  { %v2390_v20 = vrot.slane %v2299_v11, 2 }
0x252d   :  { %v1371_v30 = vpop.permute.xlu0 %1370 }
0x2584   :  { %v2377_v1 = vpop.f32.mrb[16].mxu1 }
0x2585   :  { %v2381_v3 = vadd.f32 %v2377_v1, %v4278_v49  ;;  %v3341_v4 = vpop.f32.mrb[17].mxu1 }
0x2587   :  { %3694 = vtanh.f32 %v2381_v3  ;;  %v2382_v16 = vsub.f32 0.0, %v2381_v3 }
0x2589   :  { %v2383_v46 = vmul.f32 1.442695, %v2382_v16 }
0x258b   :  { %3696 = vpow2.f32 %v2383_v46 }
0x2591   :  { %v3695_v9 = vpop.eup %3694 }
0x2592   :  { %2394 = vrot.lane.b32.xlu1 %v3695_v9, %s3974_s0 }
0x2595   :  { %v3697_v47 = vpop.eup %3696 }
0x2596   :  { %1264 = vrot.lane.b32.xlu1 %v1262_v15, %s3975_s4  ;;  %v2385_v17 = vadd.f32 1.0, %v3697_v47 }
0x2598   :  { %3698 = vrcp.f32 %v2385_v17 }
0x25a2   :  { %v4629_v21 = vpop.eup %3698 }
0x25a3   :  { %v2392_v56 = vmul.f32 %v4629_v21, %v2390_v20 }
0x2604   :  { %v2395_v23 = vpop.permute.xlu1 %2394 }
0x2605   :  { %v2397_v49 = vmul.f32 %v4629_v21, %v2395_v23 }
0x2607   :  { %2399 = vrot.lane.b32.xlu1 %v2397_v49, %s3975_s4 }
0x2608   :  { %v1265_v7 = vpop.permute.xlu1 %1264 }
0x2609   :  { %v1267_v27 = vadd.f32 %v1265_v7, %v1258_v26 }
0x260b   :  { %v1361_v54 = vrot.slane %v1267_v27, 6  ;;  %1382 = vrot.lane.b32.xlu1 %v1381_v31, %s3975_s4 }
0x260d   :  { %v1363_v29 = vmul.f32 %v4621_v62, %v1361_v54  ;;  %1392 = vrot.lane.b32.xlu0 %v1361_v54, %s3976_s7  ;;  %v2617_v54 = vld [vmem:[#allocation15] sm:$0xff] }
0x260f   :  { %v4640_v28 = vadd.f32 %v1371_v30, %v1363_v29  ;;  %2418 = vrot.lane.b32.xlu1 %v2390_v20, %s3976_s7  ;;  %v2618_v20 = vld [vmem:[#allocation15 + $0x8] sm:$0xff] }
0x2610   :  { %v3535_v30 = vpack.c.bf16 %v2618_v20, %v2617_v54 }
0x2611   :  { %3700 = vtanh.f32 %v4640_v28 }
0x261b   :  { %v3701_v35 = vpop.eup %3700 }
0x261c   :  { %1376 = vrot.lane.b32.xlu1 %v3701_v35, %s3974_s0  ;;  %v2620_v35 = vld [vmem:[#allocation15 + $0x18] sm:$0xff] }
0x2679   :  { %v2400_v59 = vpop.permute.xlu1 %2399 }
0x267a   :  { %v4646_v33 = vadd.f32 %v2400_v59, %v2392_v56 }
0x267c   :  { %3702 = vtanh.f32 %v4646_v33  ;;  %v2417_v15 = vmul.f32 %v4646_v33, %v4260_v39 }
0x267d   :  { %v1383_v36 = vpop.permute.xlu1 %1382 }
0x267e   :  { %v1385_v42 = vmul.f32 %v1383_v36, %v4353_v41  ;;  %v2436_v36 = vld [vmem:[#allocation12 + $0x10] sm:$0xff] }
0x267f   :  { %v1393_v51 = vpop.permute.xlu0 %1392 }
0x2680   :  { %1387 = vrot.lane.b32.xlu1 %v1385_v42, %s3976_s7  ;;  %v1395_v52 = vmul.f32 %v1393_v51, %v4353_v41  ;;  %v2622_v41 = vld [vmem:[#allocation16 + $0x8] sm:$0xff]  ;;  %v2437_v42 = vld [vmem:[#allocation12 + $0x18] sm:$0xff] }
0x2681   :  { %v2419_v44 = vpop.permute.xlu1 %2418 }
0x2682   :  { %v2421_v37 = vmul.f32 %v2419_v44, %v4262_v40  ;;  %v2621_v40 = vld [vmem:[#allocation16] sm:$0xff] }
0x2684   :  { %2423 = vrot.lane.b32.xlu1 %v2421_v37, %s3975_s4 }
0x2686   :  { %v3703_v48 = vpop.eup %3702 }
0x2687   :  { %2405 = vrot.lane.b32.xlu0 %v3703_v48, %s3974_s0  ;;  %v3524_v48 = vpack.c.bf16 %v2437_v42, %v2436_v36 }
0x2688   :  { %2168 = vrot.lane.b32.xlu1 %v4591_v61, %s3975_s4 }
0x268b   :  { %2413 = vrot.lane.b32.xlu0 %v2411_v6, %s3976_s7 }
0x268c   :  { %1643 = vrot.lane.b32.xlu1 %v4501_v50, %s3975_s4  ;;  %v2623_v50 = vld [vmem:[#allocation16 + $0x10] sm:$0xff] }
0x268f   :  { %1397 = vrot.lane.b32.xlu0 %v1395_v52, %s3975_s4 }
0x2690   :  { %1903 = vrot.lane.b32.xlu1 %v4546_v22, %s3975_s4  ;;  %v4676_v22 = vpack.c.bf16 %v2622_v41, %v2621_v40 }
0x2692   :  { %3530 = vmatpush3.bf16.msra.mxu1 %v4676_v22 }
0x2693   :  { %2035 = vrot.lane.b32.xlu0 %v4568_v13, %s3975_s4  ;;  %v2624_v13 = vld [vmem:[#allocation16 + $0x18] sm:$0xff]  ;;  %3531 = vmatprep.subr.bf16.mxu1 %v3970_v8 }
0x2694   :  { %597 = vrot.lane.b32.xlu1 %v4299_v19, %s3975_s4  ;;  %v4679_v19 = vpack.c.bf16 %v2624_v13, %v2623_v50 }
0x2696   :  { %3533 = vmatpush3.bf16.msra.mxu1 %v4679_v19 }
0x2697   :  { %2301 = vrot.lane.b32.xlu0 %v4610_v38, %s3975_s4  ;;  %3534 = vmatprep.subr.bf16.mxu1 %v3970_v8 }
0x269b   :  { %1510 = vrot.lane.b32.xlu0 %v4469_v63, %s3975_s4  ;;  %v2440_v63 = vld [vmem:[#allocation13] sm:$0xff] }
0x269f   :  { %1776 = vrot.lane.b32.xlu0 %v4524_v32, %s3975_s4  ;;  %v2441_v32 = vld [vmem:[#allocation13 + $0x8] sm:$0xff] }
0x26a0   :  { %v3512_v61 = vpack.c.bf16 %v2441_v32, %v2440_v63 }
0x26a2   :  { %3513 = vmatprep.subr.bf16.mxu0 %v3512_v61 }
0x26a3   :  { %464 = vrot.lane.b32.xlu0 %v4265_v43, %s3975_s4  ;;  %v1377_v43 = vpop.permute.xlu1 %1376  ;;  %3515 = vmatpush3.bf16.msra.mxu0 %v3512_v61 }
0x26a4   :  { %v1379_v46 = vmul.f32 %v4621_v62, %v1377_v43 }
0x26a7   :  { %731 = vrot.lane.b32.xlu0 %v4322_v58, %s3975_s4  ;;  %v3516_v58 = vpack.c.bf16 %v2443_v55, %v2442_v18 }
0x26a9   :  { %3517 = vmatprep.subr.bf16.mxu0 %v3516_v58 }
0x26aa   :  { %3519 = vmatpush3.bf16.msra.mxu0 %v3516_v58 }
0x26ab   :  { %1004 = vrot.lane.b32.xlu0 %v4374_v10, %s3975_s4  ;;  %v2435_v10 = vld [vmem:[#allocation12 + $0x8] sm:$0xff] }
0x26ac   :  { %v4691_v1 = vpack.c.bf16 %v2435_v10, %v2434_v0 }
0x26ae   :  { %3521 = vmatprep.subr.bf16.mxu0 %v4691_v1 }
0x26af   :  { %1269 = vrot.lane.b32.xlu0 %v4460_v53, %s3975_s4 }
0x26f2   :  { %v1388_v38 = vpop.permute.xlu1 %1387 }
0x26f6   :  { %v2424_v57 = vpop.permute.xlu1 %2423 }
0x26f7   :  { %v2426_v47 = vadd.f32 %v2424_v57, %v2417_v15 }
0x26f9   :  { %v2406_v60 = vpop.permute.xlu0 %2405 }
0x26fa   :  { %v2408_v2 = vmul.f32 %v4629_v21, %v2406_v60  ;;  %v2169_v53 = vpop.permute.xlu1 %2168 }
0x26fb   :  { %2171 = vst.msk [vmem:[#allocation3] sm:$0x30] %vm734_vm3, %v2169_v53 }
0x26fc   :  { %v2409_v3 = vmul.f32 %v2408_v2, %v4260_v39  ;;  %v1380_v39 = vmul.f32 %v1379_v46, %v4371_v5 }
0x26fd   :  { %v2414_v4 = vpop.permute.xlu0 %2413 }
0x26fe   :  { %v2416_v9 = vadd.f32 %v2414_v4, %v2409_v3  ;;  %v1644_v14 = vpop.permute.xlu1 %1643  ;;  %2428 = vrot.lane.b32.xlu1 %v2409_v3, %s3975_s4  ;;  %v1390_v62 = vadd.f32 %v1388_v38, %v1380_v39 }
0x26ff   :  { %1646 = vst.msk [vmem:[#allocation3 + $0x8] sm:$0x30] %vm734_vm3, %v1644_v14 }
0x2700   :  { %2626 = vrot.lane.b32.xlu0 %v2416_v9, %s3975_s4  ;;  %v2701_v24 = vrot.slane %v1390_v62, 6 }
0x2701   :  { %v1398_v16 = vpop.permute.xlu0 %1397 }
0x2702   :  { %v1904_v17 = vpop.permute.xlu1 %1903  ;;  %865 = vrot.lane.b32.xlu1 %v4348_v34, %s3975_s4  ;;  %v1391_v34 = vmul.f32 %v4640_v28, %v4371_v5  ;;  %v2619_v28 = vld [vmem:[#allocation15 + $0x10] sm:$0xff] }
0x2703   :  { %1906 = vst.msk [vmem:[#allocation3 + $0x8] sm:$0x3] %vm467_vm4, %v1904_v17  ;;  %v3538_v33 = vpack.c.bf16 %v2620_v35, %v2619_v28 }
0x2704   :  { %2794 = vrot.lane.b32.xlu0 %v2426_v47, %s3976_s7  ;;  %v1400_v25 = vadd.f32 %v1398_v16, %v1391_v34 }
0x2705   :  { %v2036_v21 = vpop.permute.xlu0 %2035 }
0x2706   :  { %2038 = vst.msk [vmem:[#allocation3] sm:$0xc0] %vm868_vm5, %v2036_v21  ;;  %v598_v23 = vpop.permute.xlu1 %597  ;;  %1136 = vrot.lane.b32.xlu1 %v4398_v45, %s3975_s4  ;;  %v2869_v7 = vrot.slane %v1400_v25, 6 }
0x2707   :  { %601 = vst.msk [vmem:[#allocation2] sm:$0xc] %vm600_vm6, %v598_v23 }
0x2709   :  { %v2302_v49 = vpop.permute.xlu0 %2301 }
0x270a   :  { %2304 = vst.msk [vmem:[#allocation3] sm:$0xc] %vm600_vm6, %v2302_v49  ;;  %1402 = vrot.lane.b32.xlu1 %v1380_v39, %s3975_s4 }
0x270d   :  { %v1511_v26 = vpop.permute.xlu0 %1510 }
0x270e   :  { %1513 = vst.msk [vmem:[#allocation3 + $0x8] sm:$0xc0] %vm868_vm5, %v1511_v26  ;;  %2702 = vrot.lane.b32.xlu1 %v2701_v24, %s3975_s4 }
0x2711   :  { %v1777_v45 = vpop.permute.xlu0 %1776 }
0x2712   :  { %1779 = vst.msk [vmem:[#allocation3 + $0x8] sm:$0xc] %vm600_vm6, %v1777_v45  ;;  %2870 = vrot.lane.b32.xlu1 %v2869_v7, %s3976_s7 }
0x2715   :  { %v465_v31 = vpop.permute.xlu0 %464 }
0x2716   :  { %468 = vst.msk [vmem:[#allocation2] sm:$0x3] %vm467_vm4, %v465_v31 }
0x2719   :  { %v732_v5 = vpop.permute.xlu0 %731  ;;  %v2439_v6 = vld [vmem:[#allocation3 + $0x8] sm:$0xff] }
0x271a   :  { %735 = vst.msk [vmem:[#allocation2] sm:$0x30] %vm734_vm3, %v732_v5 }
0x271d   :  { %v1005_v11 = vpop.permute.xlu0 %1004 }
0x271e   :  { %1007 = vst.msk [vmem:[#allocation2 + $0x8] sm:$0x3] %vm467_vm4, %v1005_v11 }
0x2721   :  { %v1270_v27 = vpop.permute.xlu0 %1269 }
0x2722   :  { %1272 = vst.msk [vmem:[#allocation2 + $0x8] sm:$0x30] %vm734_vm3, %v1270_v27 }
0x2770   :  { %v2429_v29 = vpop.permute.xlu1 %2428 }
0x2771   :  { %2431 = vst.msk [vmem:[#allocation3] sm:$0x3] %vm467_vm4, %v2429_v29 }
0x2772   :  { %v2627_v56 = vpop.permute.xlu0 %2626 }
0x2773   :  { %3373 = vmatmul.mubr.msk.f32.vlgmr.msra.gmra.mrb[18].mxu1 %vm348_vm2, %v2627_v56 }
0x2774   :  { %v866_v59 = vpop.permute.xlu1 %865  ;;  %3536 = vmatpush3.bf16.msra.mxu1 %v3535_v30  ;;  %3383 = vmatprep.mubr.msk.f32.mxu1 %vm3971_vm1, %v3972_v12 }
0x2775   :  { %869 = vst.msk [vmem:[#allocation2] sm:$0xc0] %vm868_vm5, %v866_v59  ;;  %3537 = vmatprep.subr.bf16.mxu1 %v3970_v8 }
0x2776   :  { %v2795_v13 = vpop.permute.xlu0 %2794 }
0x2778   :  { %v1137_v44 = vpop.permute.xlu1 %1136  ;;  %v2438_v37 = vld [vmem:[#allocation3] sm:$0xff]  ;;  %3539 = vmatpush3.bf16.msra.mxu1 %v3538_v33 }
0x2779   :  { %1139 = vst.msk [vmem:[#allocation2 + $0x8] sm:$0xc] %vm600_vm6, %v1137_v44  ;;  %3350 = vmatprep.mubr.msk.f32.mxu0 %vm348_vm2, %v2438_v37  ;;  %3546 = vmatprep.subr.bf16.mxu1 %v3970_v8 }
0x277a   :  { %3351 = vmatmul.mubr.msk.f32.vlgmr.msra.gmra.mrb[18].mxu0 %vm348_vm2, %v2439_v6 }
0x277b   :  { %3523 = vmatpush3.bf16.msra.mxu0 %v4691_v1 }
0x277c   :  { %v1403_v51 = vpop.permute.xlu1 %1402  ;;  %v2432_v52 = vld [vmem:[#allocation2] sm:$0xff]  ;;  %3525 = vmatprep.subr.bf16.mxu0 %v3524_v48 }
0x277d   :  { %1405 = vst.msk [vmem:[#allocation2 + $0x8] sm:$0xc0] %vm868_vm5, %v1403_v51  ;;  %3361 = vmatprep.mubr.msk.f32.mxu0 %vm348_vm2, %v2432_v52 }
0x277f   :  { %3527 = vmatpush3.bf16.msra.mxu0 %v3524_v48 }
0x2780   :  { %v2703_v40 = vpop.permute.xlu1 %2702  ;;  %3540 = vmatprep.subr.bf16.mxu0 %v3970_v8 }
0x2781   :  { %3384 = vmatmul.mubr.msk.f32.vlgmr.msra.gmra.mrb[20].mxu1 %vm348_vm2, %v2703_v40 }
0x2782   :  { %3548 = vmatpush3.bf16.msra.mxu1 %v3535_v30  ;;  %3405 = vmatprep.mubr.msk.f32.mxu1 %vm3971_vm1, %v3972_v12 }
0x2783   :  { %3549 = vmatprep.subr.bf16.mxu1 %v3970_v8 }
0x2784   :  { %v2433_v41 = vld [vmem:[#allocation2 + $0x8] sm:$0xff]  ;;  %v2871_v50 = vpop.permute.xlu1 %2870 }
0x2785   :  { %3362 = vmatmul.mubr.msk.f32.vlgmr.msra.gmra.mrb[18].mxu0 %vm348_vm2, %v2433_v41 }
0x2786   :  { %3542 = vmatpush3.bf16.msra.mxu0 %v4676_v22  ;;  %3551 = vmatpush3.bf16.msra.mxu1 %v3538_v33  ;;  %v3028_v22 = vld [vmem:[%s4818_s13] ss:$0 sm:$0xff]  ;;  %s3880_s13 = scalar_lea.vmem %s2972_s11, 32 }
0x2787   :  { %3543 = vmatprep.subr.bf16.mxu0 %v3970_v8  ;;  %3394 = vmatprep.mubr.msk.f32.mxu0 %vm3971_vm1, %v3972_v12  ;;  %v3025_v12 = vld [vmem:[%s4815_s10] ss:$0 sm:$0xff]  ;;  %p3881_p8 = scmp.ne.s32.totalorder %s2972_s11, %s3880_s13  ;;  %p3886_p10 = scmp.lt.s32.totalorder %s3880_s13, %s3880_s13 }
0x2789   :  { %3406 = vmatmul.mubr.msk.f32.vlgmr.msra.gmra.mrb[22].mxu1 %vm348_vm2, %v2871_v50  ;;  %p3887_p11 = por %p3886_p10, %p3885_p9 }
0x278a   :  { %3545 = vmatpush3.bf16.msra.mxu0 %v4679_v19 }
0x278b   :  { %p3888_p12 = pnand %p3887_p11, %p3881_p8 }
0x278d   :  { %3395 = vmatmul.mubr.msk.f32.vlgmr.msra.gmra.mrb[20].mxu0 %vm348_vm2, %v2795_v13 }
0x2846   :  { %v2696_v43 = vpop.f32.mrb[18].mxu1 }
0x2847   :  { %v3374_v63 = vpop.f32.mrb[19].mxu1 }
0x2854   :  { %v2772_v32 = vpop.f32.mrb[20].mxu1 }
0x2855   :  { %v2773_v8 = vadd.f32 %v2772_v32, %v2696_v43  ;;  %v3385_v61 = vpop.f32.mrb[21].mxu1 }
0x2857   :  { %v2783_v19 = vadd.f32 %v3028_v22, %v2773_v8 }
0x2858   :  { %v3363_v38 = vpop.f32.mrb[18].mxu0 }
0x2859   :  { %2784 = vst.msk [vmem:[#allocation19] sm:$0x3] %vm467_vm4, %v2783_v19  ;;  %v2614_v18 = vadd.f32 %v3363_v38, %v3025_v12  ;;  %v2597_v55 = vpop.f32.mrb[19].mxu0 }
0x285a   :  { %v2613_v58 = vadd.f32 %v3025_v12, %v2597_v55 }
0x285b   :  { %3891 = shalt.err (!%p3888_p12)
}
0x285c   :  { %s3892_s0 = scalar_lea.hbm %s4820_s15, 32 }
0x285d   :  { %p3893_p13 = scmp.ne.s32.totalorder %s4820_s15, %s3892_s0  ;;  %p3896_p0 = scmp.lt.u32.totalorder %s3892_s0, %s4820_s15 }
0x285f   :  { %p3898_p1 = pnand %p3896_p0, %p3893_p13 }
0x2861   :  { %3901 = shalt.err (!%p3898_p1)
}
0x2862   :  { %2974 = dma.vmem_to_hbm [thread:$0]  %s2972_s11, 32, %s4820_s15, [#allocation20]   ;;  %2616 = vst.msk [vmem:[#allocation18 + $0x8] sm:$0xff] %vm348_vm2, %v2614_v18  ;;  %2615 = vst.msk [vmem:[#allocation18] sm:$0xff] %vm348_vm2, %v2613_v58  ;;  %v2940_v57 = vpop.f32.mrb[22].mxu1 }
0x2863   :  { %v3407_v60 = vpop.f32.mrb[23].mxu1  ;;  %s3902_s1 = scalar_lea.vmem %s4756_s9, 256  ;;  %p3907_p3 = scmp.lt.s32.totalorder %s4756_s9, %s4756_s9 }
0x2864   :  { %p3903_p2 = scmp.ne.s32.totalorder %s4756_s9, %s3902_s1  ;;  %p3908_p4 = scmp.lt.s32.totalorder %s3902_s1, %s3902_s1 }
0x2866   :  { %p3909_p5 = por %p3908_p4, %p3907_p3 }
0x2868   :  { %p3910_p6 = pnand %p3909_p5, %p3903_p2 }
0x286a   :  { %3913 = shalt.err (!%p3910_p6)
}
0x286b   :  { %s3914_s26 = scalar_lea.hbm %s4819_s14, 256 }
0x286c   :  { %p3915_p7 = scmp.ne.s32.totalorder %s4819_s14, %s3914_s26  ;;  %p3918_p8 = scmp.lt.u32.totalorder %s3914_s26, %s4819_s14 }
0x286e   :  { %p3920_p9 = pnand %p3918_p8, %p3915_p7 }
0x2870   :  { %3923 = shalt.err (!%p3920_p9)
}
0x2871   :  { %2964 = dma.vmem_to_hbm [thread:$0]  %s4756_s9, 256, %s4819_s14, [#allocation6], %s3962_s18, %s3962_s18, %s3963_s19   ;;  %v2864_v0 = vpop.f32.mrb[20].mxu0 }
0x2872   :  { %s3979_s21 = smov [#allocation21]   ;;  %v2941_v10 = vadd.f32 %v2940_v57, %v2864_v0  ;;  %v3396_v2 = vpop.f32.mrb[21].mxu0 }
0x2873   :  { %s2981_s30 = sshll.u32 %s3979_s21, 4  ;;  %s2982_s30 = int_to_ptr.vmem [resolvable:$true] %s2981_s30 }
0x2874   :  { %v2951_v53 = vadd.f32 %v3028_v22, %v2941_v10  ;;  %s3924_s11 = scalar_lea.vmem %s2982_s30, 32  ;;  %p3929_p11 = scmp.lt.s32.totalorder %s2982_s30, %s2982_s30 }
0x2875   :  { %p3925_p10 = scmp.ne.s32.totalorder %s2982_s30, %s3924_s11  ;;  %p3930_p12 = scmp.lt.s32.totalorder %s3924_s11, %s3924_s11 }
0x2876   :  { %2952 = vst.msk [vmem:[#allocation21] sm:$0x3] %vm467_vm4, %v2951_v53 }
0x2877   :  { %p3931_p13 = por %p3930_p12, %p3929_p11 }
0x2879   :  { %p3932_p0 = pnand %p3931_p13, %p3925_p10 }
0x287b   :  { %3935 = shalt.err (!%p3932_p0)
}
0x287c   :  { %s3936_s14 = scalar_lea.hbm %s4821_s16, 32 }
0x287d   :  { %p3937_p1 = scmp.ne.s32.totalorder %s4821_s16, %s3936_s14  ;;  %p3940_p2 = scmp.lt.u32.totalorder %s3936_s14, %s4821_s16 }
0x287f   :  { %p3942_p3 = pnand %p3940_p2, %p3937_p1 }
0x2881   :  { %3945 = shalt.err (!%p3942_p3)
}
0x2882   :  { %2984 = dma.vmem_to_hbm [thread:$0]  %s2982_s30, 32, %s4821_s16, [#allocation20]  }
0x2883   :  { %3956 = dma.done.wait [#allocation6], 256  }
0x2884   :  { %3957 = vsyncadd [#allocation6], 4294967040 }
0x2885   :  { %3958 = dma.done.wait [#allocation20], 64  }
0x2886   :  { %3959 = vsyncadd [#allocation20], 4294967232 }
0x2887   :  { %2994 = vsyncpa [#allocation5], 1 }
0x2888   :  { %2995 = vsyncpa [#allocation8], 1 }
0x2889   :  { %2996 = vsyncpa [#allocation11], 1 }
0x288a   :  { %2997 = vsyncpa [#allocation14], 1 }
0x288b   :  { %2998 = vsyncpa [#allocation17], 1 }
0x288c   :  { %2999 = vsyncpa [#allocation6], 1 }
0x288d   :  { %3000 = vsyncpa [#allocation20], 1 }

</bundles_post_ra>
